<compile_context>
chip_gen: v7x
topology: tpu7x:2x2x1
jax: 0.10.0
libtpu: 0.0.40
codegen_flags: <defaults>
</compile_context>

<pallas_src>
import jax
import jax.numpy as jnp
from jax.experimental import pallas as pl
from jax.experimental.pallas import tpu as pltpu


MAX_TILE_B = 2048   # batch tile on the lane axis; multiple of 256 -> full MXU N-blocks
MIN_TILE_B = 256
HIDDEN = 512


def _round_up(x, m):
    return (x + m - 1) // m * m


def discriminator_kernel(z_ref, w1_ref, b1_ref, w2_ref, b2_ref, w3_ref, b3_ref, o_ref):
    """One batch tile of the discriminator, feature-major layout.

    z_ref : (z_dim, TILE_B) bf16   batch on lanes
    w1    : (512, z_dim)    bf16   resident across batch tiles
    w2    : (512, 512)      bf16   resident across batch tiles
    b1,b2 : (512, 1)        f32    sublane-broadcast biases
    w3    : (512, 1)        f32    layer-3 column (VPU path, not MXU)
    b3    : (1, 1)          f32    scalar in SMEM
    o_ref : (1, TILE_B)     f32    lane-dense sigmoid output
    """
    # Layer 1: Linear(z_dim -> 512) + ReLU on the MXU (K=10 padded to the K-block;
    # accepted — a VPU outer-product alternative is serial and slower here).
    h = jnp.dot(w1_ref[...], z_ref[...], preferred_element_type=jnp.float32)
    h = jnp.maximum(h + b1_ref[...], 0.0)

    # Layer 2: Linear(512 -> 512) + ReLU (the MXU-dominant step).
    h = jnp.dot(w2_ref[...], h.astype(jnp.bfloat16), preferred_element_type=jnp.float32)
    h = jnp.maximum(h + b2_ref[...], 0.0)

    # Layer 3: Linear(512 -> 1). M=1 matmul replaced by VPU multiply + sublane reduce.
    logits = jnp.sum(h * w3_ref[...], axis=0, keepdims=True) + b3_ref[0, 0]

    # Numerically stable sigmoid (exact reciprocal; EUP is nowhere near the bottleneck).
    e = jnp.exp(-jnp.abs(logits))
    pos = pl.reciprocal(1.0 + e, approx=False)
    o_ref[...] = jnp.where(logits >= 0.0, pos, 1.0 - pos)


def discriminator_forward(z, params, *, max_tile_b=MAX_TILE_B):
    """z: (B, z_dim) f32. Returns sigmoid probabilities, shape (B, 1), f32."""
    w1, b1, w2, b2, w3, b3 = params
    B, z_dim = z.shape
    hidden = w1.shape[0]

    # Tile selection: as large as possible (amortize per-grid-step overhead) but
    # capped so num_tiles >= 2 when B allows it (keeps both v7x TensorCores busy).
    tile_b = min(max_tile_b, max(MIN_TILE_B, _round_up(pl.cdiv(B, 2), 256)))
    num_tiles = pl.cdiv(B, tile_b)
    Bp = num_tiles * tile_b

    # Feature-major z (batch on lanes); pad instead of zeros + dynamic-update-slice.
    zt = jnp.pad(z.T.astype(jnp.bfloat16), ((0, 0), (0, Bp - B)))

    # Kernel-side operand layouts. Params stay f32; only MXU operands go bf16.
    w1k = w1.astype(jnp.bfloat16)
    w2k = w2.astype(jnp.bfloat16)
    b1k = b1.reshape(hidden, 1)
    b2k = b2.reshape(hidden, 1)
    w3k = w3.reshape(hidden, 1)      # (1, hidden) -> (hidden, 1) column, f32
    b3k = b3.reshape(1, 1)

    out = pl.pallas_call(
        discriminator_kernel,
        out_shape=jax.ShapeDtypeStruct((1, Bp), jnp.float32),
        grid=(num_tiles,),
        in_specs=[
            pl.BlockSpec((z_dim, tile_b), lambda i: (0, i)),      # z batch tile
            pl.BlockSpec((hidden, z_dim), lambda i: (0, 0)),      # w1 (resident)
            pl.BlockSpec((hidden, 1), lambda i: (0, 0)),          # b1
            pl.BlockSpec((hidden, hidden), lambda i: (0, 0)),     # w2 (resident)
            pl.BlockSpec((hidden, 1), lambda i: (0, 0)),          # b2
            pl.BlockSpec((hidden, 1), lambda i: (0, 0)),          # w3 column
            pl.BlockSpec(memory_space=pltpu.MemorySpace.SMEM),    # b3 scalar
        ],
        out_specs=pl.BlockSpec((1, tile_b), lambda i: (0, i)),    # lane-dense output
        compiler_params=pltpu.CompilerParams(
            dimension_semantics=("parallel",),      # v7x: batch tiles across 2 TCs
            vmem_limit_bytes=48 * 1024 * 1024,      # headroom for tile_b=2048 on v5e
        ),
    )(zt, w1k, b1k, w2k, b2k, w3k, b3k)

    # Slice the valid lanes first, then relayout (1, B) -> (B, 1).
    return out[:, :B].reshape(B, 1)


def init_params(key, z_dim=10, hidden=HIDDEN):
    """kaiming_normal(fan_in, relu gain) weights, zero biases — mirrors kaiming_init()
    on the nn.Linear layers. Stored in f32, PyTorch (out, in) layout."""
    k1, k2, k3 = jax.random.split(key, 3)

    def kaiming(k, fan_out, fan_in):
        std = (2.0 / fan_in) ** 0.5
        return std * jax.random.normal(k, (fan_out, fan_in), dtype=jnp.float32)

    w1 = kaiming(k1, hidden, z_dim)
    b1 = jnp.zeros((hidden,), jnp.float32)
    w2 = kaiming(k2, hidden, hidden)
    b2 = jnp.zeros((hidden,), jnp.float32)
    w3 = kaiming(k3, 1, hidden)
    b3 = jnp.zeros((1,), jnp.float32)
    return (w1, b1, w2, b2, w3, b3)


def reference_forward(z, params):
    """Pure-JAX f32 reference matching the PyTorch module semantics."""
    w1, b1, w2, b2, w3, b3 = params
    h = jnp.maximum(z @ w1.T + b1, 0.0)
    h = jnp.maximum(h @ w2.T + b2, 0.0)
    return jax.nn.sigmoid(h @ w3.T + b3)


if __name__ == "__main__":
    key = jax.random.PRNGKey(0)
    k_params, k_z = jax.random.split(key)

    z_dim = 10
    batch = 8
    params = init_params(k_params, z_dim=z_dim)
    z = jax.random.normal(k_z, (batch, z_dim), dtype=jnp.float32)

    out = jax.block_until_ready(discriminator_forward(z, params))
    ref = reference_forward(z, params)

    assert out.shape == (batch, 1), out.shape
    # Params are f32; only MXU operands (z, w1, w2) are bf16 with f32 accumulation,
    # so comparing against the f32 reference catches layout/indexing bugs while
    # allowing deliberate bf16 operand rounding.
    err = jnp.max(jnp.abs(out - ref))
    assert jnp.allclose(out, ref, atol=2e-2, rtol=2e-2), f"max abs err {err}"

    print("KERNEL_OK")
</pallas_src>

<mosaic_0001>
module attributes {stable_mosaic.version = 11 : i64} {
  func.func @discriminator_kernel(%arg0: i32, %arg1: memref<10x256xbf16, #tpu.memory_space<vmem>>, %arg2: memref<512x10xbf16, #tpu.memory_space<vmem>>, %arg3: memref<512x1xf32, #tpu.memory_space<vmem>>, %arg4: memref<512x512xbf16, #tpu.memory_space<vmem>>, %arg5: memref<512x1xf32, #tpu.memory_space<vmem>>, %arg6: memref<512x1xf32, #tpu.memory_space<vmem>>, %arg7: memref<1x1xf32, #tpu.memory_space<smem>>, %arg8: memref<1x256xf32, #tpu.memory_space<vmem>>) attributes {dimension_semantics = [#tpu.dimension_semantics<parallel>], iteration_bounds = array<i64: 1>, scalar_prefetch = 0 : i64, scratch_operands = 0 : i64, tpu.core_type = #tpu.core_type<tc>, window_params = [{transform_indices = @transform_0, window_bounds = array<i64: 10, 256>}, {pipeline_mode = #tpu.pipeline_mode<synchronous>, transform_indices = @transform_1, window_bounds = array<i64: 512, 10>}, {pipeline_mode = #tpu.pipeline_mode<synchronous>, transform_indices = @transform_2, window_bounds = array<i64: 512, 1>}, {pipeline_mode = #tpu.pipeline_mode<synchronous>, transform_indices = @transform_3, window_bounds = array<i64: 512, 512>}, {pipeline_mode = #tpu.pipeline_mode<synchronous>, transform_indices = @transform_4, window_bounds = array<i64: 512, 1>}, {pipeline_mode = #tpu.pipeline_mode<synchronous>, transform_indices = @transform_5, window_bounds = array<i64: 512, 1>}, {transform_indices = @transform_6, window_bounds = array<i64: 1, 1>}, {transform_indices = @transform_7, window_bounds = array<i64: 1, 256>}]} {
    %c0 = arith.constant 0 : index
    %c0_0 = arith.constant 0 : index
    %0 = vector.load %arg2[%c0, %c0_0] : memref<512x10xbf16, #tpu.memory_space<vmem>>, vector<512x10xbf16>
    %c0_1 = arith.constant 0 : index
    %c0_2 = arith.constant 0 : index
    %1 = vector.load %arg1[%c0_1, %c0_2] : memref<10x256xbf16, #tpu.memory_space<vmem>>, vector<10x256xbf16>
    %cst = arith.constant dense<0.000000e+00> : vector<512x256xf32>
    %2 = tpu.matmul %0, %1, %cst {dimension_numbers = #tpu.dot_dimension_numbers<[1], [0], [0], [1], [0, 0, 1, 1], [], []>} : vector<512x10xbf16>, vector<10x256xbf16>, vector<512x256xf32> -> vector<512x256xf32>
    %c0_3 = arith.constant 0 : index
    %c0_4 = arith.constant 0 : index
    %3 = vector.load %arg3[%c0_3, %c0_4] : memref<512x1xf32, #tpu.memory_space<vmem>>, vector<512x1xf32>
    %4 = vector.broadcast %3 : vector<512x1xf32> to vector<512x256xf32>
    %5 = arith.addf %2, %4 : vector<512x256xf32>
    %cst_5 = arith.constant 0.000000e+00 : f32
    %6 = vector.broadcast %cst_5 : f32 to vector<512x256xf32>
    %7 = arith.maximumf %5, %6 : vector<512x256xf32>
    %c0_6 = arith.constant 0 : index
    %c0_7 = arith.constant 0 : index
    %8 = vector.load %arg4[%c0_6, %c0_7] : memref<512x512xbf16, #tpu.memory_space<vmem>>, vector<512x512xbf16>
    %9 = arith.truncf %7 : vector<512x256xf32> to vector<512x256xbf16>
    %cst_8 = arith.constant dense<0.000000e+00> : vector<512x256xf32>
    %10 = tpu.matmul %8, %9, %cst_8 {dimension_numbers = #tpu.dot_dimension_numbers<[1], [0], [0], [1], [0, 0, 1, 1], [], []>} : vector<512x512xbf16>, vector<512x256xbf16>, vector<512x256xf32> -> vector<512x256xf32>
    %c0_9 = arith.constant 0 : index
    %c0_10 = arith.constant 0 : index
    %11 = vector.load %arg5[%c0_9, %c0_10] : memref<512x1xf32, #tpu.memory_space<vmem>>, vector<512x1xf32>
    %12 = vector.broadcast %11 : vector<512x1xf32> to vector<512x256xf32>
    %13 = arith.addf %10, %12 : vector<512x256xf32>
    %cst_11 = arith.constant 0.000000e+00 : f32
    %14 = vector.broadcast %cst_11 : f32 to vector<512x256xf32>
    %15 = arith.maximumf %13, %14 : vector<512x256xf32>
    %c0_12 = arith.constant 0 : index
    %c0_13 = arith.constant 0 : index
    %16 = vector.load %arg6[%c0_12, %c0_13] : memref<512x1xf32, #tpu.memory_space<vmem>>, vector<512x1xf32>
    %17 = vector.broadcast %16 : vector<512x1xf32> to vector<512x256xf32>
    %18 = arith.mulf %15, %17 : vector<512x256xf32>
    %cst_14 = arith.constant dense<0.000000e+00> : vector<256xf32>
    %19 = vector.multi_reduction <add>, %18, %cst_14 [0] : vector<512x256xf32> to vector<256xf32>
    %20 = vector.shape_cast %19 : vector<256xf32> to vector<1x256xf32>
    %c0_15 = arith.constant 0 : index
    %c0_16 = arith.constant 0 : index
    %21 = memref.load %arg7[%c0_15, %c0_16] : memref<1x1xf32, #tpu.memory_space<smem>>
    %22 = vector.broadcast %21 : f32 to vector<1x256xf32>
    %23 = arith.addf %20, %22 : vector<1x256xf32>
    %24 = math.absf %23 : vector<1x256xf32>
    %cst_17 = arith.constant 0.000000e+00 : f32
    %25 = vector.broadcast %cst_17 : f32 to vector<1x256xf32>
    %26 = arith.subf %25, %24 : vector<1x256xf32>
    %27 = math.exp %26 : vector<1x256xf32>
    %cst_18 = arith.constant 1.000000e+00 : f32
    %28 = vector.broadcast %cst_18 : f32 to vector<1x256xf32>
    %29 = arith.addf %28, %27 : vector<1x256xf32>
    %30 = tpu.reciprocal %29 : vector<1x256xf32> -> vector<1x256xf32>
    %cst_19 = arith.constant 0.000000e+00 : f32
    %31 = vector.broadcast %cst_19 : f32 to vector<1x256xf32>
    %32 = arith.cmpf oge, %23, %31 : vector<1x256xf32>
    %cst_20 = arith.constant 1.000000e+00 : f32
    %33 = vector.broadcast %cst_20 : f32 to vector<1x256xf32>
    %34 = arith.subf %33, %30 : vector<1x256xf32>
    %35 = arith.select %32, %30, %34 : vector<1x256xi1>, vector<1x256xf32>
    %c0_21 = arith.constant 0 : index
    %c0_22 = arith.constant 0 : index
    %36 = vector.load %arg8[%c0_21, %c0_22] : memref<1x256xf32, #tpu.memory_space<vmem>>, vector<1x256xf32>
    tpu.vector_store %arg8[%c0_21, %c0_22], %35 {strides = array<i32>} : memref<1x256xf32, #tpu.memory_space<vmem>>, vector<1x256xf32>,
    return
  }
  func.func @transform_0(%arg0: i32) -> (i32, i32) {
    %c0_i32 = arith.constant 0 : i32
    %c0_i32_0 = arith.constant 0 : i32
    return %c0_i32, %arg0 : i32, i32
  }
  func.func @transform_1(%arg0: i32) -> (i32, i32) {
    %c0_i32 = arith.constant 0 : i32
    %c0_i32_0 = arith.constant 0 : i32
    %c0_i32_1 = arith.constant 0 : i32
    return %c0_i32, %c0_i32_0 : i32, i32
  }
  func.func @transform_2(%arg0: i32) -> (i32, i32) {
    %c0_i32 = arith.constant 0 : i32
    %c0_i32_0 = arith.constant 0 : i32
    %c0_i32_1 = arith.constant 0 : i32
    return %c0_i32, %c0_i32_0 : i32, i32
  }
  func.func @transform_3(%arg0: i32) -> (i32, i32) {
    %c0_i32 = arith.constant 0 : i32
    %c0_i32_0 = arith.constant 0 : i32
    %c0_i32_1 = arith.constant 0 : i32
    return %c0_i32, %c0_i32_0 : i32, i32
  }
  func.func @transform_4(%arg0: i32) -> (i32, i32) {
    %c0_i32 = arith.constant 0 : i32
    %c0_i32_0 = arith.constant 0 : i32
    %c0_i32_1 = arith.constant 0 : i32
    return %c0_i32, %c0_i32_0 : i32, i32
  }
  func.func @transform_5(%arg0: i32) -> (i32, i32) {
    %c0_i32 = arith.constant 0 : i32
    %c0_i32_0 = arith.constant 0 : i32
    %c0_i32_1 = arith.constant 0 : i32
    return %c0_i32, %c0_i32_0 : i32, i32
  }
  func.func @transform_6(%arg0: i32) -> (i32, i32) {
    %c0_i32 = arith.constant 0 : i32
    %c0_i32_0 = arith.constant 0 : i32
    %c0_i32_1 = arith.constant 0 : i32
    return %c0_i32, %c0_i32_0 : i32, i32
  }
  func.func @transform_7(%arg0: i32) -> (i32, i32) {
    %c0_i32 = arith.constant 0 : i32
    %c0_i32_0 = arith.constant 0 : i32
    return %c0_i32, %arg0 : i32, i32
  }
}

</mosaic_0001>

<bundles_post_ra>
// kernel: tpu_custom_call.1
= control target key start
LH: loop header
LB: loop body
LE: loop exit
PB: predicated region body
PF: predicated region fallthrough
CT: control target
= control target key end

     0   :  { %vm744_vm0 = vcmask 1044480   ;;  %v4738_v2 = vmov 0   ;;  %vm647_vm1 = vcmask 80896   ;;  %s6664_s0 = inlined_call_operand.vmem [shape: bf16[10,256], index: 0, kind: input, shape index: {}]   ;;  %s6665_s1 = inlined_call_operand.vmem [shape: bf16[512,10], index: 1, kind: input, shape index: {}]   ;;  %s6666_s2 = inlined_call_operand.vmem [shape: f32[512,1], index: 2, kind: input, shape index: {}]   ;;  %s6667_s3 = inlined_call_operand.vmem [shape: bf16[512,512], index: 3, kind: input, shape index: {}]   ;;  %s6668_s4 = inlined_call_operand.vmem [shape: f32[512,1], index: 4, kind: input, shape index: {}]   ;;  %s6669_s5 = inlined_call_operand.vmem [shape: f32[512,1], index: 5, kind: input, shape index: {}]   ;;  %s6670_s6 = inlined_call_operand.<no memory space> [shape: f32[1,1], index: 6, kind: input, shape index: {}]   ;;  %s6671_s7 = inlined_call_operand.hbm [shape: f32[1,256], index: 7, kind: output, shape index: {}]  }
   0x1   :  { %v97_v0 = vld [vmem:[%s6666_s2 + $0x10] sm:$0xff]  ;;  %v95_v1 = vld [vmem:[%s6666_s2] sm:$0xff]  ;;  %4478 = vset.pattern.permute.xlu1 %v4738_v2  ;;  %4477 = vset.pattern.permute.xlu0 %v4738_v2  ;;  %v98_v5 = vld [vmem:[%s6666_s2 + $0x18] sm:$0xff] }
   0x2   :  { %v4479_v3 = vld [vmem:[%s6664_s0 + $0x4] ss:$8 sps:$4 sm:$0x1f]   ;;  %171 = vperm.xlu1 %4478, %v97_v0   ;;  %161 = vperm.xlu0 %4477, %v95_v1   ;;  %v4481_v4 = vld [vmem:[%s6664_s0] ss:$8 sps:$4 sm:$0x1f]  }
   0x3   :  { %4025 = vmatprep.subr.msk.bf16.mxu0 %vm744_vm0, %v4479_v3  ;;  %783 = vmatprep.mubr.bf16.mxu0 %v4738_v2  ;;  %v96_v6 = vld [vmem:[%s6666_s2 + $0x8] sm:$0xff]  ;;  %v746_v7 = vsel %vm744_vm0, %v4481_v4, 0  ;;  %v4482_v8 = vld [vmem:[%s6665_s1] sm:$0xff]   ;;  %v102_v11 = vld [vmem:[%s6666_s2 + $0x38] sm:$0xff] }
   0x4   :  { %752 = vmatpush1.bf16.msra.mxu0 %v746_v7  ;;  %v100_v9 = vld [vmem:[%s6666_s2 + $0x28] sm:$0xff]  ;;  %v99_v10 = vld [vmem:[%s6666_s2 + $0x20] sm:$0xff]  ;;  %v101_v12 = vld [vmem:[%s6666_s2 + $0x30] sm:$0xff] }
   0x5   :  { %v4483_v13 = vld [vmem:[%s6665_s1 + $0x8] sm:$0xff]   ;;  %v103_v15 = vld [vmem:[%s6666_s2 + $0x40] sm:$0xff]  ;;  %v106_v16 = vld [vmem:[%s6666_s2 + $0x58] sm:$0xff] }
   0x6   :  { %176 = vperm.xlu1 %4478, %v98_v5   ;;  %166 = vperm.xlu0 %4477, %v96_v6   ;;  %v104_v14 = vld [vmem:[%s6666_s2 + $0x48] sm:$0xff]  ;;  %v105_v17 = vld [vmem:[%s6666_s2 + $0x50] sm:$0xff]  ;;  %v107_v20 = vld [vmem:[%s6666_s2 + $0x60] sm:$0xff] }
   0x7   :  { %4026 = vmatmul.mubr.msk.bf16.vlgmr.msra.gmra.mrb[0].mxu0 %vm647_vm1, %v4482_v8  ;;  %v4484_v18 = vld [vmem:[%s6665_s1 + $0x10] sm:$0xff]   ;;  %v108_v19 = vld [vmem:[%s6666_s2 + $0x68] sm:$0xff]  ;;  %v110_v21 = vld [vmem:[%s6666_s2 + $0x78] sm:$0xff] }
   0x8   :  { %793 = vmatprep.mubr.bf16.mxu0 %v4738_v2  ;;  %v109_v22 = vld [vmem:[%s6666_s2 + $0x70] sm:$0xff]  ;;  %v4485_v23 = vld [vmem:[%s6665_s1 + $0x18] sm:$0xff]   ;;  %v112_v24 = vld [vmem:[%s6666_s2 + $0x88] sm:$0xff] }
   0x9   :  { %v111_v25 = vld [vmem:[%s6666_s2 + $0x80] sm:$0xff]  ;;  %v114_v26 = vld [vmem:[%s6666_s2 + $0x98] sm:$0xff]  ;;  %v113_v27 = vld [vmem:[%s6666_s2 + $0x90] sm:$0xff] }
   0xa   :  { %186 = vperm.xlu1 %4478, %v100_v9   ;;  %181 = vperm.xlu0 %4477, %v99_v10   ;;  %v4486_v28 = vld [vmem:[%s6665_s1 + $0x20] sm:$0xff]   ;;  %v116_v29 = vld [vmem:[%s6666_s2 + $0xa8] sm:$0xff]  ;;  %v118_v31 = vld [vmem:[%s6666_s2 + $0xb8] sm:$0xff] }
   0xb   :  { %v115_v30 = vld [vmem:[%s6666_s2 + $0xa0] sm:$0xff]  ;;  %v117_v32 = vld [vmem:[%s6666_s2 + $0xb0] sm:$0xff]  ;;  %v4487_v33 = vld [vmem:[%s6665_s1 + $0x28] sm:$0xff]  }
   0xc   :  { %v120_v34 = vld [vmem:[%s6666_s2 + $0xc8] sm:$0xff]  ;;  %v119_v35 = vld [vmem:[%s6666_s2 + $0xc0] sm:$0xff]  ;;  %v122_v36 = vld [vmem:[%s6666_s2 + $0xd8] sm:$0xff] }
   0xd   :  { %v121_v37 = vld [vmem:[%s6666_s2 + $0xd0] sm:$0xff]  ;;  %v124_v39 = vld [vmem:[%s6666_s2 + $0xe8] sm:$0xff]  ;;  %v123_v40 = vld [vmem:[%s6666_s2 + $0xe0] sm:$0xff] }
   0xe   :  { %196 = vperm.xlu1 %4478, %v102_v11   ;;  %191 = vperm.xlu0 %4477, %v101_v12   ;;  %v4488_v38 = vld [vmem:[%s6665_s1 + $0x30] sm:$0xff]   ;;  %v126_v41 = vld [vmem:[%s6666_s2 + $0xf8] sm:$0xff]  ;;  %v128_v44 = vld [vmem:[%s6666_s2 + $0x108] sm:$0xff] }
   0xf   :  { %4027 = vmatmul.mubr.msk.bf16.gmra.mrb[4].mxu0 %vm647_vm1, %v4483_v13  ;;  %v125_v42 = vld [vmem:[%s6666_s2 + $0xf0] sm:$0xff]  ;;  %v4489_v43 = vld [vmem:[%s6665_s1 + $0x38] sm:$0xff]   ;;  %v127_v45 = vld [vmem:[%s6666_s2 + $0x100] sm:$0xff] }
  0x10   :  { %803 = vmatprep.mubr.bf16.mxu0 %v4738_v2  ;;  %v130_v46 = vld [vmem:[%s6666_s2 + $0x118] sm:$0xff]  ;;  %v129_v47 = vld [vmem:[%s6666_s2 + $0x110] sm:$0xff]  ;;  %v4490_v48 = vld [vmem:[%s6665_s1 + $0x40] sm:$0xff]  }
  0x11   :  { %v132_v49 = vld [vmem:[%s6666_s2 + $0x128] sm:$0xff]  ;;  %v131_v50 = vld [vmem:[%s6666_s2 + $0x120] sm:$0xff]  ;;  %v134_v51 = vld [vmem:[%s6666_s2 + $0x138] sm:$0xff] }
  0x12   :  { %206 = vperm.xlu1 %4478, %v104_v14   ;;  %201 = vperm.xlu0 %4477, %v103_v15   ;;  %v133_v52 = vld [vmem:[%s6666_s2 + $0x130] sm:$0xff]  ;;  %v4491_v53 = vld [vmem:[%s6665_s1 + $0x48] sm:$0xff]   ;;  %v135_v55 = vld [vmem:[%s6666_s2 + $0x140] sm:$0xff] }
  0x13   :  { %v136_v54 = vld [vmem:[%s6666_s2 + $0x148] sm:$0xff]  ;;  %v138_v56 = vld [vmem:[%s6666_s2 + $0x158] sm:$0xff]  ;;  %v137_v57 = vld [vmem:[%s6666_s2 + $0x150] sm:$0xff] }
  0x14   :  { %v4492_v58 = vld [vmem:[%s6665_s1 + $0x50] sm:$0xff]   ;;  %v140_v59 = vld [vmem:[%s6666_s2 + $0x168] sm:$0xff]  ;;  %v139_v60 = vld [vmem:[%s6666_s2 + $0x160] sm:$0xff] }
  0x15   :  { %v142_v61 = vld [vmem:[%s6666_s2 + $0x178] sm:$0xff]  ;;  %v141_v62 = vld [vmem:[%s6666_s2 + $0x170] sm:$0xff]  ;;  %v144_v0 = vld [vmem:[%s6666_s2 + $0x188] sm:$0xff] }
  0x16   :  { %216 = vperm.xlu1 %4478, %v106_v16   ;;  %211 = vperm.xlu0 %4477, %v105_v17   ;;  %v4493_v63 = vld [vmem:[%s6665_s1 + $0x58] sm:$0xff]   ;;  %v143_v1 = vld [vmem:[%s6666_s2 + $0x180] sm:$0xff]  ;;  %v145_v4 = vld [vmem:[%s6666_s2 + $0x190] sm:$0xff] }
  0x17   :  { %4028 = vmatmul.mubr.msk.bf16.gmra.mrb[8].mxu0 %vm647_vm1, %v4484_v18  ;;  %v146_v3 = vld [vmem:[%s6666_s2 + $0x198] sm:$0xff]  ;;  %v4494_v5 = vld [vmem:[%s6665_s1 + $0x60] sm:$0xff]   ;;  %v148_v6 = vld [vmem:[%s6666_s2 + $0x1a8] sm:$0xff] }
  0x18   :  { %813 = vmatprep.mubr.bf16.mxu0 %v4738_v2  ;;  %v147_v7 = vld [vmem:[%s6666_s2 + $0x1a0] sm:$0xff]  ;;  %v150_v8 = vld [vmem:[%s6666_s2 + $0x1b8] sm:$0xff]  ;;  %v149_v9 = vld [vmem:[%s6666_s2 + $0x1b0] sm:$0xff] }
  0x19   :  { %v4495_v10 = vld [vmem:[%s6665_s1 + $0x68] sm:$0xff]   ;;  %v151_v12 = vld [vmem:[%s6666_s2 + $0x1c0] sm:$0xff]  ;;  %v154_v13 = vld [vmem:[%s6666_s2 + $0x1d8] sm:$0xff] }
  0x1a   :  { %226 = vperm.xlu1 %4478, %v108_v19   ;;  %221 = vperm.xlu0 %4477, %v107_v20   ;;  %v152_v11 = vld [vmem:[%s6666_s2 + $0x1c8] sm:$0xff]  ;;  %v153_v14 = vld [vmem:[%s6666_s2 + $0x1d0] sm:$0xff] }
  0x1b   :  { %v4496_v15 = vld [vmem:[%s6665_s1 + $0x70] sm:$0xff]  }
  0x1e   :  { %236 = vperm.xlu1 %4478, %v110_v21   ;;  %231 = vperm.xlu0 %4477, %v109_v22  }
  0x1f   :  { %4029 = vmatmul.mubr.msk.bf16.gmra.mrb[12].mxu0 %vm647_vm1, %v4485_v23 }
  0x20   :  { %823 = vmatprep.mubr.bf16.mxu0 %v4738_v2 }
  0x22   :  { %246 = vperm.xlu1 %4478, %v112_v24   ;;  %241 = vperm.xlu0 %4477, %v111_v25  }
  0x26   :  { %256 = vperm.xlu1 %4478, %v114_v26   ;;  %251 = vperm.xlu0 %4477, %v113_v27  }
  0x27   :  { %4030 = vmatmul.mubr.msk.bf16.gmra.mrb[16].mxu0 %vm647_vm1, %v4486_v28 }
  0x28   :  { %833 = vmatprep.mubr.bf16.mxu0 %v4738_v2 }
  0x2a   :  { %266 = vperm.xlu1 %4478, %v116_v29   ;;  %261 = vperm.xlu0 %4477, %v115_v30  }
  0x2e   :  { %276 = vperm.xlu1 %4478, %v118_v31   ;;  %271 = vperm.xlu0 %4477, %v117_v32  }
  0x2f   :  { %4031 = vmatmul.mubr.msk.bf16.gmra.mrb[20].mxu0 %vm647_vm1, %v4487_v33 }
  0x30   :  { %843 = vmatprep.mubr.bf16.mxu0 %v4738_v2 }
  0x32   :  { %286 = vperm.xlu1 %4478, %v120_v34   ;;  %281 = vperm.xlu0 %4477, %v119_v35  }
  0x36   :  { %296 = vperm.xlu1 %4478, %v122_v36   ;;  %291 = vperm.xlu0 %4477, %v121_v37  }
  0x37   :  { %4032 = vmatmul.mubr.msk.bf16.gmra.mrb[24].mxu0 %vm647_vm1, %v4488_v38 }
  0x38   :  { %853 = vmatprep.mubr.bf16.mxu0 %v4738_v2 }
  0x3a   :  { %306 = vperm.xlu1 %4478, %v124_v39   ;;  %301 = vperm.xlu0 %4477, %v123_v40  }
  0x3e   :  { %316 = vperm.xlu1 %4478, %v126_v41   ;;  %311 = vperm.xlu0 %4477, %v125_v42  }
  0x3f   :  { %4033 = vmatmul.mubr.msk.bf16.gmra.mrb[28].mxu0 %vm647_vm1, %v4489_v43 }
  0x40   :  { %863 = vmatprep.mubr.bf16.mxu0 %v4738_v2 }
  0x42   :  { %326 = vperm.xlu1 %4478, %v128_v44   ;;  %321 = vperm.xlu0 %4477, %v127_v45  }
  0x46   :  { %336 = vperm.xlu1 %4478, %v130_v46   ;;  %331 = vperm.xlu0 %4477, %v129_v47  }
  0x47   :  { %4034 = vmatmul.mubr.msk.bf16.gmra.mrb[32].mxu0 %vm647_vm1, %v4490_v48 }
  0x48   :  { %873 = vmatprep.mubr.bf16.mxu0 %v4738_v2 }
  0x4a   :  { %346 = vperm.xlu1 %4478, %v132_v49   ;;  %341 = vperm.xlu0 %4477, %v131_v50  }
  0x4e   :  { %356 = vperm.xlu1 %4478, %v134_v51   ;;  %351 = vperm.xlu0 %4477, %v133_v52  }
  0x4f   :  { %4035 = vmatmul.mubr.msk.bf16.gmra.mrb[36].mxu0 %vm647_vm1, %v4491_v53 }
  0x50   :  { %883 = vmatprep.mubr.bf16.mxu0 %v4738_v2 }
  0x52   :  { %366 = vperm.xlu1 %4478, %v136_v54   ;;  %361 = vperm.xlu0 %4477, %v135_v55  }
  0x56   :  { %376 = vperm.xlu1 %4478, %v138_v56   ;;  %371 = vperm.xlu0 %4477, %v137_v57  }
  0x57   :  { %4036 = vmatmul.mubr.msk.bf16.gmra.mrb[40].mxu0 %vm647_vm1, %v4492_v58 }
  0x58   :  { %893 = vmatprep.mubr.bf16.mxu0 %v4738_v2 }
  0x5a   :  { %386 = vperm.xlu1 %4478, %v140_v59   ;;  %381 = vperm.xlu0 %4477, %v139_v60  }
  0x5e   :  { %396 = vperm.xlu1 %4478, %v142_v61   ;;  %391 = vperm.xlu0 %4477, %v141_v62  }
  0x5f   :  { %4037 = vmatmul.mubr.msk.bf16.gmra.mrb[44].mxu0 %vm647_vm1, %v4493_v63 }
  0x60   :  { %903 = vmatprep.mubr.bf16.mxu0 %v4738_v2 }
  0x62   :  { %406 = vperm.xlu1 %4478, %v144_v0   ;;  %401 = vperm.xlu0 %4477, %v143_v1  }
  0x66   :  { %416 = vperm.xlu1 %4478, %v146_v3   ;;  %411 = vperm.xlu0 %4477, %v145_v4  }
  0x67   :  { %4038 = vmatmul.mubr.msk.bf16.gmra.mrb[48].mxu0 %vm647_vm1, %v4494_v5 }
  0x68   :  { %913 = vmatprep.mubr.bf16.mxu0 %v4738_v2 }
  0x6a   :  { %426 = vperm.xlu1 %4478, %v148_v6   ;;  %421 = vperm.xlu0 %4477, %v147_v7  }
  0x6e   :  { %436 = vperm.xlu1 %4478, %v150_v8   ;;  %431 = vperm.xlu0 %4477, %v149_v9  }
  0x6f   :  { %4039 = vmatmul.mubr.msk.bf16.gmra.mrb[52].mxu0 %vm647_vm1, %v4495_v10 }
  0x70   :  { %923 = vmatprep.mubr.bf16.mxu0 %v4738_v2 }
  0x72   :  { %446 = vperm.xlu1 %4478, %v152_v11   ;;  %441 = vperm.xlu0 %4477, %v151_v12  }
  0x73   :  { %13 = vsyncpa [#allocation4], 0  ;;  %v156_v16 = vld [vmem:[%s6666_s2 + $0x1e8] sm:$0xff]  ;;  %v155_v17 = vld [vmem:[%s6666_s2 + $0x1e0] sm:$0xff] }
  0x74   :  { %v158_v18 = vld [vmem:[%s6666_s2 + $0x1f8] sm:$0xff]  ;;  %v157_v19 = vld [vmem:[%s6666_s2 + $0x1f0] sm:$0xff]  ;;  %v1425_v21 = vld [vmem:[%s6668_s4 + $0x8] sm:$0xff] }
  0x75   :  { %v4497_v20 = vld [vmem:[%s6665_s1 + $0x78] sm:$0xff]   ;;  %v1424_v22 = vld [vmem:[%s6668_s4] sm:$0xff]  ;;  %v1426_v26 = vld [vmem:[%s6668_s4 + $0x10] sm:$0xff] }
  0x76   :  { %456 = vperm.xlu1 %4478, %v154_v13   ;;  %451 = vperm.xlu0 %4477, %v153_v14   ;;  %v1427_v25 = vld [vmem:[%s6668_s4 + $0x18] sm:$0xff]  ;;  %v4498_v27 = vld [vmem:[%s6665_s1 + $0x80] sm:$0xff]   ;;  %v1429_v30 = vld [vmem:[%s6668_s4 + $0x28] sm:$0xff] }
  0x77   :  { %4040 = vmatmul.mubr.msk.bf16.gmra.mrb[56].mxu0 %vm647_vm1, %v4496_v15  ;;  %v1428_v31 = vld [vmem:[%s6668_s4 + $0x20] sm:$0xff]  ;;  %v1431_v34 = vld [vmem:[%s6668_s4 + $0x38] sm:$0xff]  ;;  %v1430_v35 = vld [vmem:[%s6668_s4 + $0x30] sm:$0xff] }
  0x78   :  { %933 = vmatprep.mubr.bf16.mxu0 %v4738_v2  ;;  %v4499_v36 = vld [vmem:[%s6665_s1 + $0x88] sm:$0xff]   ;;  %v1432_v40 = vld [vmem:[%s6668_s4 + $0x40] sm:$0xff]  ;;  %v1435_v43 = vld [vmem:[%s6668_s4 + $0x58] sm:$0xff] }
  0x79   :  { %v1433_v39 = vld [vmem:[%s6668_s4 + $0x48] sm:$0xff]  ;;  %v1434_v44 = vld [vmem:[%s6668_s4 + $0x50] sm:$0xff]  ;;  %v1436_v49 = vld [vmem:[%s6668_s4 + $0x60] sm:$0xff] }
  0x7a   :  { %466 = vperm.xlu1 %4478, %v156_v16   ;;  %461 = vperm.xlu0 %4477, %v155_v17   ;;  %v4500_v45 = vld [vmem:[%s6665_s1 + $0x90] sm:$0xff]   ;;  %v1437_v48 = vld [vmem:[%s6668_s4 + $0x68] sm:$0xff]  ;;  %v1439_v52 = vld [vmem:[%s6668_s4 + $0x78] sm:$0xff] }
  0x7b   :  { %v1438_v53 = vld [vmem:[%s6668_s4 + $0x70] sm:$0xff]  ;;  %v4501_v54 = vld [vmem:[%s6665_s1 + $0x98] sm:$0xff]   ;;  %v1441_v57 = vld [vmem:[%s6668_s4 + $0x88] sm:$0xff] }
  0x7c   :  { %v1440_v58 = vld [vmem:[%s6668_s4 + $0x80] sm:$0xff]  ;;  %v1443_v61 = vld [vmem:[%s6668_s4 + $0x98] sm:$0xff]  ;;  %v1442_v62 = vld [vmem:[%s6668_s4 + $0x90] sm:$0xff] }
  0x7d   :  { %v4502_v63 = vld [vmem:[%s6665_s1 + $0xa0] sm:$0xff]   ;;  %v1445_v3 = vld [vmem:[%s6668_s4 + $0xa8] sm:$0xff]  ;;  %v1447_v7 = vld [vmem:[%s6668_s4 + $0xb8] sm:$0xff] }
  0x7e   :  { %476 = vperm.xlu1 %4478, %v158_v18   ;;  %471 = vperm.xlu0 %4477, %v157_v19   ;;  %v1444_v4 = vld [vmem:[%s6668_s4 + $0xa0] sm:$0xff]  ;;  %v1446_v8 = vld [vmem:[%s6668_s4 + $0xb0] sm:$0xff]  ;;  %v4503_v9 = vld [vmem:[%s6665_s1 + $0xa8] sm:$0xff]  }
  0x7f   :  { %4041 = vmatmul.mubr.msk.bf16.gmra.mrb[60].mxu0 %vm647_vm1, %v4497_v20  ;;  %v1449_v12 = vld [vmem:[%s6668_s4 + $0xc8] sm:$0xff]  ;;  %v1448_v13 = vld [vmem:[%s6668_s4 + $0xc0] sm:$0xff]  ;;  %v1451_v15 = vld [vmem:[%s6668_s4 + $0xd8] sm:$0xff] }
  0x80   :  { %943 = vmatprep.mubr.bf16.mxu0 %v4738_v2  ;;  %v1450_v16 = vld [vmem:[%s6668_s4 + $0xd0] sm:$0xff]  ;;  %v1453_v19 = vld [vmem:[%s6668_s4 + $0xe8] sm:$0xff]  ;;  %v1452_v20 = vld [vmem:[%s6668_s4 + $0xe0] sm:$0xff] }
  0x81   :  { %v5067_v23 = vpop.permute.xlu1 %171  ;;  %v5069_v24 = vpop.permute.xlu0 %161  ;;  %v4504_v18 = vld [vmem:[%s6665_s1 + $0xb0] sm:$0xff]  }
  0x82   :  { %1495 = vperm.xlu1 %4478, %v1425_v21   ;;  %1490 = vperm.xlu0 %4477, %v1424_v22  }
  0x85   :  { %v5081_v28 = vpop.permute.xlu1 %176  ;;  %v5083_v29 = vpop.permute.xlu0 %166 }
  0x86   :  { %1505 = vperm.xlu1 %4478, %v1427_v25   ;;  %1500 = vperm.xlu0 %4477, %v1426_v26   ;;  %v1455_v25 = vld [vmem:[%s6668_s4 + $0xf8] sm:$0xff]  ;;  %v1454_v26 = vld [vmem:[%s6668_s4 + $0xf0] sm:$0xff] }
  0x87   :  { %4042 = vmatmul.mubr.msk.bf16.gmra.mrb[64].mxu0 %vm647_vm1, %v4498_v27  ;;  %v4505_v27 = vld [vmem:[%s6665_s1 + $0xb8] sm:$0xff]  }
  0x88   :  { %953 = vmatprep.mubr.bf16.mxu0 %v4738_v2 }
  0x89   :  { %v5092_v32 = vpop.permute.xlu1 %186  ;;  %v5094_v33 = vpop.permute.xlu0 %181 }
  0x8a   :  { %1515 = vperm.xlu1 %4478, %v1429_v30   ;;  %1510 = vperm.xlu0 %4477, %v1428_v31   ;;  %v1457_v31 = vld [vmem:[%s6668_s4 + $0x108] sm:$0xff] }
  0x8d   :  { %v5106_v37 = vpop.permute.xlu1 %196  ;;  %v5108_v38 = vpop.permute.xlu0 %191 }
  0x8e   :  { %1525 = vperm.xlu1 %4478, %v1431_v34   ;;  %1520 = vperm.xlu0 %4477, %v1430_v35   ;;  %v1456_v34 = vld [vmem:[%s6668_s4 + $0x100] sm:$0xff] }
  0x8f   :  { %4043 = vmatmul.mubr.msk.bf16.gmra.mrb[68].mxu0 %vm647_vm1, %v4499_v36  ;;  %v1459_v36 = vld [vmem:[%s6668_s4 + $0x118] sm:$0xff] }
  0x90   :  { %963 = vmatprep.mubr.bf16.mxu0 %v4738_v2 }
  0x91   :  { %v5117_v41 = vpop.permute.xlu1 %206  ;;  %v5119_v42 = vpop.permute.xlu0 %201 }
  0x92   :  { %1535 = vperm.xlu1 %4478, %v1433_v39   ;;  %1530 = vperm.xlu0 %4477, %v1432_v40   ;;  %v1458_v39 = vld [vmem:[%s6668_s4 + $0x110] sm:$0xff]  ;;  %v4506_v40 = vld [vmem:[%s6665_s1 + $0xc0] sm:$0xff]  }
  0x95   :  { %v5131_v46 = vpop.permute.xlu1 %216  ;;  %v5133_v47 = vpop.permute.xlu0 %211 }
  0x96   :  { %1545 = vperm.xlu1 %4478, %v1435_v43   ;;  %1540 = vperm.xlu0 %4477, %v1434_v44  }
  0x97   :  { %4044 = vmatmul.mubr.msk.bf16.gmra.mrb[72].mxu0 %vm647_vm1, %v4500_v45  ;;  %v1461_v45 = vld [vmem:[%s6668_s4 + $0x128] sm:$0xff] }
  0x98   :  { %973 = vmatprep.mubr.bf16.mxu0 %v4738_v2 }
  0x99   :  { %v5142_v50 = vpop.permute.xlu1 %226  ;;  %v5144_v51 = vpop.permute.xlu0 %221 }
  0x9a   :  { %1555 = vperm.xlu1 %4478, %v1437_v48   ;;  %1550 = vperm.xlu0 %4477, %v1436_v49   ;;  %v1460_v48 = vld [vmem:[%s6668_s4 + $0x120] sm:$0xff] }
  0x9d   :  { %v5156_v55 = vpop.permute.xlu1 %236  ;;  %v5158_v56 = vpop.permute.xlu0 %231 }
  0x9e   :  { %1565 = vperm.xlu1 %4478, %v1439_v52   ;;  %1560 = vperm.xlu0 %4477, %v1438_v53   ;;  %v1463_v52 = vld [vmem:[%s6668_s4 + $0x138] sm:$0xff]  ;;  %v1462_v53 = vld [vmem:[%s6668_s4 + $0x130] sm:$0xff] }
  0x9f   :  { %4045 = vmatmul.mubr.msk.bf16.gmra.mrb[76].mxu0 %vm647_vm1, %v4501_v54 }
  0xa0   :  { %983 = vmatprep.mubr.bf16.mxu0 %v4738_v2 }
  0xa1   :  { %v5167_v59 = vpop.permute.xlu1 %246  ;;  %v5169_v60 = vpop.permute.xlu0 %241 }
  0xa2   :  { %1575 = vperm.xlu1 %4478, %v1441_v57   ;;  %1570 = vperm.xlu0 %4477, %v1440_v58   ;;  %v4507_v57 = vld [vmem:[%s6665_s1 + $0xc8] sm:$0xff]  }
  0xa3   :  { %v1465_v58 = vld [vmem:[%s6668_s4 + $0x148] sm:$0xff] }
  0xa5   :  { %v5181_v0 = vpop.permute.xlu1 %256  ;;  %v5183_v1 = vpop.permute.xlu0 %251 }
  0xa6   :  { %1585 = vperm.xlu1 %4478, %v1443_v61   ;;  %1580 = vperm.xlu0 %4477, %v1442_v62   ;;  %v1464_v61 = vld [vmem:[%s6668_s4 + $0x140] sm:$0xff] }
  0xa7   :  { %4046 = vmatmul.mubr.msk.bf16.gmra.mrb[80].mxu0 %vm647_vm1, %v4502_v63 }
  0xa8   :  { %993 = vmatprep.mubr.bf16.mxu0 %v4738_v2 }
  0xa9   :  { %v5192_v5 = vpop.permute.xlu1 %266  ;;  %v5194_v6 = vpop.permute.xlu0 %261 }
  0xaa   :  { %1595 = vperm.xlu1 %4478, %v1445_v3   ;;  %1590 = vperm.xlu0 %4477, %v1444_v4   ;;  %v1467_v3 = vld [vmem:[%s6668_s4 + $0x158] sm:$0xff]  ;;  %v1466_v4 = vld [vmem:[%s6668_s4 + $0x150] sm:$0xff] }
  0xad   :  { %v5206_v10 = vpop.permute.xlu1 %276  ;;  %v5208_v11 = vpop.permute.xlu0 %271 }
  0xae   :  { %1605 = vperm.xlu1 %4478, %v1447_v7   ;;  %1600 = vperm.xlu0 %4477, %v1446_v8   ;;  %v4508_v7 = vld [vmem:[%s6665_s1 + $0xd0] sm:$0xff]  }
  0xaf   :  { %4047 = vmatmul.mubr.msk.bf16.gmra.mrb[84].mxu0 %vm647_vm1, %v4503_v9  ;;  %v1469_v9 = vld [vmem:[%s6668_s4 + $0x168] sm:$0xff] }
  0xb0   :  { %1003 = vmatprep.mubr.bf16.mxu0 %v4738_v2 }
  0xb1   :  { %v5218_v14 = vpop.permute.xlu1 %286  ;;  %v5226_v17 = vpop.permute.xlu0 %281 }
  0xb2   :  { %1615 = vperm.xlu1 %4478, %v1449_v12   ;;  %1610 = vperm.xlu0 %4477, %v1448_v13   ;;  %v1468_v12 = vld [vmem:[%s6668_s4 + $0x160] sm:$0xff] }
  0xb5   :  { %v5238_v21 = vpop.permute.xlu1 %296  ;;  %v5241_v22 = vpop.permute.xlu0 %291 }
  0xb6   :  { %1625 = vperm.xlu1 %4478, %v1451_v15   ;;  %1620 = vperm.xlu0 %4477, %v1450_v16   ;;  %v1471_v16 = vld [vmem:[%s6668_s4 + $0x178] sm:$0xff] }
  0xb7   :  { %4048 = vmatmul.mubr.msk.bf16.gmra.mrb[88].mxu0 %vm647_vm1, %v4504_v18  ;;  %v1470_v18 = vld [vmem:[%s6668_s4 + $0x170] sm:$0xff] }
  0xb8   :  { %1013 = vmatprep.mubr.bf16.mxu0 %v4738_v2 }
  0xb9   :  { %v5252_v30 = vpop.permute.xlu1 %306  ;;  %v5260_v35 = vpop.permute.xlu0 %301 }
  0xba   :  { %1635 = vperm.xlu1 %4478, %v1453_v19   ;;  %1630 = vperm.xlu0 %4477, %v1452_v20  }
  0xbd   :  { %v5273_v43 = vpop.permute.xlu1 %316  ;;  %v5275_v44 = vpop.permute.xlu0 %311 }
  0xbe   :  { %1645 = vperm.xlu1 %4478, %v1455_v25   ;;  %1640 = vperm.xlu0 %4477, %v1454_v26   ;;  %v4509_v25 = vld [vmem:[%s6665_s1 + $0xd8] sm:$0xff]  }
  0xbf   :  { %4049 = vmatmul.mubr.msk.bf16.gmra.mrb[92].mxu0 %vm647_vm1, %v4505_v27 }
  0xc0   :  { %1023 = vmatprep.mubr.bf16.mxu0 %v4738_v2 }
  0xc1   :  { %v5285_v49 = vpop.permute.xlu1 %326  ;;  %v5293_v54 = vpop.permute.xlu0 %321 }
  0xc2   :  { %1655 = vperm.xlu1 %4478, %v1457_v31   ;;  %1650 = vperm.xlu0 %4477, %v1456_v34  }
  0xc5   :  { %v5305_v62 = vpop.permute.xlu1 %336  ;;  %v5308_v63 = vpop.permute.xlu0 %331 }
  0xc6   :  { %1665 = vperm.xlu1 %4478, %v1459_v36   ;;  %1660 = vperm.xlu0 %4477, %v1458_v39  }
  0xc7   :  { %4050 = vmatmul.mubr.msk.bf16.gmra.mrb[96].mxu0 %vm647_vm1, %v4506_v40 }
  0xc8   :  { %1033 = vmatprep.mubr.bf16.mxu0 %v4738_v2 }
  0xc9   :  { %v5319_v8 = vpop.permute.xlu1 %346  ;;  %v5327_v13 = vpop.permute.xlu0 %341 }
  0xca   :  { %1675 = vperm.xlu1 %4478, %v1461_v45   ;;  %1670 = vperm.xlu0 %4477, %v1460_v48   ;;  %v1473_v45 = vld [vmem:[%s6668_s4 + $0x188] sm:$0xff]  ;;  %v1472_v48 = vld [vmem:[%s6668_s4 + $0x180] sm:$0xff] }
  0xcd   :  { %v5341_v26 = vpop.permute.xlu1 %356  ;;  %v5344_v34 = vpop.permute.xlu0 %351 }
  0xce   :  { %1685 = vperm.xlu1 %4478, %v1463_v52   ;;  %1680 = vperm.xlu0 %4477, %v1462_v53  }
  0xcf   :  { %4051 = vmatmul.mubr.msk.bf16.gmra.mrb[100].mxu0 %vm647_vm1, %v4507_v57 }
  0xd0   :  { %1043 = vmatprep.mubr.bf16.mxu0 %v4738_v2 }
  0xd2   :  { %1695 = vperm.xlu1 %4478, %v1465_v58   ;;  %1690 = vperm.xlu0 %4477, %v1464_v61  }
  0xd6   :  { %1705 = vperm.xlu1 %4478, %v1467_v3   ;;  %1700 = vperm.xlu0 %4477, %v1466_v4   ;;  %v4510_v4 = vld [vmem:[%s6665_s1 + $0xe0] sm:$0xff]  }
  0xd7   :  { %4052 = vmatmul.mubr.msk.bf16.gmra.mrb[104].mxu0 %vm647_vm1, %v4508_v7  ;;  %v5361_v7 = vpop.permute.xlu0 %361 }
  0xd8   :  { %1053 = vmatprep.mubr.bf16.mxu0 %v4738_v2 }
  0xda   :  { %1715 = vperm.xlu1 %4478, %v1469_v9   ;;  %1710 = vperm.xlu0 %4477, %v1468_v12   ;;  %v785_v15 = vpop.f32.mrb[0].mxu0 }
  0xdb   :  { %v786_v19 = vadd.f32 %v785_v15, %v5069_v24  ;;  %v787_v20 = vpop.f32.mrb[1].mxu0  ;;  %v1475_v15 = vld [vmem:[%s6668_s4 + $0x198] sm:$0xff] }
  0xdc   :  { %v788_v27 = vadd.f32 %v787_v20, %v5069_v24  ;;  %v789_v31 = vpop.f32.mrb[2].mxu0 }
  0xdd   :  { %v790_v36 = vadd.f32 %v789_v31, %v5083_v29  ;;  %v791_v39 = vpop.f32.mrb[3].mxu0  ;;  %v1104_v52 = vmax.f32 %v786_v19, 0.0 }
  0xde   :  { %1725 = vperm.xlu1 %4478, %v1471_v16   ;;  %1720 = vperm.xlu0 %4477, %v1470_v18   ;;  %v792_v40 = vadd.f32 %v791_v39, %v5083_v29  ;;  %v1105_v53 = vmax.f32 %v788_v27, 0.0  ;;  %v5356_v29 = vpop.permute.xlu1 %366  ;;  %v1474_v16 = vld [vmem:[%s6668_s4 + $0x190] sm:$0xff] }
  0xdf   :  { %v1106_v24 = vmax.f32 %v790_v36, 0.0  ;;  %4053 = vmatmul.mubr.msk.bf16.gmra.mrb[108].mxu0 %vm647_vm1, %v4509_v25  ;;  %v4519_v18 = vld [vmem:[%s6667_s3 + $0x264] ss:$16 sps:$4 sm:$0xff]  }
  0xe0   :  { %v1107_v57 = vmax.f32 %v792_v40, 0.0  ;;  %1063 = vmatprep.mubr.bf16.mxu0 %v4738_v2  ;;  %v1476_v40 = vld [vmem:[%s6668_s4 + $0x1a0] sm:$0xff]  ;;  %2670 = vmatprep.mubr.bf16.mxu1 %v4519_v18 }
  0xe1   :  { %v1360_v58 = vpack.c.bf16 %v1106_v24, %v1104_v52 }
  0xe2   :  { %1735 = vperm.xlu1 %4478, %v1473_v45   ;;  %1730 = vperm.xlu0 %4477, %v1472_v48   ;;  %v1361_v61 = vpack.c.bf16 %v1107_v57, %v1105_v53  ;;  %v795_v3 = vpop.f32.mrb[4].mxu0  ;;  %v5383_v45 = vpop.permute.xlu1 %376 }
  0xe3   :  { %v796_v9 = vadd.f32 %v795_v3, %v5067_v23  ;;  %v797_v12 = vpop.f32.mrb[5].mxu0  ;;  %v1479_v3 = vld [vmem:[%s6668_s4 + $0x1b8] sm:$0xff] }
  0xe4   :  { %v798_v19 = vadd.f32 %v797_v12, %v5067_v23  ;;  %v799_v20 = vpop.f32.mrb[6].mxu0  ;;  %2448 = vmatprep.subr.bf16.mxu0 %v1361_v61  ;;  %4186 = vmatprep.subr.bf16.mxu1 %v1361_v61  ;;  %v1477_v23 = vld [vmem:[%s6668_s4 + $0x1a8] sm:$0xff] }
  0xe5   :  { %v800_v25 = vadd.f32 %v799_v20, %v5081_v28  ;;  %v801_v27 = vpop.f32.mrb[7].mxu0  ;;  %2449 = vmatpush1.bf16.msra.mxu0 %v1360_v58  ;;  %4202 = vmatpush1.bf16.msra.mxu1 %v1360_v58  ;;  %v1108_v36 = vmax.f32 %v796_v9, 0.0  ;;  %v4511_v9 = vld [vmem:[%s6665_s1 + $0xe8] sm:$0xff]  }
  0xe6   :  { %v802_v31 = vadd.f32 %v801_v27, %v5081_v28  ;;  %1745 = vperm.xlu1 %4478, %v1475_v15   ;;  %1740 = vperm.xlu0 %4477, %v1474_v16   ;;  %v1109_v48 = vmax.f32 %v798_v19, 0.0  ;;  %v5386_v28 = vpop.permute.xlu0 %371  ;;  %v5400_v19 = vpop.permute.xlu1 %386 }
  0xe7   :  { %v1110_v39 = vmax.f32 %v800_v25, 0.0  ;;  %4054 = vmatmul.mubr.msk.bf16.gmra.mrb[112].mxu0 %vm647_vm1, %v4510_v4  ;;  %v1478_v4 = vld [vmem:[%s6668_s4 + $0x1b0] sm:$0xff] }
  0xe8   :  { %v1111_v52 = vmax.f32 %v802_v31, 0.0  ;;  %1073 = vmatprep.mubr.bf16.mxu0 %v4738_v2 }
  0xe9   :  { %v1362_v24 = vpack.c.bf16 %v1110_v39, %v1108_v36  ;;  %v1480_v36 = vld [vmem:[%s6668_s4 + $0x1c0] sm:$0xff] }
  0xea   :  { %v1363_v53 = vpack.c.bf16 %v1111_v52, %v1109_v48  ;;  %1755 = vperm.xlu1 %4478, %v1477_v23   ;;  %1750 = vperm.xlu0 %4477, %v1476_v40   ;;  %v805_v57 = vpop.f32.mrb[8].mxu0  ;;  %v5403_v25 = vpop.permute.xlu0 %381 }
  0xeb   :  { %v806_v58 = vadd.f32 %v805_v57, %v5094_v33  ;;  %v807_v61 = vpop.f32.mrb[9].mxu0  ;;  %v1482_v57 = vld [vmem:[%s6668_s4 + $0x1d0] sm:$0xff] }
  0xec   :  { %v808_v12 = vadd.f32 %v807_v61, %v5094_v33  ;;  %v809_v15 = vpop.f32.mrb[10].mxu0  ;;  %2450 = vmatprep.subr.bf16.mxu0 %v1363_v53  ;;  %4187 = vmatprep.subr.bf16.mxu1 %v1363_v53  ;;  %v1481_v33 = vld [vmem:[%s6668_s4 + $0x1c8] sm:$0xff]  ;;  %v1483_v53 = vld [vmem:[%s6668_s4 + $0x1d8] sm:$0xff]  ;;  %v5423_v61 = vpop.permute.xlu1 %396 }
  0xed   :  { %v810_v16 = vadd.f32 %v809_v15, %v5092_v32  ;;  %v811_v18 = vpop.f32.mrb[11].mxu0  ;;  %2451 = vmatpush1.bf16.msra.mxu0 %v1362_v24  ;;  %4203 = vmatpush1.bf16.msra.mxu1 %v1362_v24  ;;  %v1112_v27 = vmax.f32 %v806_v58, 0.0  ;;  %v4512_v58 = vld [vmem:[%s6665_s1 + $0xf0] sm:$0xff]  }
  0xee   :  { %v812_v20 = vadd.f32 %v811_v18, %v5092_v32  ;;  %1765 = vperm.xlu1 %4478, %v1479_v3   ;;  %1760 = vperm.xlu0 %4477, %v1478_v4   ;;  %v1113_v39 = vmax.f32 %v808_v12, 0.0 }
  0xef   :  { %v1114_v31 = vmax.f32 %v810_v16, 0.0  ;;  %4055 = vmatmul.mubr.msk.bf16.gmra.mrb[116].mxu0 %vm647_vm1, %v4511_v9  ;;  %v5426_v9 = vpop.permute.xlu0 %391 }
  0xf0   :  { %v1115_v23 = vmax.f32 %v812_v20, 0.0  ;;  %1083 = vmatprep.mubr.bf16.mxu0 %v4738_v2 }
  0xf1   :  { %v1364_v32 = vpack.c.bf16 %v1114_v31, %v1112_v27  ;;  %v1484_v27 = vld [vmem:[%s6668_s4 + $0x1e0] sm:$0xff] }
  0xf2   :  { %v1365_v40 = vpack.c.bf16 %v1115_v23, %v1113_v39  ;;  %1775 = vperm.xlu1 %4478, %v1481_v33   ;;  %1770 = vperm.xlu0 %4477, %v1480_v36   ;;  %v815_v48 = vpop.f32.mrb[12].mxu0 }
  0xf3   :  { %v816_v52 = vadd.f32 %v815_v48, %v5108_v38  ;;  %v817_v24 = vpop.f32.mrb[13].mxu0 }
  0xf4   :  { %v818_v3 = vadd.f32 %v817_v24, %v5108_v38  ;;  %v819_v4 = vpop.f32.mrb[14].mxu0  ;;  %2452 = vmatprep.subr.bf16.mxu0 %v1365_v40  ;;  %4188 = vmatprep.subr.bf16.mxu1 %v1365_v40  ;;  %v1485_v38 = vld [vmem:[%s6668_s4 + $0x1e8] sm:$0xff]  ;;  %v4513_v24 = vld [vmem:[%s6665_s1 + $0xf8] sm:$0xff]  }
  0xf5   :  { %v820_v12 = vadd.f32 %v819_v4, %v5106_v37  ;;  %v821_v15 = vpop.f32.mrb[15].mxu0  ;;  %2453 = vmatpush1.bf16.msra.mxu0 %v1364_v32  ;;  %4204 = vmatpush1.bf16.msra.mxu1 %v1364_v32  ;;  %v1116_v18 = vmax.f32 %v816_v52, 0.0  ;;  %v5440_v32 = vpop.permute.xlu0 %401  ;;  %v1487_v52 = vld [vmem:[%s6668_s4 + $0x1f8] sm:$0xff] }
  0xf6   :  { %v822_v16 = vadd.f32 %v821_v15, %v5106_v37  ;;  %1785 = vperm.xlu1 %4478, %v1483_v53   ;;  %1780 = vperm.xlu0 %4477, %v1482_v57   ;;  %v1117_v31 = vmax.f32 %v818_v3, 0.0  ;;  %v5438_v37 = vpop.permute.xlu1 %406 }
  0xf7   :  { %v1118_v20 = vmax.f32 %v820_v12, 0.0  ;;  %4056 = vmatmul.mubr.msk.bf16.gmra.mrb[120].mxu0 %vm647_vm1, %v4512_v58  ;;  %v4516_v58 = vld [vmem:[%s6667_s3 + $0x4] ss:$16 sps:$4 sm:$0xff]  }
  0xf8   :  { %v1119_v33 = vmax.f32 %v822_v16, 0.0  ;;  %1093 = vmatprep.mubr.bf16.mxu0 %v4738_v2  ;;  %v1486_v2 = vld [vmem:[%s6668_s4 + $0x1f0] sm:$0xff] }
  0xf9   :  { %v1366_v36 = vpack.c.bf16 %v1118_v20, %v1116_v18  ;;  %v3282_v18 = vld [vmem:[%s6669_s5] sm:$0xff] }
  0xfa   :  { %v1367_v39 = vpack.c.bf16 %v1119_v33, %v1117_v31  ;;  %1795 = vperm.xlu1 %4478, %v1485_v38   ;;  %1790 = vperm.xlu0 %4477, %v1484_v27   ;;  %v825_v23 = vpop.f32.mrb[16].mxu0  ;;  %v5465_v20 = vpop.permute.xlu1 %416 }
  0xfb   :  { %v826_v40 = vadd.f32 %v825_v23, %v5119_v42  ;;  %v827_v48 = vpop.f32.mrb[17].mxu0 }
  0xfc   :  { %v828_v53 = vadd.f32 %v827_v48, %v5119_v42  ;;  %v829_v57 = vpop.f32.mrb[18].mxu0  ;;  %2454 = vmatprep.subr.bf16.mxu0 %v1367_v39  ;;  %4189 = vmatprep.subr.bf16.mxu1 %v1367_v39  ;;  %v3283_v42 = vld [vmem:[%s6669_s5 + $0x8] sm:$0xff]  ;;  %v3284_v48 = vld [vmem:[%s6669_s5 + $0x10] sm:$0xff] }
  0xfd   :  { %v830_v3 = vadd.f32 %v829_v57, %v5117_v41  ;;  %v831_v4 = vpop.f32.mrb[19].mxu0  ;;  %2455 = vmatpush1.bf16.msra.mxu0 %v1366_v36  ;;  %4205 = vmatpush1.bf16.msra.mxu1 %v1366_v36  ;;  %v1120_v15 = vmax.f32 %v826_v40, 0.0  ;;  %v3285_v40 = vld [vmem:[%s6669_s5 + $0x18] sm:$0xff] }
  0xfe   :  { %v832_v12 = vadd.f32 %v831_v4, %v5117_v41  ;;  %1805 = vperm.xlu1 %4478, %v1487_v52   ;;  %1800 = vperm.xlu0 %4477, %v1486_v2   ;;  %v1121_v38 = vmax.f32 %v828_v53, 0.0  ;;  %v5467_v41 = vpop.permute.xlu0 %411  ;;  %v5478_v57 = vpop.permute.xlu1 %426 }
  0xff   :  { %v1122_v16 = vmax.f32 %v830_v3, 0.0  ;;  %4057 = vmatmul.mubr.msk.bf16.gmra.mrb[124].mxu0 %vm647_vm1, %v4513_v24 }
 0x100   :  { %v1123_v27 = vmax.f32 %v832_v12, 0.0  ;;  %2480 = vmatprep.mubr.bf16.mxu0 %v4516_v58 }
 0x101   :  { %v1368_v31 = vpack.c.bf16 %v1122_v16, %v1120_v15  ;;  %v3286_v15 = vld [vmem:[%s6669_s5 + $0x20] sm:$0xff] }
 0x102   :  { %v1369_v33 = vpack.c.bf16 %v1123_v27, %v1121_v38  ;;  %3353 = vperm.xlu1 %4478, %v3283_v42   ;;  %3348 = vperm.xlu0 %4477, %v3282_v18   ;;  %v835_v36 = vpop.f32.mrb[20].mxu0  ;;  %v5481_v3 = vpop.permute.xlu0 %421 }
 0x103   :  { %v836_v39 = vadd.f32 %v835_v36, %v5133_v47  ;;  %v837_v23 = vpop.f32.mrb[21].mxu0  ;;  %v3288_v36 = vld [vmem:[%s6669_s5 + $0x30] sm:$0xff] }
 0x104   :  { %v838_v52 = vadd.f32 %v837_v23, %v5133_v47  ;;  %v839_v2 = vpop.f32.mrb[22].mxu0  ;;  %2456 = vmatprep.subr.bf16.mxu0 %v1369_v33  ;;  %4190 = vmatprep.subr.bf16.mxu1 %v1369_v33  ;;  %v3287_v47 = vld [vmem:[%s6669_s5 + $0x28] sm:$0xff]  ;;  %v3289_v33 = vld [vmem:[%s6669_s5 + $0x38] sm:$0xff] }
 0x105   :  { %v840_v24 = vadd.f32 %v839_v2, %v5131_v46  ;;  %v841_v53 = vpop.f32.mrb[23].mxu0  ;;  %2457 = vmatpush1.bf16.msra.mxu0 %v1368_v31  ;;  %4206 = vmatpush1.bf16.msra.mxu1 %v1368_v31  ;;  %v1124_v4 = vmax.f32 %v836_v39, 0.0  ;;  %v5496_v39 = vpop.permute.xlu1 %436 }
 0x106   :  { %v842_v58 = vadd.f32 %v841_v53, %v5131_v46  ;;  %3363 = vperm.xlu1 %4478, %v3285_v40   ;;  %3358 = vperm.xlu0 %4477, %v3284_v48   ;;  %v1125_v16 = vmax.f32 %v838_v52, 0.0  ;;  %v5499_v48 = vpop.permute.xlu0 %431 }
 0x107   :  { %v1126_v12 = vmax.f32 %v840_v24, 0.0 }
 0x108   :  { %v1127_v42 = vmax.f32 %v842_v58, 0.0 }
 0x109   :  { %v1370_v18 = vpack.c.bf16 %v1126_v12, %v1124_v4  ;;  %v3290_v4 = vld [vmem:[%s6669_s5 + $0x40] sm:$0xff] }
 0x10a   :  { %v1371_v38 = vpack.c.bf16 %v1127_v42, %v1125_v16  ;;  %3373 = vperm.xlu1 %4478, %v3287_v47   ;;  %3368 = vperm.xlu0 %4477, %v3286_v15   ;;  %v845_v46 = vpop.f32.mrb[24].mxu0  ;;  %v5509_v16 = vpop.permute.xlu1 %446 }
 0x10b   :  { %v846_v27 = vadd.f32 %v845_v46, %v5144_v51  ;;  %v847_v31 = vpop.f32.mrb[25].mxu0 }
 0x10c   :  { %v848_v23 = vadd.f32 %v847_v31, %v5144_v51  ;;  %v849_v40 = vpop.f32.mrb[26].mxu0  ;;  %2458 = vmatprep.subr.bf16.mxu0 %v1371_v38  ;;  %4191 = vmatprep.subr.bf16.mxu1 %v1371_v38  ;;  %v3291_v51 = vld [vmem:[%s6669_s5 + $0x48] sm:$0xff]  ;;  %v3292_v31 = vld [vmem:[%s6669_s5 + $0x50] sm:$0xff] }
 0x10d   :  { %v850_v52 = vadd.f32 %v849_v40, %v5142_v50  ;;  %v851_v2 = vpop.f32.mrb[27].mxu0  ;;  %2459 = vmatpush1.bf16.msra.mxu0 %v1370_v18  ;;  %4207 = vmatpush1.bf16.msra.mxu1 %v1370_v18  ;;  %v1128_v53 = vmax.f32 %v846_v27, 0.0  ;;  %v5511_v18 = vpop.permute.xlu0 %441  ;;  %v3293_v27 = vld [vmem:[%s6669_s5 + $0x58] sm:$0xff] }
 0x10e   :  { %v852_v24 = vadd.f32 %v851_v2, %v5142_v50  ;;  %3383 = vperm.xlu1 %4478, %v3289_v33   ;;  %3378 = vperm.xlu0 %4477, %v3288_v36   ;;  %v1129_v12 = vmax.f32 %v848_v23, 0.0 }
 0x10f   :  { %v1130_v58 = vmax.f32 %v850_v52, 0.0 }
 0x110   :  { %v1131_v47 = vmax.f32 %v852_v24, 0.0 }
 0x111   :  { %v1372_v15 = vpack.c.bf16 %v1130_v58, %v1128_v53  ;;  %v3295_v53 = vld [vmem:[%s6669_s5 + $0x68] sm:$0xff]  ;;  %v5529_v58 = vpop.permute.xlu1 %456 }
 0x112   :  { %v1373_v42 = vpack.c.bf16 %v1131_v47, %v1129_v12  ;;  %3393 = vperm.xlu1 %4478, %v3291_v51   ;;  %3388 = vperm.xlu0 %4477, %v3290_v4   ;;  %v855_v50 = vpop.f32.mrb[28].mxu0  ;;  %v5531_v12 = vpop.permute.xlu0 %451 }
 0x113   :  { %v856_v38 = vadd.f32 %v855_v50, %v5158_v56  ;;  %v857_v46 = vpop.f32.mrb[29].mxu0 }
 0x114   :  { %v858_v33 = vadd.f32 %v857_v46, %v5158_v56  ;;  %v859_v36 = vpop.f32.mrb[30].mxu0  ;;  %2460 = vmatprep.subr.bf16.mxu0 %v1373_v42  ;;  %4192 = vmatprep.subr.bf16.mxu1 %v1373_v42  ;;  %v3294_v56 = vld [vmem:[%s6669_s5 + $0x60] sm:$0xff]  ;;  %v3296_v46 = vld [vmem:[%s6669_s5 + $0x70] sm:$0xff] }
 0x115   :  { %v860_v23 = vadd.f32 %v859_v36, %v5156_v55  ;;  %v861_v40 = vpop.f32.mrb[31].mxu0  ;;  %2461 = vmatpush1.bf16.msra.mxu0 %v1372_v15  ;;  %4208 = vmatpush1.bf16.msra.mxu1 %v1372_v15  ;;  %v1132_v2 = vmax.f32 %v856_v38, 0.0  ;;  %v3297_v38 = vld [vmem:[%s6669_s5 + $0x78] sm:$0xff] }
 0x116   :  { %v862_v52 = vadd.f32 %v861_v40, %v5156_v55  ;;  %3403 = vperm.xlu1 %4478, %v3293_v27   ;;  %3398 = vperm.xlu0 %4477, %v3292_v31   ;;  %v1133_v51 = vmax.f32 %v858_v33, 0.0 }
 0x117   :  { %v1134_v24 = vmax.f32 %v860_v23, 0.0  ;;  %v5542_v23 = vpop.permute.xlu1 %466 }
 0x118   :  { %v1135_v4 = vmax.f32 %v862_v52, 0.0  ;;  %v5545_v52 = vpop.permute.xlu0 %461 }
 0x119   :  { %v1374_v47 = vpack.c.bf16 %v1134_v24, %v1132_v2 }
 0x11a   :  { %v1375_v55 = vpack.c.bf16 %v1135_v4, %v1133_v51  ;;  %3413 = vperm.xlu1 %4478, %v3295_v53   ;;  %3408 = vperm.xlu0 %4477, %v3294_v56   ;;  %v865_v15 = vpop.f32.mrb[32].mxu0  ;;  %v3298_v53 = vld [vmem:[%s6669_s5 + $0x80] sm:$0xff] }
 0x11b   :  { %v866_v42 = vadd.f32 %v865_v15, %v5169_v60  ;;  %v867_v50 = vpop.f32.mrb[33].mxu0 }
 0x11c   :  { %v868_v27 = vadd.f32 %v867_v50, %v5169_v60  ;;  %v869_v31 = vpop.f32.mrb[34].mxu0  ;;  %2462 = vmatprep.subr.bf16.mxu0 %v1375_v55  ;;  %4193 = vmatprep.subr.bf16.mxu1 %v1375_v55  ;;  %v3299_v60 = vld [vmem:[%s6669_s5 + $0x88] sm:$0xff]  ;;  %v3300_v50 = vld [vmem:[%s6669_s5 + $0x90] sm:$0xff] }
 0x11d   :  { %v870_v33 = vadd.f32 %v869_v31, %v5167_v59  ;;  %v871_v36 = vpop.f32.mrb[35].mxu0  ;;  %2463 = vmatpush1.bf16.msra.mxu0 %v1374_v47  ;;  %4209 = vmatpush1.bf16.msra.mxu1 %v1374_v47  ;;  %v1136_v2 = vmax.f32 %v866_v42, 0.0  ;;  %v3301_v42 = vld [vmem:[%s6669_s5 + $0x98] sm:$0xff]  ;;  %v5563_v31 = vpop.permute.xlu0 %471 }
 0x11e   :  { %v872_v40 = vadd.f32 %v871_v36, %v5167_v59  ;;  %3423 = vperm.xlu1 %4478, %v3297_v38   ;;  %3418 = vperm.xlu0 %4477, %v3296_v46   ;;  %v1137_v56 = vmax.f32 %v868_v27, 0.0  ;;  %v5560_v38 = vpop.permute.xlu1 %476 }
 0x11f   :  { %v1138_v24 = vmax.f32 %v870_v33, 0.0 }
 0x120   :  { %v1139_v51 = vmax.f32 %v872_v40, 0.0 }
 0x121   :  { %v1376_v4 = vpack.c.bf16 %v1138_v24, %v1136_v2 }
 0x122   :  { %v1377_v47 = vpack.c.bf16 %v1139_v51, %v1137_v56  ;;  %3433 = vperm.xlu1 %4478, %v3299_v60   ;;  %3428 = vperm.xlu0 %4477, %v3298_v53   ;;  %v875_v59 = vpop.f32.mrb[36].mxu0  ;;  %v3302_v60 = vld [vmem:[%s6669_s5 + $0xa0] sm:$0xff] }
 0x123   :  { %v876_v55 = vadd.f32 %v875_v59, %v5183_v1  ;;  %v877_v15 = vpop.f32.mrb[37].mxu0  ;;  %v5575_v59 = vpop.permute.xlu0 %1490 }
 0x124   :  { %v878_v46 = vadd.f32 %v877_v15, %v5183_v1  ;;  %v879_v27 = vpop.f32.mrb[38].mxu0  ;;  %2464 = vmatprep.subr.bf16.mxu0 %v1377_v47  ;;  %4194 = vmatprep.subr.bf16.mxu1 %v1377_v47  ;;  %v3303_v1 = vld [vmem:[%s6669_s5 + $0xa8] sm:$0xff]  ;;  %v5573_v47 = vpop.permute.xlu1 %1495 }
 0x125   :  { %v880_v33 = vadd.f32 %v879_v27, %v5181_v0  ;;  %v881_v36 = vpop.f32.mrb[39].mxu0  ;;  %2465 = vmatpush1.bf16.msra.mxu0 %v1376_v4  ;;  %4210 = vmatpush1.bf16.msra.mxu1 %v1376_v4  ;;  %v1140_v2 = vmax.f32 %v876_v55, 0.0 }
 0x126   :  { %v882_v40 = vadd.f32 %v881_v36, %v5181_v0  ;;  %3443 = vperm.xlu1 %4478, %v3301_v42   ;;  %3438 = vperm.xlu0 %4477, %v3300_v50   ;;  %v1141_v53 = vmax.f32 %v878_v46, 0.0  ;;  %v3305_v42 = vld [vmem:[%s6669_s5 + $0xb8] sm:$0xff]  ;;  %v3304_v50 = vld [vmem:[%s6669_s5 + $0xb0] sm:$0xff] }
 0x127   :  { %v1142_v24 = vmax.f32 %v880_v33, 0.0 }
 0x128   :  { %v1143_v56 = vmax.f32 %v882_v40, 0.0 }
 0x129   :  { %v1378_v51 = vpack.c.bf16 %v1142_v24, %v1140_v2 }
 0x12a   :  { %v1379_v4 = vpack.c.bf16 %v1143_v56, %v1141_v53  ;;  %3453 = vperm.xlu1 %4478, %v3303_v1   ;;  %3448 = vperm.xlu0 %4477, %v3302_v60   ;;  %v885_v0 = vpop.f32.mrb[40].mxu0  ;;  %v3307_v1 = vld [vmem:[%s6669_s5 + $0xc8] sm:$0xff]  ;;  %v5593_v60 = vpop.permute.xlu1 %1505 }
 0x12b   :  { %v886_v55 = vadd.f32 %v885_v0, %v5194_v6  ;;  %v887_v15 = vpop.f32.mrb[41].mxu0 }
 0x12c   :  { %v888_v46 = vadd.f32 %v887_v15, %v5194_v6  ;;  %v889_v27 = vpop.f32.mrb[42].mxu0  ;;  %2466 = vmatprep.subr.bf16.mxu0 %v1379_v4  ;;  %4195 = vmatprep.subr.bf16.mxu1 %v1379_v4  ;;  %v3306_v6 = vld [vmem:[%s6669_s5 + $0xc0] sm:$0xff]  ;;  %v5595_v4 = vpop.permute.xlu0 %1500 }
 0x12d   :  { %v890_v33 = vadd.f32 %v889_v27, %v5192_v5  ;;  %v891_v36 = vpop.f32.mrb[43].mxu0  ;;  %2467 = vmatpush1.bf16.msra.mxu0 %v1378_v51  ;;  %4211 = vmatpush1.bf16.msra.mxu1 %v1378_v51  ;;  %v1144_v2 = vmax.f32 %v886_v55, 0.0 }
 0x12e   :  { %v892_v40 = vadd.f32 %v891_v36, %v5192_v5  ;;  %3463 = vperm.xlu1 %4478, %v3305_v42   ;;  %3458 = vperm.xlu0 %4477, %v3304_v50   ;;  %v1145_v53 = vmax.f32 %v888_v46, 0.0  ;;  %v3309_v42 = vld [vmem:[%s6669_s5 + $0xd8] sm:$0xff]  ;;  %v3308_v50 = vld [vmem:[%s6669_s5 + $0xd0] sm:$0xff] }
 0x12f   :  { %v1146_v24 = vmax.f32 %v890_v33, 0.0 }
 0x130   :  { %v1147_v56 = vmax.f32 %v892_v40, 0.0  ;;  %v5606_v40 = vpop.permute.xlu1 %1515 }
 0x131   :  { %v1380_v51 = vpack.c.bf16 %v1146_v24, %v1144_v2  ;;  %v5609_v24 = vpop.permute.xlu0 %1510 }
 0x132   :  { %v1381_v5 = vpack.c.bf16 %v1147_v56, %v1145_v53  ;;  %3473 = vperm.xlu1 %4478, %v3307_v1   ;;  %3468 = vperm.xlu0 %4477, %v3306_v6   ;;  %v895_v0 = vpop.f32.mrb[44].mxu0  ;;  %v3310_v53 = vld [vmem:[%s6669_s5 + $0xe0] sm:$0xff] }
 0x133   :  { %v896_v55 = vadd.f32 %v895_v0, %v5208_v11  ;;  %v897_v15 = vpop.f32.mrb[45].mxu0 }
 0x134   :  { %v898_v46 = vadd.f32 %v897_v15, %v5208_v11  ;;  %v899_v27 = vpop.f32.mrb[46].mxu0  ;;  %2468 = vmatprep.subr.bf16.mxu0 %v1381_v5  ;;  %4196 = vmatprep.subr.bf16.mxu1 %v1381_v5  ;;  %v3311_v11 = vld [vmem:[%s6669_s5 + $0xe8] sm:$0xff] }
 0x135   :  { %v900_v33 = vadd.f32 %v899_v27, %v5206_v10  ;;  %v901_v36 = vpop.f32.mrb[47].mxu0  ;;  %2469 = vmatpush1.bf16.msra.mxu0 %v1380_v51  ;;  %4212 = vmatpush1.bf16.msra.mxu1 %v1380_v51  ;;  %v1148_v1 = vmax.f32 %v896_v55, 0.0  ;;  %v3313_v55 = vld [vmem:[%s6669_s5 + $0xf8] sm:$0xff]  ;;  %v5624_v27 = vpop.permute.xlu1 %1525 }
 0x136   :  { %v902_v2 = vadd.f32 %v901_v36, %v5206_v10  ;;  %3483 = vperm.xlu1 %4478, %v3309_v42   ;;  %3478 = vperm.xlu0 %4477, %v3308_v50   ;;  %v1149_v56 = vmax.f32 %v898_v46, 0.0  ;;  %v3312_v50 = vld [vmem:[%s6669_s5 + $0xf0] sm:$0xff]  ;;  %v5627_v36 = vpop.permute.xlu0 %1520 }
 0x137   :  { %v1150_v6 = vmax.f32 %v900_v33, 0.0 }
 0x138   :  { %v1151_v51 = vmax.f32 %v902_v2, 0.0 }
 0x139   :  { %v1382_v5 = vpack.c.bf16 %v1150_v6, %v1148_v1 }
 0x13a   :  { %v1383_v0 = vpack.c.bf16 %v1151_v51, %v1149_v56  ;;  %3493 = vperm.xlu1 %4478, %v3311_v11   ;;  %3488 = vperm.xlu0 %4477, %v3310_v53   ;;  %v905_v10 = vpop.f32.mrb[48].mxu0  ;;  %v3314_v56 = vld [vmem:[%s6669_s5 + $0x100] sm:$0xff] }
 0x13b   :  { %v906_v15 = vadd.f32 %v905_v10, %v5226_v17  ;;  %v907_v42 = vpop.f32.mrb[49].mxu0 }
 0x13c   :  { %v908_v46 = vadd.f32 %v907_v42, %v5226_v17  ;;  %v909_v33 = vpop.f32.mrb[50].mxu0  ;;  %2470 = vmatprep.subr.bf16.mxu0 %v1383_v0  ;;  %4197 = vmatprep.subr.bf16.mxu1 %v1383_v0  ;;  %v3315_v17 = vld [vmem:[%s6669_s5 + $0x108] sm:$0xff]  ;;  %v5637_v42 = vpop.permute.xlu1 %1535 }
 0x13d   :  { %v910_v2 = vadd.f32 %v909_v33, %v5218_v14  ;;  %v911_v1 = vpop.f32.mrb[51].mxu0  ;;  %2471 = vmatpush1.bf16.msra.mxu0 %v1382_v5  ;;  %4213 = vmatpush1.bf16.msra.mxu1 %v1382_v5  ;;  %v1152_v11 = vmax.f32 %v906_v15, 0.0  ;;  %v3317_v33 = vld [vmem:[%s6669_s5 + $0x118] sm:$0xff] }
 0x13e   :  { %v912_v6 = vadd.f32 %v911_v1, %v5218_v14  ;;  %3503 = vperm.xlu1 %4478, %v3313_v55   ;;  %3498 = vperm.xlu0 %4477, %v3312_v50   ;;  %v1153_v51 = vmax.f32 %v908_v46, 0.0  ;;  %v5639_v55 = vpop.permute.xlu0 %1530  ;;  %v3316_v46 = vld [vmem:[%s6669_s5 + $0x110] sm:$0xff] }
 0x13f   :  { %v1154_v53 = vmax.f32 %v910_v2, 0.0 }
 0x140   :  { %v1155_v0 = vmax.f32 %v912_v6, 0.0 }
 0x141   :  { %v1384_v10 = vpack.c.bf16 %v1154_v53, %v1152_v11 }
 0x142   :  { %v1385_v5 = vpack.c.bf16 %v1155_v0, %v1153_v51  ;;  %3513 = vperm.xlu1 %4478, %v3315_v17   ;;  %3508 = vperm.xlu0 %4477, %v3314_v56   ;;  %v915_v14 = vpop.f32.mrb[52].mxu0  ;;  %v3319_v51 = vld [vmem:[%s6669_s5 + $0x128] sm:$0xff]  ;;  %v5657_v0 = vpop.permute.xlu1 %1545 }
 0x143   :  { %v916_v15 = vadd.f32 %v915_v14, %v5241_v22  ;;  %v917_v50 = vpop.f32.mrb[53].mxu0 }
 0x144   :  { %v918_v2 = vadd.f32 %v917_v50, %v5241_v22  ;;  %v919_v1 = vpop.f32.mrb[54].mxu0  ;;  %2472 = vmatprep.subr.bf16.mxu0 %v1385_v5  ;;  %4198 = vmatprep.subr.bf16.mxu1 %v1385_v5  ;;  %v3318_v22 = vld [vmem:[%s6669_s5 + $0x120] sm:$0xff]  ;;  %v5659_v50 = vpop.permute.xlu0 %1540 }
 0x145   :  { %v920_v6 = vadd.f32 %v919_v1, %v5238_v21  ;;  %v921_v11 = vpop.f32.mrb[55].mxu0  ;;  %2473 = vmatpush1.bf16.msra.mxu0 %v1384_v10  ;;  %4214 = vmatpush1.bf16.msra.mxu1 %v1384_v10  ;;  %v1156_v17 = vmax.f32 %v916_v15, 0.0  ;;  %v3321_v1 = vld [vmem:[%s6669_s5 + $0x138] sm:$0xff] }
 0x146   :  { %v922_v53 = vadd.f32 %v921_v11, %v5238_v21  ;;  %3523 = vperm.xlu1 %4478, %v3317_v33   ;;  %3518 = vperm.xlu0 %4477, %v3316_v46   ;;  %v1157_v5 = vmax.f32 %v918_v2, 0.0 }
 0x147   :  { %v1158_v56 = vmax.f32 %v920_v6, 0.0  ;;  %v3320_v6 = vld [vmem:[%s6669_s5 + $0x130] sm:$0xff] }
 0x148   :  { %v1159_v14 = vmax.f32 %v922_v53, 0.0 }
 0x149   :  { %v1386_v10 = vpack.c.bf16 %v1158_v56, %v1156_v17  ;;  %v5670_v56 = vpop.permute.xlu1 %1555 }
 0x14a   :  { %v1387_v21 = vpack.c.bf16 %v1159_v14, %v1157_v5  ;;  %3533 = vperm.xlu1 %4478, %v3319_v51   ;;  %3528 = vperm.xlu0 %4477, %v3318_v22   ;;  %v925_v15 = vpop.f32.mrb[56].mxu0  ;;  %v5673_v22 = vpop.permute.xlu0 %1550 }
 0x14b   :  { %v926_v33 = vadd.f32 %v925_v15, %v5260_v35  ;;  %v927_v46 = vpop.f32.mrb[57].mxu0 }
 0x14c   :  { %v928_v2 = vadd.f32 %v927_v46, %v5260_v35  ;;  %v929_v11 = vpop.f32.mrb[58].mxu0  ;;  %2474 = vmatprep.subr.bf16.mxu0 %v1387_v21  ;;  %4199 = vmatprep.subr.bf16.mxu1 %v1387_v21  ;;  %v3323_v35 = vld [vmem:[%s6669_s5 + $0x148] sm:$0xff]  ;;  %v3322_v21 = vld [vmem:[%s6669_s5 + $0x140] sm:$0xff] }
 0x14d   :  { %v930_v53 = vadd.f32 %v929_v11, %v5252_v30  ;;  %v931_v17 = vpop.f32.mrb[59].mxu0  ;;  %2475 = vmatpush1.bf16.msra.mxu0 %v1386_v10  ;;  %4215 = vmatpush1.bf16.msra.mxu1 %v1386_v10  ;;  %v1160_v5 = vmax.f32 %v926_v33, 0.0  ;;  %v3325_v33 = vld [vmem:[%s6669_s5 + $0x158] sm:$0xff] }
 0x14e   :  { %v932_v51 = vadd.f32 %v931_v17, %v5252_v30  ;;  %3543 = vperm.xlu1 %4478, %v3321_v1   ;;  %3538 = vperm.xlu0 %4477, %v3320_v6   ;;  %v1161_v15 = vmax.f32 %v928_v2, 0.0  ;;  %v5688_v17 = vpop.permute.xlu1 %1565 }
 0x14f   :  { %v1162_v14 = vmax.f32 %v930_v53, 0.0  ;;  %v3324_v53 = vld [vmem:[%s6669_s5 + $0x150] sm:$0xff]  ;;  %6722 = vst [vmem:[#allocation6_spill] sm:$0xff] %v5688_v17 }
 0x150   :  { %v1163_v10 = vmax.f32 %v932_v51, 0.0 }
 0x151   :  { %v1388_v46 = vpack.c.bf16 %v1162_v14, %v1160_v5  ;;  %v5691_v5 = vpop.permute.xlu0 %1560 }
 0x152   :  { %v1389_v11 = vpack.c.bf16 %v1163_v10, %v1161_v15  ;;  %3553 = vperm.xlu1 %4478, %v3323_v35   ;;  %3548 = vperm.xlu0 %4477, %v3322_v21   ;;  %v935_v30 = vpop.f32.mrb[60].mxu0  ;;  %6723 = vst [vmem:[#allocation7_spill] sm:$0xff] %v5691_v5  ;;  %v5701_v17 = vpop.permute.xlu1 %1575 }
 0x153   :  { %v936_v1 = vadd.f32 %v935_v30, %v5275_v44  ;;  %v937_v6 = vpop.f32.mrb[61].mxu0  ;;  %6724 = vst [vmem:[#allocation8_spill] sm:$0xff] %v5701_v17 }
 0x154   :  { %v938_v2 = vadd.f32 %v937_v6, %v5275_v44  ;;  %v939_v51 = vpop.f32.mrb[62].mxu0  ;;  %2476 = vmatprep.subr.bf16.mxu0 %v1389_v11  ;;  %4200 = vmatprep.subr.bf16.mxu1 %v1389_v11  ;;  %v3327_v44 = vld [vmem:[%s6669_s5 + $0x168] sm:$0xff]  ;;  %v3326_v11 = vld [vmem:[%s6669_s5 + $0x160] sm:$0xff] }
 0x155   :  { %v940_v14 = vadd.f32 %v939_v51, %v5273_v43  ;;  %v941_v35 = vpop.f32.mrb[63].mxu0  ;;  %2477 = vmatpush1.bf16.msra.mxu0 %v1388_v46  ;;  %4216 = vmatpush1.bf16.msra.mxu1 %v1388_v46  ;;  %v1164_v15 = vmax.f32 %v936_v1, 0.0 }
 0x156   :  { %v942_v21 = vadd.f32 %v941_v35, %v5273_v43  ;;  %3563 = vperm.xlu1 %4478, %v3325_v33   ;;  %3558 = vperm.xlu0 %4477, %v3324_v53   ;;  %v1165_v30 = vmax.f32 %v938_v2, 0.0  ;;  %v5703_v33 = vpop.permute.xlu0 %1570  ;;  %v3328_v2 = vld [vmem:[%s6669_s5 + $0x170] sm:$0xff] }
 0x157   :  { %v1166_v10 = vmax.f32 %v940_v14, 0.0  ;;  %6725 = vst [vmem:[#allocation9_spill] sm:$0xff] %v5703_v33  ;;  %v3329_v14 = vld [vmem:[%s6669_s5 + $0x178] sm:$0xff] }
 0x158   :  { %v1167_v6 = vmax.f32 %v942_v21, 0.0 }
 0x159   :  { %v1390_v51 = vpack.c.bf16 %v1166_v10, %v1164_v15  ;;  %v4514_v15 = vld [vmem:[%s6667_s3] ss:$16 sps:$4 sm:$0xff]  }
 0x15a   :  { %v1391_v46 = vpack.c.bf16 %v1167_v6, %v1165_v30  ;;  %3573 = vperm.xlu1 %4478, %v3327_v44   ;;  %3568 = vperm.xlu0 %4477, %v3326_v11   ;;  %v945_v43 = vpop.f32.mrb[64].mxu0  ;;  %v4517_v10 = vld [vmem:[%s6667_s3 + $0x260] ss:$16 sps:$4 sm:$0xff]   ;;  %v4531_v30 = vld [vmem:[%s6667_s3 + $0x284] ss:$16 sps:$4 sm:$0xff]   ;;  %v5735_v5 = vpop.permute.xlu0 %1580 }
 0x15b   :  { %v946_v1 = vadd.f32 %v945_v43, %v5293_v54  ;;  %v947_v53 = vpop.f32.mrb[65].mxu0  ;;  %6727 = vst [vmem:[#allocation11_spill] sm:$0xff] %v5735_v5 }
 0x15c   :  { %v948_v35 = vadd.f32 %v947_v53, %v5293_v54  ;;  %v949_v21 = vpop.f32.mrb[66].mxu0  ;;  %2478 = vmatprep.subr.bf16.mxu0 %v1391_v46  ;;  %4201 = vmatprep.subr.bf16.mxu1 %v1391_v46  ;;  %v4520_v54 = vld [vmem:[%s6667_s3 + $0x24] ss:$16 sps:$4 sm:$0xff]   ;;  %v3331_v53 = vld [vmem:[%s6669_s5 + $0x188] sm:$0xff] }
 0x15d   :  { %v950_v44 = vadd.f32 %v949_v21, %v5285_v49  ;;  %v951_v11 = vpop.f32.mrb[67].mxu0  ;;  %2479 = vmatpush1.bf16.msra.mxu0 %v1390_v51  ;;  %4217 = vmatpush1.bf16.msra.mxu1 %v1390_v51  ;;  %v1168_v46 = vmax.f32 %v946_v1, 0.0  ;;  %v3330_v51 = vld [vmem:[%s6669_s5 + $0x180] sm:$0xff]  ;;  %v5733_v21 = vpop.permute.xlu1 %1585 }
 0x15e   :  { %v952_v6 = vadd.f32 %v951_v11, %v5285_v49  ;;  %3583 = vperm.xlu1 %4478, %v3329_v14   ;;  %3578 = vperm.xlu0 %4477, %v3328_v2   ;;  %6726 = vst [vmem:[#allocation10_spill] sm:$0xff] %v5733_v21  ;;  %v1169_v17 = vmax.f32 %v948_v35, 0.0  ;;  %v3333_v11 = vld [vmem:[%s6669_s5 + $0x198] sm:$0xff]  ;;  %v3332_v35 = vld [vmem:[%s6669_s5 + $0x190] sm:$0xff] }
 0x15f   :  { %v1170_v43 = vmax.f32 %v950_v44, 0.0 }
 0x160   :  { %v1171_v33 = vmax.f32 %v952_v6, 0.0  ;;  %2481 = vmatmul.mubr.bf16.vlgmr.msra.gmra.mrb[128].mxu0 %v4514_v15  ;;  %2671 = vmatmul.mubr.bf16.vlgmr.msra.gmra.mrb[0].mxu1 %v4517_v10  ;;  %v4537_v6 = vld [vmem:[%s6667_s3 + $0x2a4] ss:$16 sps:$4 sm:$0xff]  }
 0x161   :  { %v1392_v49 = vpack.c.bf16 %v1170_v43, %v1168_v46  ;;  %2490 = vmatprep.mubr.bf16.mxu0 %v4520_v54  ;;  %2680 = vmatprep.mubr.bf16.mxu1 %v4531_v30  ;;  %v4523_v30 = vld [vmem:[%s6667_s3 + $0x44] ss:$16 sps:$4 sm:$0xff]   ;;  %v5758_v46 = vpop.permute.xlu1 %1595 }
 0x162   :  { %v1393_v1 = vpack.c.bf16 %v1171_v33, %v1169_v17  ;;  %3593 = vperm.xlu1 %4478, %v3331_v53   ;;  %3588 = vperm.xlu0 %4477, %v3330_v51   ;;  %v955_v14 = vpop.f32.mrb[68].mxu0  ;;  %v4522_v17 = vld [vmem:[%s6667_s3 + $0x20] ss:$16 sps:$4 sm:$0xff]   ;;  %6728 = vst [vmem:[#allocation12_spill] sm:$0xff] %v5758_v46  ;;  %v5760_v53 = vpop.permute.xlu0 %1590 }
 0x163   :  { %v956_v2 = vadd.f32 %v955_v14, %v5308_v63  ;;  %v957_v44 = vpop.f32.mrb[69].mxu0  ;;  %v4534_v33 = vld [vmem:[%s6667_s3 + $0x280] ss:$16 sps:$4 sm:$0xff]   ;;  %6729 = vst [vmem:[#allocation13_spill] sm:$0xff] %v5760_v53  ;;  %v4675_v53 = vld [vmem:[%s6667_s3 + $0x2a8] ss:$16 sps:$4 sm:$0xff]  }
 0x164   :  { %v959_v15 = vpop.f32.mrb[70].mxu0  ;;  %2801 = vmatprep.subr.bf16.mxu1 %v1393_v1  ;;  %v958_v10 = vadd.f32 %v957_v44, %v5308_v63  ;;  %v3334_v14 = vld [vmem:[%s6669_s5 + $0x1a0] sm:$0xff] }
 0x165   :  { %v960_v54 = vadd.f32 %v959_v15, %v5305_v62  ;;  %2802 = vmatpush1.bf16.msra.mxu1 %v1392_v49  ;;  %v961_v43 = vpop.f32.mrb[71].mxu0  ;;  %v1172_v51 = vmax.f32 %v956_v2, 0.0  ;;  %v3335_v49 = vld [vmem:[%s6669_s5 + $0x1a8] sm:$0xff]  ;;  %v5773_v46 = vpop.permute.xlu1 %1605 }
 0x166   :  { %3603 = vperm.xlu1 %4478, %v3333_v11   ;;  %3598 = vperm.xlu0 %4477, %v3332_v35   ;;  %v962_v1 = vadd.f32 %v961_v43, %v5305_v62  ;;  %v1173_v44 = vmax.f32 %v958_v10, 0.0  ;;  %v3337_v43 = vld [vmem:[%s6669_s5 + $0x1b8] sm:$0xff]  ;;  %6730 = vst [vmem:[#allocation14_spill] sm:$0xff] %v5773_v46  ;;  %v4525_v10 = vld [vmem:[%s6667_s3 + $0x40] ss:$16 sps:$4 sm:$0xff]  }
 0x167   :  { %v1174_v63 = vmax.f32 %v960_v54, 0.0 }
 0x168   :  { %2491 = vmatmul.mubr.bf16.gmra.mrb[132].mxu0 %v4522_v17  ;;  %2681 = vmatmul.mubr.bf16.gmra.mrb[4].mxu1 %v4534_v33  ;;  %v1175_v11 = vmax.f32 %v962_v1, 0.0  ;;  %v3336_v33 = vld [vmem:[%s6669_s5 + $0x1b0] sm:$0xff] }
 0x169   :  { %v1394_v15 = vpack.c.bf16 %v1174_v63, %v1172_v51  ;;  %2500 = vmatprep.mubr.bf16.mxu0 %v4523_v30  ;;  %2690 = vmatprep.mubr.bf16.mxu1 %v4537_v6  ;;  %v4540_v30 = vld [vmem:[%s6667_s3 + $0x2a0] ss:$16 sps:$4 sm:$0xff]   ;;  %v5784_v6 = vpop.permute.xlu0 %1600  ;;  %v4526_v1 = vld [vmem:[%s6667_s3 + $0x64] ss:$16 sps:$4 sm:$0xff]  }
 0x16a   :  { %3613 = vperm.xlu1 %4478, %v3335_v49   ;;  %3608 = vperm.xlu0 %4477, %v3334_v14   ;;  %v965_v2 = vpop.f32.mrb[72].mxu0  ;;  %v1395_v35 = vpack.c.bf16 %v1175_v11, %v1173_v44  ;;  %6731 = vst [vmem:[#allocation15_spill] sm:$0xff] %v5784_v6  ;;  %v4543_v49 = vld [vmem:[%s6667_s3 + $0x2c4] ss:$16 sps:$4 sm:$0xff]  }
 0x16b   :  { %v966_v62 = vadd.f32 %v965_v2, %v5327_v13  ;;  %v967_v54 = vpop.f32.mrb[73].mxu0 }
 0x16c   :  { %v969_v17 = vpop.f32.mrb[74].mxu0  ;;  %v968_v51 = vadd.f32 %v967_v54, %v5327_v13  ;;  %2803 = vmatprep.subr.bf16.mxu1 %v1395_v35  ;;  %v3339_v13 = vld [vmem:[%s6669_s5 + $0x1c8] sm:$0xff]  ;;  %v3338_v35 = vld [vmem:[%s6669_s5 + $0x1c0] sm:$0xff] }
 0x16d   :  { %v970_v63 = vadd.f32 %v969_v17, %v5319_v8  ;;  %v971_v14 = vpop.f32.mrb[75].mxu0  ;;  %2804 = vmatpush1.bf16.msra.mxu1 %v1394_v15  ;;  %v1176_v44 = vmax.f32 %v966_v62, 0.0  ;;  %v5801_v15 = vpop.permute.xlu1 %1615 }
 0x16e   :  { %3623 = vperm.xlu1 %4478, %v3337_v43   ;;  %v972_v2 = vadd.f32 %v971_v14, %v5319_v8  ;;  %3618 = vperm.xlu0 %4477, %v3336_v33   ;;  %v1177_v54 = vmax.f32 %v968_v51, 0.0  ;;  %6732 = vst [vmem:[#allocation16_spill] sm:$0xff] %v5801_v15  ;;  %v5803_v62 = vpop.permute.xlu0 %1610 }
 0x16f   :  { %v1178_v11 = vmax.f32 %v970_v63, 0.0  ;;  %6733 = vst [vmem:[#allocation17_spill] sm:$0xff] %v5803_v62  ;;  %v3340_v63 = vld [vmem:[%s6669_s5 + $0x1d0] sm:$0xff] }
 0x170   :  { %2501 = vmatmul.mubr.bf16.gmra.mrb[136].mxu0 %v4525_v10  ;;  %2691 = vmatmul.mubr.bf16.gmra.mrb[8].mxu1 %v4540_v30  ;;  %v1179_v46 = vmax.f32 %v972_v2, 0.0  ;;  %v3341_v30 = vld [vmem:[%s6669_s5 + $0x1d8] sm:$0xff] }
 0x171   :  { %v1396_v17 = vpack.c.bf16 %v1178_v11, %v1176_v44  ;;  %2510 = vmatprep.mubr.bf16.mxu0 %v4526_v1  ;;  %2700 = vmatprep.mubr.bf16.mxu1 %v4543_v49  ;;  %v4528_v1 = vld [vmem:[%s6667_s3 + $0x60] ss:$16 sps:$4 sm:$0xff]   ;;  %v4529_v44 = vld [vmem:[%s6667_s3 + $0x84] ss:$16 sps:$4 sm:$0xff]  }
 0x172   :  { %3633 = vperm.xlu1 %4478, %v3339_v13   ;;  %v975_v8 = vpop.f32.mrb[76].mxu0  ;;  %v1397_v43 = vpack.c.bf16 %v1179_v46, %v1177_v54  ;;  %3628 = vperm.xlu0 %4477, %v3338_v35   ;;  %v4546_v46 = vld [vmem:[%s6667_s3 + $0x2c0] ss:$16 sps:$4 sm:$0xff]   ;;  %v4549_v11 = vld [vmem:[%s6667_s3 + $0x2e4] ss:$16 sps:$4 sm:$0xff]  }
 0x173   :  { %v976_v33 = vadd.f32 %v975_v8, %v5344_v34  ;;  %v977_v10 = vpop.f32.mrb[77].mxu0  ;;  %v5830_v8 = vpop.permute.xlu1 %1625 }
 0x174   :  { %v979_v51 = vpop.f32.mrb[78].mxu0  ;;  %v978_v49 = vadd.f32 %v977_v10, %v5344_v34  ;;  %2805 = vmatprep.subr.bf16.mxu1 %v1397_v43  ;;  %v3343_v34 = vld [vmem:[%s6669_s5 + $0x1e8] sm:$0xff]  ;;  %6734 = vst [vmem:[#allocation18_spill] sm:$0xff] %v5830_v8  ;;  %v3342_v43 = vld [vmem:[%s6669_s5 + $0x1e0] sm:$0xff]  ;;  %v5835_v10 = vpop.permute.xlu0 %1620 }
 0x175   :  { %v980_v14 = vadd.f32 %v979_v51, %v5341_v26  ;;  %v981_v2 = vpop.f32.mrb[79].mxu0  ;;  %2806 = vmatpush1.bf16.msra.mxu1 %v1396_v17  ;;  %v1180_v13 = vmax.f32 %v976_v33, 0.0  ;;  %6735 = vst [vmem:[#allocation19_spill] sm:$0xff] %v5835_v10 }
 0x176   :  { %3643 = vperm.xlu1 %4478, %v3341_v30   ;;  %v982_v54 = vadd.f32 %v981_v2, %v5341_v26  ;;  %3638 = vperm.xlu0 %4477, %v3340_v63   ;;  %v1181_v17 = vmax.f32 %v978_v49, 0.0  ;;  %v4533_v49 = vld [vmem:[%s6667_s3 + $0x80] ss:$16 sps:$4 sm:$0xff]  }
 0x177   :  { %v1182_v35 = vmax.f32 %v980_v14, 0.0 }
 0x178   :  { %2511 = vmatmul.mubr.bf16.gmra.mrb[140].mxu0 %v4528_v1  ;;  %2701 = vmatmul.mubr.bf16.gmra.mrb[12].mxu1 %v4546_v46  ;;  %v1183_v30 = vmax.f32 %v982_v54, 0.0  ;;  %v3345_v1 = vld [vmem:[%s6669_s5 + $0x1f8] sm:$0xff]  ;;  %v3344_v46 = vld [vmem:[%s6669_s5 + $0x1f0] sm:$0xff] }
 0x179   :  { %v1398_v33 = vpack.c.bf16 %v1182_v35, %v1180_v13  ;;  %2520 = vmatprep.mubr.bf16.mxu0 %v4529_v44  ;;  %2710 = vmatprep.mubr.bf16.mxu1 %v4549_v11  ;;  %v4552_v44 = vld [vmem:[%s6667_s3 + $0x2e0] ss:$16 sps:$4 sm:$0xff]   ;;  %v4535_v35 = vld [vmem:[%s6667_s3 + $0xa4] ss:$16 sps:$4 sm:$0xff]  }
 0x17a   :  { %3653 = vperm.xlu1 %4478, %v3343_v34   ;;  %v985_v26 = vpop.f32.mrb[80].mxu0  ;;  %v1399_v51 = vpack.c.bf16 %v1183_v30, %v1181_v17  ;;  %3648 = vperm.xlu0 %4477, %v3342_v43   ;;  %v4555_v54 = vld [vmem:[%s6667_s3 + $0x304] ss:$16 sps:$4 sm:$0xff]   ;;  %v5858_v34 = vpop.permute.xlu1 %1635 }
 0x17b   :  { %v986_v63 = vadd.f32 %v985_v26, %v5361_v7  ;;  %v987_v14 = vpop.f32.mrb[81].mxu0  ;;  %6736 = vst [vmem:[#allocation20_spill] sm:$0xff] %v5858_v34  ;;  %v5860_v17 = vpop.permute.xlu0 %1630 }
 0x17c   :  { %v989_v2 = vpop.f32.mrb[82].mxu0  ;;  %v988_v11 = vadd.f32 %v987_v14, %v5361_v7  ;;  %2807 = vmatprep.subr.bf16.mxu1 %v1399_v51  ;;  %6737 = vst [vmem:[#allocation21_spill] sm:$0xff] %v5860_v17 }
 0x17d   :  { %v990_v13 = vadd.f32 %v989_v2, %v5356_v29  ;;  %v991_v43 = vpop.f32.mrb[83].mxu0  ;;  %2808 = vmatpush1.bf16.msra.mxu1 %v1398_v33  ;;  %v1184_v30 = vmax.f32 %v986_v63, 0.0  ;;  %v4539_v63 = vld [vmem:[%s6667_s3 + $0xa0] ss:$16 sps:$4 sm:$0xff]  }
 0x17e   :  { %3663 = vperm.xlu1 %4478, %v3345_v1   ;;  %v992_v26 = vadd.f32 %v991_v43, %v5356_v29  ;;  %3658 = vperm.xlu0 %4477, %v3344_v46   ;;  %v1185_v51 = vmax.f32 %v988_v11, 0.0  ;;  %v4558_v29 = vld [vmem:[%s6667_s3 + $0x300] ss:$16 sps:$4 sm:$0xff]  }
 0x17f   :  { %v1186_v7 = vmax.f32 %v990_v13, 0.0 }
 0x180   :  { %2521 = vmatmul.mubr.bf16.gmra.mrb[144].mxu0 %v4533_v49  ;;  %2711 = vmatmul.mubr.bf16.gmra.mrb[16].mxu1 %v4552_v44  ;;  %v1187_v2 = vmax.f32 %v992_v26, 0.0  ;;  %v4541_v44 = vld [vmem:[%s6667_s3 + $0xc4] ss:$16 sps:$4 sm:$0xff]  }
 0x181   :  { %v1400_v14 = vpack.c.bf16 %v1186_v7, %v1184_v30  ;;  %2530 = vmatprep.mubr.bf16.mxu0 %v4535_v35  ;;  %2720 = vmatprep.mubr.bf16.mxu1 %v4555_v54 }
 0x182   :  { %v995_v8 = vpop.f32.mrb[84].mxu0  ;;  %v1401_v10 = vpack.c.bf16 %v1187_v2, %v1185_v51 }
 0x183   :  { %v996_v34 = vadd.f32 %v995_v8, %v5386_v28  ;;  %v997_v33 = vpop.f32.mrb[85].mxu0  ;;  %v4561_v8 = vld [vmem:[%s6667_s3 + $0x324] ss:$16 sps:$4 sm:$0xff]  }
 0x184   :  { %v999_v1 = vpop.f32.mrb[86].mxu0  ;;  %v998_v46 = vadd.f32 %v997_v33, %v5386_v28  ;;  %2809 = vmatprep.subr.bf16.mxu1 %v1401_v10 }
 0x185   :  { %v1000_v49 = vadd.f32 %v999_v1, %v5383_v45  ;;  %v1001_v11 = vpop.f32.mrb[87].mxu0  ;;  %2810 = vmatpush1.bf16.msra.mxu1 %v1400_v14  ;;  %v1188_v13 = vmax.f32 %v996_v34, 0.0  ;;  %v4545_v34 = vld [vmem:[%s6667_s3 + $0xc0] ss:$16 sps:$4 sm:$0xff]   ;;  %v4547_v1 = vld [vmem:[%s6667_s3 + $0xe4] ss:$16 sps:$4 sm:$0xff]  }
 0x186   :  { %v1002_v54 = vadd.f32 %v1001_v11, %v5383_v45  ;;  %v1189_v28 = vmax.f32 %v998_v46, 0.0  ;;  %v4564_v45 = vld [vmem:[%s6667_s3 + $0x320] ss:$16 sps:$4 sm:$0xff]  }
 0x187   :  { %v1190_v35 = vmax.f32 %v1000_v49, 0.0 }
 0x188   :  { %2531 = vmatmul.mubr.bf16.gmra.mrb[148].mxu0 %v4539_v63  ;;  %2721 = vmatmul.mubr.bf16.gmra.mrb[20].mxu1 %v4558_v29  ;;  %v1191_v30 = vmax.f32 %v1002_v54, 0.0  ;;  %v4567_v63 = vld [vmem:[%s6667_s3 + $0x344] ss:$16 sps:$4 sm:$0xff]  }
 0x189   :  { %v1402_v43 = vpack.c.bf16 %v1190_v35, %v1188_v13  ;;  %2540 = vmatprep.mubr.bf16.mxu0 %v4541_v44  ;;  %2730 = vmatprep.mubr.bf16.mxu1 %v4561_v8 }
 0x18a   :  { %v1005_v10 = vpop.f32.mrb[88].mxu0  ;;  %v1403_v7 = vpack.c.bf16 %v1191_v30, %v1189_v28 }
 0x18b   :  { %v1006_v26 = vadd.f32 %v1005_v10, %v5403_v25  ;;  %v1007_v51 = vpop.f32.mrb[89].mxu0 }
 0x18c   :  { %v1009_v2 = vpop.f32.mrb[90].mxu0  ;;  %v1008_v14 = vadd.f32 %v1007_v51, %v5403_v25  ;;  %2811 = vmatprep.subr.bf16.mxu1 %v1403_v7  ;;  %v4573_v51 = vld [vmem:[%s6667_s3 + $0x364] ss:$16 sps:$4 sm:$0xff]  }
 0x18d   :  { %v1010_v33 = vadd.f32 %v1009_v2, %v5400_v19  ;;  %v1011_v29 = vpop.f32.mrb[91].mxu0  ;;  %2812 = vmatpush1.bf16.msra.mxu1 %v1402_v43  ;;  %v1192_v46 = vmax.f32 %v1006_v26, 0.0  ;;  %v4551_v43 = vld [vmem:[%s6667_s3 + $0xe0] ss:$16 sps:$4 sm:$0xff]   ;;  %v4553_v26 = vld [vmem:[%s6667_s3 + $0x104] ss:$16 sps:$4 sm:$0xff]  }
 0x18e   :  { %v1012_v44 = vadd.f32 %v1011_v29, %v5400_v19  ;;  %v1193_v25 = vmax.f32 %v1008_v14, 0.0  ;;  %v4570_v19 = vld [vmem:[%s6667_s3 + $0x340] ss:$16 sps:$4 sm:$0xff]  }
 0x18f   :  { %v1194_v49 = vmax.f32 %v1010_v33, 0.0 }
 0x190   :  { %2541 = vmatmul.mubr.bf16.gmra.mrb[152].mxu0 %v4545_v34  ;;  %2731 = vmatmul.mubr.bf16.gmra.mrb[24].mxu1 %v4564_v45  ;;  %v1195_v11 = vmax.f32 %v1012_v44, 0.0 }
 0x191   :  { %v1404_v8 = vpack.c.bf16 %v1194_v49, %v1192_v46  ;;  %2550 = vmatprep.mubr.bf16.mxu0 %v4547_v1  ;;  %2740 = vmatprep.mubr.bf16.mxu1 %v4567_v63 }
 0x192   :  { %v1015_v13 = vpop.f32.mrb[92].mxu0  ;;  %v1405_v35 = vpack.c.bf16 %v1195_v11, %v1193_v25  ;;  %v4557_v25 = vld [vmem:[%s6667_s3 + $0x100] ss:$16 sps:$4 sm:$0xff]  }
 0x193   :  { %v1016_v54 = vadd.f32 %v1015_v13, %v5426_v9  ;;  %v1017_v28 = vpop.f32.mrb[93].mxu0  ;;  %v4559_v13 = vld [vmem:[%s6667_s3 + $0x124] ss:$16 sps:$4 sm:$0xff]  }
 0x194   :  { %v1019_v30 = vpop.f32.mrb[94].mxu0  ;;  %v1018_v10 = vadd.f32 %v1017_v28, %v5426_v9  ;;  %2813 = vmatprep.subr.bf16.mxu1 %v1405_v35  ;;  %v4579_v35 = vld [vmem:[%s6667_s3 + $0x384] ss:$16 sps:$4 sm:$0xff]  }
 0x195   :  { %v1020_v7 = vadd.f32 %v1019_v30, %v5423_v61  ;;  %v1021_v2 = vpop.f32.mrb[95].mxu0  ;;  %2814 = vmatpush1.bf16.msra.mxu1 %v1404_v8  ;;  %v1196_v34 = vmax.f32 %v1016_v54, 0.0 }
 0x196   :  { %v1022_v14 = vadd.f32 %v1021_v2, %v5423_v61  ;;  %v1197_v9 = vmax.f32 %v1018_v10, 0.0  ;;  %v4576_v61 = vld [vmem:[%s6667_s3 + $0x360] ss:$16 sps:$4 sm:$0xff]  }
 0x197   :  { %v1198_v45 = vmax.f32 %v1020_v7, 0.0 }
 0x198   :  { %2551 = vmatmul.mubr.bf16.gmra.mrb[156].mxu0 %v4551_v43  ;;  %2741 = vmatmul.mubr.bf16.gmra.mrb[28].mxu1 %v4570_v19  ;;  %v1199_v1 = vmax.f32 %v1022_v14, 0.0 }
 0x199   :  { %v1406_v33 = vpack.c.bf16 %v1198_v45, %v1196_v34  ;;  %2560 = vmatprep.mubr.bf16.mxu0 %v4553_v26  ;;  %2750 = vmatprep.mubr.bf16.mxu1 %v4573_v51  ;;  %v4563_v45 = vld [vmem:[%s6667_s3 + $0x120] ss:$16 sps:$4 sm:$0xff]  }
 0x19a   :  { %v1025_v63 = vpop.f32.mrb[96].mxu0  ;;  %v1407_v29 = vpack.c.bf16 %v1199_v1, %v1197_v9  ;;  %v4585_v1 = vld [vmem:[%s6667_s3 + $0x3a4] ss:$16 sps:$4 sm:$0xff]  }
 0x19b   :  { %v1026_v46 = vadd.f32 %v1025_v63, %v5440_v32  ;;  %v1027_v49 = vpop.f32.mrb[97].mxu0 }
 0x19c   :  { %v1029_v44 = vpop.f32.mrb[98].mxu0  ;;  %v1028_v8 = vadd.f32 %v1027_v49, %v5440_v32  ;;  %2815 = vmatprep.subr.bf16.mxu1 %v1407_v29 }
 0x19d   :  { %v1030_v11 = vadd.f32 %v1029_v44, %v5438_v37  ;;  %v1031_v54 = vpop.f32.mrb[99].mxu0  ;;  %2816 = vmatpush1.bf16.msra.mxu1 %v1406_v33  ;;  %v1200_v28 = vmax.f32 %v1026_v46, 0.0  ;;  %v4565_v33 = vld [vmem:[%s6667_s3 + $0x144] ss:$16 sps:$4 sm:$0xff]  }
 0x19e   :  { %v1032_v43 = vadd.f32 %v1031_v54, %v5438_v37  ;;  %v1201_v32 = vmax.f32 %v1028_v8, 0.0  ;;  %v4582_v37 = vld [vmem:[%s6667_s3 + $0x380] ss:$16 sps:$4 sm:$0xff]  }
 0x19f   :  { %v1202_v30 = vmax.f32 %v1030_v11, 0.0  ;;  %v4569_v54 = vld [vmem:[%s6667_s3 + $0x140] ss:$16 sps:$4 sm:$0xff]  }
 0x1a0   :  { %2561 = vmatmul.mubr.bf16.gmra.mrb[160].mxu0 %v4557_v25  ;;  %2751 = vmatmul.mubr.bf16.gmra.mrb[32].mxu1 %v4576_v61  ;;  %v1203_v10 = vmax.f32 %v1032_v43, 0.0  ;;  %v4571_v43 = vld [vmem:[%s6667_s3 + $0x164] ss:$16 sps:$4 sm:$0xff]  }
 0x1a1   :  { %v1408_v19 = vpack.c.bf16 %v1202_v30, %v1200_v28  ;;  %2570 = vmatprep.mubr.bf16.mxu0 %v4559_v13  ;;  %2760 = vmatprep.mubr.bf16.mxu1 %v4579_v35 }
 0x1a2   :  { %v1035_v7 = vpop.f32.mrb[100].mxu0  ;;  %v1409_v26 = vpack.c.bf16 %v1203_v10, %v1201_v32  ;;  %v4591_v32 = vld [vmem:[%s6667_s3 + $0x3c4] ss:$16 sps:$4 sm:$0xff]  }
 0x1a3   :  { %v1036_v51 = vadd.f32 %v1035_v7, %v5467_v41  ;;  %v1037_v2 = vpop.f32.mrb[101].mxu0 }
 0x1a4   :  { %v1039_v34 = vpop.f32.mrb[102].mxu0  ;;  %v1038_v14 = vadd.f32 %v1037_v2, %v5467_v41  ;;  %2817 = vmatprep.subr.bf16.mxu1 %v1409_v26 }
 0x1a5   :  { %v1040_v9 = vadd.f32 %v1039_v34, %v5465_v20  ;;  %v1041_v63 = vpop.f32.mrb[103].mxu0  ;;  %2818 = vmatpush1.bf16.msra.mxu1 %v1408_v19  ;;  %v1204_v29 = vmax.f32 %v1036_v51, 0.0 }
 0x1a6   :  { %v1042_v49 = vadd.f32 %v1041_v63, %v5465_v20  ;;  %v1205_v41 = vmax.f32 %v1038_v14, 0.0  ;;  %v4588_v20 = vld [vmem:[%s6667_s3 + $0x3a0] ss:$16 sps:$4 sm:$0xff]  }
 0x1a7   :  { %v1206_v46 = vmax.f32 %v1040_v9, 0.0 }
 0x1a8   :  { %2571 = vmatmul.mubr.bf16.gmra.mrb[164].mxu0 %v4563_v45  ;;  %2761 = vmatmul.mubr.bf16.gmra.mrb[36].mxu1 %v4582_v37  ;;  %v1207_v25 = vmax.f32 %v1042_v49, 0.0 }
 0x1a9   :  { %v1410_v44 = vpack.c.bf16 %v1206_v46, %v1204_v29  ;;  %2580 = vmatprep.mubr.bf16.mxu0 %v4565_v33  ;;  %2770 = vmatprep.mubr.bf16.mxu1 %v4585_v1  ;;  %v4575_v33 = vld [vmem:[%s6667_s3 + $0x160] ss:$16 sps:$4 sm:$0xff]   ;;  %v4577_v29 = vld [vmem:[%s6667_s3 + $0x184] ss:$16 sps:$4 sm:$0xff]  }
 0x1aa   :  { %v1045_v61 = vpop.f32.mrb[104].mxu0  ;;  %v1411_v8 = vpack.c.bf16 %v1207_v25, %v1205_v41  ;;  %v4597_v46 = vld [vmem:[%s6667_s3 + $0x3e4] ss:$16 sps:$4 sm:$0xff]  }
 0x1ab   :  { %v1046_v11 = vadd.f32 %v1045_v61, %v5481_v3  ;;  %v1047_v13 = vpop.f32.mrb[105].mxu0 }
 0x1ac   :  { %v1049_v35 = vpop.f32.mrb[106].mxu0  ;;  %v1048_v28 = vadd.f32 %v1047_v13, %v5481_v3  ;;  %2819 = vmatprep.subr.bf16.mxu1 %v1411_v8 }
 0x1ad   :  { %v1050_v30 = vadd.f32 %v1049_v35, %v5478_v57  ;;  %v1051_v19 = vpop.f32.mrb[107].mxu0  ;;  %2820 = vmatpush1.bf16.msra.mxu1 %v1410_v44  ;;  %v1208_v10 = vmax.f32 %v1046_v11, 0.0 }
 0x1ae   :  { %v1052_v26 = vadd.f32 %v1051_v19, %v5478_v57  ;;  %v1209_v3 = vmax.f32 %v1048_v28, 0.0  ;;  %v4594_v57 = vld [vmem:[%s6667_s3 + $0x3c0] ss:$16 sps:$4 sm:$0xff]   ;;  %v4605_v19 = vld [vmem:[%s6667_s3 + $0xc] ss:$16 sps:$4 sm:$0xff]  }
 0x1af   :  { %v1210_v7 = vmax.f32 %v1050_v30, 0.0  ;;  %v4581_v28 = vld [vmem:[%s6667_s3 + $0x180] ss:$16 sps:$4 sm:$0xff]  }
 0x1b0   :  { %2581 = vmatmul.mubr.bf16.gmra.mrb[168].mxu0 %v4569_v54  ;;  %2771 = vmatmul.mubr.bf16.gmra.mrb[40].mxu1 %v4588_v20  ;;  %v1211_v2 = vmax.f32 %v1052_v26, 0.0 }
 0x1b1   :  { %v1412_v51 = vpack.c.bf16 %v1210_v7, %v1208_v10  ;;  %2590 = vmatprep.mubr.bf16.mxu0 %v4571_v43  ;;  %2780 = vmatprep.mubr.bf16.mxu1 %v4591_v32  ;;  %v4583_v32 = vld [vmem:[%s6667_s3 + $0x1a4] ss:$16 sps:$4 sm:$0xff]  }
 0x1b2   :  { %v1055_v34 = vpop.f32.mrb[108].mxu0  ;;  %v1413_v45 = vpack.c.bf16 %v1211_v2, %v1209_v3 }
 0x1b3   :  { %v1056_v37 = vadd.f32 %v1055_v34, %v5499_v48  ;;  %v1057_v14 = vpop.f32.mrb[109].mxu0 }
 0x1b4   :  { %v1059_v9 = vpop.f32.mrb[110].mxu0  ;;  %v1058_v1 = vadd.f32 %v1057_v14, %v5499_v48  ;;  %2821 = vmatprep.subr.bf16.mxu1 %v1413_v45 }
 0x1b5   :  { %v1060_v63 = vadd.f32 %v1059_v9, %v5496_v39  ;;  %v1061_v49 = vpop.f32.mrb[111].mxu0  ;;  %2822 = vmatpush1.bf16.msra.mxu1 %v1412_v51  ;;  %v1212_v41 = vmax.f32 %v1056_v37, 0.0 }
 0x1b6   :  { %v1062_v25 = vadd.f32 %v1061_v49, %v5496_v39  ;;  %v1213_v48 = vmax.f32 %v1058_v1, 0.0  ;;  %v4600_v39 = vld [vmem:[%s6667_s3 + $0x3e0] ss:$16 sps:$4 sm:$0xff]   ;;  %v4589_v1 = vld [vmem:[%s6667_s3 + $0x1c4] ss:$16 sps:$4 sm:$0xff]  }
 0x1b7   :  { %v1214_v44 = vmax.f32 %v1060_v63, 0.0 }
 0x1b8   :  { %2591 = vmatmul.mubr.bf16.gmra.mrb[172].mxu0 %v4575_v33  ;;  %2781 = vmatmul.mubr.bf16.gmra.mrb[44].mxu1 %v4594_v57  ;;  %v1215_v8 = vmax.f32 %v1062_v25, 0.0  ;;  %v4587_v33 = vld [vmem:[%s6667_s3 + $0x1a0] ss:$16 sps:$4 sm:$0xff]  }
 0x1b9   :  { %v1414_v61 = vpack.c.bf16 %v1214_v44, %v1212_v41  ;;  %2600 = vmatprep.mubr.bf16.mxu0 %v4577_v29  ;;  %2790 = vmatprep.mubr.bf16.mxu1 %v4597_v46 }
 0x1ba   :  { %v1065_v11 = vpop.f32.mrb[112].mxu0  ;;  %v1415_v13 = vpack.c.bf16 %v1215_v8, %v1213_v48 }
 0x1bb   :  { %v1066_v35 = vadd.f32 %v1065_v11, %v5511_v18  ;;  %v1067_v54 = vpop.f32.mrb[113].mxu0 }
 0x1bc   :  { %v1069_v20 = vpop.f32.mrb[114].mxu0  ;;  %v1068_v30 = vadd.f32 %v1067_v54, %v5511_v18  ;;  %2823 = vmatprep.subr.bf16.mxu1 %v1415_v13  ;;  %v4593_v13 = vld [vmem:[%s6667_s3 + $0x1c0] ss:$16 sps:$4 sm:$0xff]  }
 0x1bd   :  { %v1070_v43 = vadd.f32 %v1069_v20, %v5509_v16  ;;  %v1071_v10 = vpop.f32.mrb[115].mxu0  ;;  %2824 = vmatpush1.bf16.msra.mxu1 %v1414_v61  ;;  %v1216_v7 = vmax.f32 %v1066_v35, 0.0 }
 0x1be   :  { %v1072_v3 = vadd.f32 %v1071_v10, %v5509_v16  ;;  %v1217_v18 = vmax.f32 %v1068_v30, 0.0 }
 0x1bf   :  { %v1218_v26 = vmax.f32 %v1070_v43, 0.0 }
 0x1c0   :  { %2601 = vmatmul.mubr.bf16.gmra.mrb[176].mxu0 %v4581_v28  ;;  %2791 = vmatmul.mubr.bf16.gmra.mrb[48].mxu1 %v4600_v39  ;;  %v1219_v2 = vmax.f32 %v1072_v3, 0.0 }
 0x1c1   :  { %v1416_v51 = vpack.c.bf16 %v1218_v26, %v1216_v7  ;;  %2610 = vmatprep.mubr.bf16.mxu0 %v4583_v32  ;;  %2833 = vmatprep.mubr.bf16.mxu1 %v4605_v19 }
 0x1c2   :  { %v1075_v34 = vpop.f32.mrb[116].mxu0  ;;  %v1417_v45 = vpack.c.bf16 %v1219_v2, %v1217_v18  ;;  %v4599_v18 = vld [vmem:[%s6667_s3 + $0x1e0] ss:$16 sps:$4 sm:$0xff]  }
 0x1c3   :  { %v1076_v37 = vadd.f32 %v1075_v34, %v5531_v12  ;;  %v1077_v14 = vpop.f32.mrb[117].mxu0 }
 0x1c4   :  { %v1079_v9 = vpop.f32.mrb[118].mxu0  ;;  %v1078_v57 = vadd.f32 %v1077_v14, %v5531_v12  ;;  %2825 = vmatprep.subr.bf16.mxu1 %v1417_v45 }
 0x1c5   :  { %v1080_v16 = vadd.f32 %v1079_v9, %v5529_v58  ;;  %v1081_v63 = vpop.f32.mrb[119].mxu0  ;;  %2826 = vmatpush1.bf16.msra.mxu1 %v1416_v51  ;;  %v1220_v29 = vmax.f32 %v1076_v37, 0.0 }
 0x1c6   :  { %v1082_v49 = vadd.f32 %v1081_v63, %v5529_v58  ;;  %v1221_v41 = vmax.f32 %v1078_v57, 0.0  ;;  %v4595_v58 = vld [vmem:[%s6667_s3 + $0x1e4] ss:$16 sps:$4 sm:$0xff]  }
 0x1c7   :  { %v1222_v46 = vmax.f32 %v1080_v16, 0.0  ;;  %v4607_v63 = vld [vmem:[%s6667_s3 + $0x224] ss:$16 sps:$4 sm:$0xff]  }
 0x1c8   :  { %2611 = vmatmul.mubr.bf16.gmra.mrb[180].mxu0 %v4587_v33  ;;  %v1223_v25 = vmax.f32 %v1082_v49, 0.0  ;;  %v4613_v49 = vld [vmem:[%s6667_s3 + $0x244] ss:$16 sps:$4 sm:$0xff]  }
 0x1c9   :  { %v1418_v44 = vpack.c.bf16 %v1222_v46, %v1220_v29  ;;  %2620 = vmatprep.mubr.bf16.mxu0 %v4589_v1  ;;  %v4603_v1 = vld [vmem:[%s6667_s3 + $0x8] ss:$16 sps:$4 sm:$0xff]   ;;  %v4611_v29 = vld [vmem:[%s6667_s3 + $0x220] ss:$16 sps:$4 sm:$0xff]  }
 0x1ca   :  { %v1085_v48 = vpop.f32.mrb[120].mxu0  ;;  %v1419_v12 = vpack.c.bf16 %v1223_v25, %v1221_v41  ;;  %v4612_v46 = vld [vmem:[%s6667_s3 + $0x28] ss:$16 sps:$4 sm:$0xff]   ;;  %v4615_v41 = vld [vmem:[%s6667_s3 + $0x4c] ss:$16 sps:$4 sm:$0xff]  }
 0x1cb   :  { %v1086_v61 = vadd.f32 %v1085_v48, %v5545_v52  ;;  %v1087_v8 = vpop.f32.mrb[121].mxu0  ;;  %v4618_v25 = vld [vmem:[%s6667_s3 + $0x48] ss:$16 sps:$4 sm:$0xff]   ;;  %v4619_v48 = vld [vmem:[%s6667_s3 + $0x6c] ss:$16 sps:$4 sm:$0xff]  }
 0x1cc   :  { %v1089_v11 = vpop.f32.mrb[122].mxu0  ;;  %v1088_v35 = vadd.f32 %v1087_v8, %v5545_v52  ;;  %2827 = vmatprep.subr.bf16.mxu1 %v1419_v12  ;;  %v4621_v12 = vld [vmem:[%s6667_s3 + $0x68] ss:$16 sps:$4 sm:$0xff]  }
 0x1cd   :  { %v1090_v54 = vadd.f32 %v1089_v11, %v5542_v23  ;;  %v1091_v20 = vpop.f32.mrb[123].mxu0  ;;  %2828 = vmatpush1.bf16.msra.mxu1 %v1418_v44  ;;  %v1224_v28 = vmax.f32 %v1086_v61, 0.0  ;;  %v4617_v44 = vld [vmem:[%s6667_s3 + $0x240] ss:$16 sps:$4 sm:$0xff]   ;;  %v4622_v61 = vld [vmem:[%s6667_s3 + $0x8c] ss:$16 sps:$4 sm:$0xff]  }
 0x1ce   :  { %v1092_v30 = vadd.f32 %v1091_v20, %v5542_v23  ;;  %v1225_v43 = vmax.f32 %v1088_v35, 0.0  ;;  %v4601_v23 = vld [vmem:[%s6667_s3 + $0x204] ss:$16 sps:$4 sm:$0xff]   ;;  %v4624_v8 = vld [vmem:[%s6667_s3 + $0x88] ss:$16 sps:$4 sm:$0xff]  }
 0x1cf   :  { %v1226_v39 = vmax.f32 %v1090_v54, 0.0  ;;  %v4625_v11 = vld [vmem:[%s6667_s3 + $0xac] ss:$16 sps:$4 sm:$0xff]   ;;  %v4630_v54 = vld [vmem:[%s6667_s3 + $0xc8] ss:$16 sps:$4 sm:$0xff]  }
 0x1d0   :  { %2621 = vmatmul.mubr.bf16.gmra.mrb[184].mxu0 %v4593_v13  ;;  %v1227_v19 = vmax.f32 %v1092_v30, 0.0  ;;  %v4627_v13 = vld [vmem:[%s6667_s3 + $0xa8] ss:$16 sps:$4 sm:$0xff]   ;;  %v4628_v35 = vld [vmem:[%s6667_s3 + $0xcc] ss:$16 sps:$4 sm:$0xff]  }
 0x1d1   :  { %v1420_v32 = vpack.c.bf16 %v1226_v39, %v1224_v28  ;;  %2630 = vmatprep.mubr.bf16.mxu0 %v4595_v58  ;;  %v4631_v58 = vld [vmem:[%s6667_s3 + $0xec] ss:$16 sps:$4 sm:$0xff]   ;;  %v4633_v20 = vld [vmem:[%s6667_s3 + $0xe8] ss:$16 sps:$4 sm:$0xff]  }
 0x1d2   :  { %v1095_v10 = vpop.f32.mrb[124].mxu0  ;;  %v1421_v52 = vpack.c.bf16 %v1227_v19, %v1225_v43  ;;  %v4634_v28 = vld [vmem:[%s6667_s3 + $0x10c] ss:$16 sps:$4 sm:$0xff]   ;;  %v4636_v39 = vld [vmem:[%s6667_s3 + $0x108] ss:$16 sps:$4 sm:$0xff]  }
 0x1d3   :  { %v1096_v7 = vadd.f32 %v1095_v10, %v5563_v31  ;;  %v1097_v26 = vpop.f32.mrb[125].mxu0  ;;  %v4637_v30 = vld [vmem:[%s6667_s3 + $0x12c] ss:$16 sps:$4 sm:$0xff]   ;;  %v4639_v43 = vld [vmem:[%s6667_s3 + $0x128] ss:$16 sps:$4 sm:$0xff]  }
 0x1d4   :  { %v1099_v3 = vpop.f32.mrb[126].mxu0  ;;  %v1098_v51 = vadd.f32 %v1097_v26, %v5563_v31  ;;  %2829 = vmatprep.subr.bf16.mxu1 %v1421_v52  ;;  %v4606_v31 = vld [vmem:[%s6667_s3 + $0x200] ss:$16 sps:$4 sm:$0xff]   ;;  %v4642_v19 = vld [vmem:[%s6667_s3 + $0x148] ss:$16 sps:$4 sm:$0xff]  }
 0x1d5   :  { %v1100_v2 = vadd.f32 %v1099_v3, %v5560_v38  ;;  %v1101_v34 = vpop.f32.mrb[127].mxu0  ;;  %2830 = vmatpush1.bf16.msra.mxu1 %v1420_v32  ;;  %v1228_v45 = vmax.f32 %v1096_v7, 0.0  ;;  %v4640_v32 = vld [vmem:[%s6667_s3 + $0x14c] ss:$16 sps:$4 sm:$0xff]   ;;  %v4645_v3 = vld [vmem:[%s6667_s3 + $0x168] ss:$16 sps:$4 sm:$0xff]  }
 0x1d6   :  { %v1102_v14 = vadd.f32 %v1101_v34, %v5560_v38  ;;  %v1229_v9 = vmax.f32 %v1098_v51, 0.0  ;;  %v4609_v38 = vld [vmem:[%s6667_s3 + $0x2c] ss:$16 sps:$4 sm:$0xff]  }
 0x1d7   :  { %v1230_v37 = vmax.f32 %v1100_v2, 0.0  ;;  %v4643_v10 = vld [vmem:[%s6667_s3 + $0x16c] ss:$16 sps:$4 sm:$0xff]  }
 0x1d8   :  { %2631 = vmatmul.mubr.bf16.gmra.mrb[188].mxu0 %v4599_v18  ;;  %v1231_v57 = vmax.f32 %v1102_v14, 0.0  ;;  %v4646_v51 = vld [vmem:[%s6667_s3 + $0x18c] ss:$16 sps:$4 sm:$0xff]  }
 0x1d9   :  { %v1422_v33 = vpack.c.bf16 %v1230_v37, %v1228_v45  ;;  %2640 = vmatprep.mubr.bf16.mxu0 %v4601_v23  ;;  %v4648_v45 = vld [vmem:[%s6667_s3 + $0x188] ss:$16 sps:$4 sm:$0xff]   ;;  %v4649_v14 = vld [vmem:[%s6667_s3 + $0x1ac] ss:$16 sps:$4 sm:$0xff]  }
 0x1da   :  { %v1423_v16 = vpack.c.bf16 %v1231_v57, %v1229_v9 }
 0x1dc   :  { %2831 = vmatprep.subr.bf16.mxu1 %v1423_v16  ;;  %v4651_v16 = vld [vmem:[%s6667_s3 + $0x1a8] ss:$16 sps:$4 sm:$0xff]  }
 0x1dd   :  { %2832 = vmatpush1.bf16.msra.mxu1 %v1422_v33 }
 0x1e0   :  { %2641 = vmatmul.mubr.bf16.gmra.mrb[192].mxu0 %v4606_v31  ;;  %2834 = vmatmul.mubr.bf16.vlgmr.msra.gmra.mrb[52].mxu1 %v4603_v1  ;;  %v4652_v1 = vld [vmem:[%s6667_s3 + $0x1cc] ss:$16 sps:$4 sm:$0xff]  }
 0x1e1   :  { %2650 = vmatprep.mubr.bf16.mxu0 %v4607_v63  ;;  %2843 = vmatprep.mubr.bf16.mxu1 %v4609_v38 }
 0x1e8   :  { %2651 = vmatmul.mubr.bf16.gmra.mrb[196].mxu0 %v4611_v29  ;;  %2844 = vmatmul.mubr.bf16.gmra.mrb[56].mxu1 %v4612_v46  ;;  %v4654_v46 = vld [vmem:[%s6667_s3 + $0x1c8] ss:$16 sps:$4 sm:$0xff]  }
 0x1e9   :  { %2660 = vmatprep.mubr.bf16.mxu0 %v4613_v49  ;;  %2853 = vmatprep.mubr.bf16.mxu1 %v4615_v41  ;;  %v4655_v41 = vld [vmem:[%s6667_s3 + $0x1ec] ss:$16 sps:$4 sm:$0xff]  }
 0x1f0   :  { %2661 = vmatmul.mubr.bf16.gmra.mrb[200].mxu0 %v4617_v44  ;;  %2854 = vmatmul.mubr.bf16.gmra.mrb[60].mxu1 %v4618_v25  ;;  %v6158_v44 = vpop.permute.xlu1 %1645  ;;  %v6160_v25 = vpop.permute.xlu0 %1640 }
 0x1f1   :  { %2863 = vmatprep.mubr.bf16.mxu1 %v4619_v48  ;;  %6738 = vst [vmem:[#allocation22_spill] sm:$0xff] %v6158_v44  ;;  %6739 = vst [vmem:[#allocation23_spill] sm:$0xff] %v6160_v25 }
 0x1f8   :  { %2864 = vmatmul.mubr.bf16.gmra.mrb[64].mxu1 %v4621_v12 }
 0x1f9   :  { %2873 = vmatprep.mubr.bf16.mxu1 %v4622_v61 }
 0x200   :  { %2874 = vmatmul.mubr.bf16.gmra.mrb[68].mxu1 %v4624_v8  ;;  %v4657_v8 = vld [vmem:[%s6667_s3 + $0x1e8] ss:$16 sps:$4 sm:$0xff]  }
 0x201   :  { %2883 = vmatprep.mubr.bf16.mxu1 %v4625_v11 }
 0x208   :  { %2884 = vmatmul.mubr.bf16.gmra.mrb[72].mxu1 %v4627_v13  ;;  %v4658_v13 = vld [vmem:[%s6667_s3 + $0x20c] ss:$16 sps:$4 sm:$0xff]  }
 0x209   :  { %2893 = vmatprep.mubr.bf16.mxu1 %v4628_v35  ;;  %v6176_v35 = vpop.permute.xlu1 %1655 }
 0x20a   :  { %6740 = vst [vmem:[#allocation24_spill] sm:$0xff] %v6176_v35  ;;  %v4669_v35 = vld [vmem:[%s6667_s3 + $0x268] ss:$16 sps:$4 sm:$0xff]  }
 0x210   :  { %2894 = vmatmul.mubr.bf16.gmra.mrb[76].mxu1 %v4630_v54  ;;  %v6178_v54 = vpop.permute.xlu0 %1650 }
 0x211   :  { %2903 = vmatprep.mubr.bf16.mxu1 %v4631_v58  ;;  %6741 = vst [vmem:[#allocation25_spill] sm:$0xff] %v6178_v54 }
 0x218   :  { %2904 = vmatmul.mubr.bf16.gmra.mrb[80].mxu1 %v4633_v20 }
 0x219   :  { %2913 = vmatprep.mubr.bf16.mxu1 %v4634_v28 }
 0x220   :  { %2914 = vmatmul.mubr.bf16.gmra.mrb[84].mxu1 %v4636_v39  ;;  %v4660_v39 = vld [vmem:[%s6667_s3 + $0x208] ss:$16 sps:$4 sm:$0xff]  }
 0x221   :  { %2923 = vmatprep.mubr.bf16.mxu1 %v4637_v30  ;;  %v6189_v30 = vpop.permute.xlu1 %1665 }
 0x222   :  { %6742 = vst [vmem:[#allocation26_spill] sm:$0xff] %v6189_v30 }
 0x228   :  { %2924 = vmatmul.mubr.bf16.gmra.mrb[88].mxu1 %v4639_v43 }
 0x229   :  { %2933 = vmatprep.mubr.bf16.mxu1 %v4640_v32  ;;  %v4661_v32 = vld [vmem:[%s6667_s3 + $0x22c] ss:$16 sps:$4 sm:$0xff]  }
 0x230   :  { %2934 = vmatmul.mubr.bf16.gmra.mrb[92].mxu1 %v4642_v19  ;;  %v6196_v19 = vpop.permute.xlu0 %1660 }
 0x231   :  { %2943 = vmatprep.mubr.bf16.mxu1 %v4643_v10  ;;  %6743 = vst [vmem:[#allocation27_spill] sm:$0xff] %v6196_v19 }
 0x233   :  { %v6102_v52 = vpop.f32.mrb[128].mxu0 }
 0x234   :  { %v6104_v7 = vpop.f32.mrb[129].mxu0 }
 0x235   :  { %v6106_v26 = vpop.f32.mrb[130].mxu0 }
 0x236   :  { %v6111_v18 = vpop.f32.mrb[131].mxu0 }
 0x238   :  { %2944 = vmatmul.mubr.bf16.gmra.mrb[96].mxu1 %v4645_v3  ;;  %v6200_v3 = vpop.permute.xlu1 %1675 }
 0x239   :  { %2953 = vmatprep.mubr.bf16.mxu1 %v4646_v51  ;;  %6744 = vst [vmem:[#allocation28_spill] sm:$0xff] %v6200_v3  ;;  %v4666_v3 = vld [vmem:[%s6667_s3 + $0x248] ss:$16 sps:$4 sm:$0xff]  }
 0x23b   :  { %v6116_v2 = vpop.f32.mrb[132].mxu0 }
 0x23c   :  { %v6118_v23 = vpop.f32.mrb[133].mxu0 }
 0x23d   :  { %v6120_v34 = vpop.f32.mrb[134].mxu0 }
 0x23e   :  { %v6125_v37 = vpop.f32.mrb[135].mxu0 }
 0x240   :  { %2954 = vmatmul.mubr.bf16.gmra.mrb[100].mxu1 %v4648_v45  ;;  %v6204_v45 = vpop.permute.xlu0 %1670 }
 0x241   :  { %2963 = vmatprep.mubr.bf16.mxu1 %v4649_v14  ;;  %6745 = vst [vmem:[#allocation29_spill] sm:$0xff] %v6204_v45 }
 0x243   :  { %v6130_v9 = vpop.f32.mrb[136].mxu0 }
 0x244   :  { %v6132_v33 = vpop.f32.mrb[137].mxu0 }
 0x245   :  { %v6134_v57 = vpop.f32.mrb[138].mxu0 }
 0x246   :  { %v6139_v31 = vpop.f32.mrb[139].mxu0 }
 0x248   :  { %2964 = vmatmul.mubr.bf16.gmra.mrb[104].mxu1 %v4651_v16  ;;  %v4663_v16 = vld [vmem:[%s6667_s3 + $0x228] ss:$16 sps:$4 sm:$0xff]  }
 0x249   :  { %2973 = vmatprep.mubr.bf16.mxu1 %v4652_v1 }
 0x24b   :  { %v6144_v63 = vpop.f32.mrb[140].mxu0 }
 0x24c   :  { %v6146_v38 = vpop.f32.mrb[141].mxu0 }
 0x24d   :  { %v6148_v29 = vpop.f32.mrb[142].mxu0 }
 0x24e   :  { %v6153_v49 = vpop.f32.mrb[143].mxu0 }
 0x250   :  { %2974 = vmatmul.mubr.bf16.gmra.mrb[108].mxu1 %v4654_v46  ;;  %v4664_v46 = vld [vmem:[%s6667_s3 + $0x24c] ss:$16 sps:$4 sm:$0xff]  }
 0x251   :  { %2983 = vmatprep.mubr.bf16.mxu1 %v4655_v41  ;;  %v6216_v41 = vpop.permute.xlu1 %1685 }
 0x252   :  { %6746 = vst [vmem:[#allocation30_spill] sm:$0xff] %v6216_v41 }
 0x253   :  { %v6162_v48 = vpop.f32.mrb[144].mxu0 }
 0x254   :  { %v6164_v12 = vpop.f32.mrb[145].mxu0 }
 0x255   :  { %v6166_v61 = vpop.f32.mrb[146].mxu0  ;;  %v6234_v41 = vpop.permute.xlu1 %1695 }
 0x256   :  { %v6171_v11 = vpop.f32.mrb[147].mxu0  ;;  %6748 = vst [vmem:[#allocation32_spill] sm:$0xff] %v6234_v41  ;;  %v4670_v41 = vld [vmem:[%s6667_s3 + $0x28c] ss:$16 sps:$4 sm:$0xff]  }
 0x258   :  { %2984 = vmatmul.mubr.bf16.gmra.mrb[112].mxu1 %v4657_v8  ;;  %v6218_v8 = vpop.permute.xlu0 %1680 }
 0x259   :  { %2993 = vmatprep.mubr.bf16.mxu1 %v4658_v13  ;;  %6747 = vst [vmem:[#allocation31_spill] sm:$0xff] %v6218_v8  ;;  %v6247_v54 = vpop.permute.xlu1 %1705 }
 0x25a   :  { %6750 = vst [vmem:[#allocation34_spill] sm:$0xff] %v6247_v54  ;;  %v4672_v54 = vld [vmem:[%s6667_s3 + $0x288] ss:$16 sps:$4 sm:$0xff]  }
 0x25b   :  { %v6180_v58 = vpop.f32.mrb[148].mxu0 }
 0x25c   :  { %v6182_v20 = vpop.f32.mrb[149].mxu0 }
 0x25d   :  { %v6184_v28 = vpop.f32.mrb[150].mxu0 }
 0x25e   :  { %v6191_v43 = vpop.f32.mrb[151].mxu0 }
 0x260   :  { %2994 = vmatmul.mubr.bf16.gmra.mrb[116].mxu1 %v4660_v39 }
 0x261   :  { %3003 = vmatprep.mubr.bf16.mxu1 %v4661_v32 }
 0x263   :  { %v6198_v10 = vpop.f32.mrb[152].mxu0 }
 0x264   :  { %v6202_v51 = vpop.f32.mrb[153].mxu0 }
 0x265   :  { %v6206_v14 = vpop.f32.mrb[154].mxu0 }
 0x266   :  { %v6211_v1 = vpop.f32.mrb[155].mxu0 }
 0x268   :  { %3004 = vmatmul.mubr.bf16.gmra.mrb[120].mxu1 %v4663_v16  ;;  %v4667_v16 = vld [vmem:[%s6667_s3 + $0x26c] ss:$16 sps:$4 sm:$0xff]  }
 0x269   :  { %3013 = vmatprep.mubr.bf16.mxu1 %v4664_v46  ;;  %v6236_v46 = vpop.permute.xlu0 %1690 }
 0x26a   :  { %6749 = vst [vmem:[#allocation33_spill] sm:$0xff] %v6236_v46  ;;  %v6258_v46 = vpop.permute.xlu1 %1715 }
 0x26b   :  { %v6220_v13 = vpop.f32.mrb[156].mxu0  ;;  %6754 = vst [vmem:[#allocation38_spill] sm:$0xff] %v6258_v46 }
 0x26c   :  { %v6222_v39 = vpop.f32.mrb[157].mxu0 }
 0x26d   :  { %v6224_v32 = vpop.f32.mrb[158].mxu0 }
 0x26e   :  { %v6229_v45 = vpop.f32.mrb[159].mxu0 }
 0x270   :  { %3014 = vmatmul.mubr.bf16.gmra.mrb[124].mxu1 %v4666_v3  ;;  %v6254_v3 = vpop.permute.xlu0 %1700 }
 0x271   :  { %3023 = vmatprep.mubr.bf16.mxu1 %v4667_v16  ;;  %6752 = vst [vmem:[#allocation36_spill] sm:$0xff] %v6254_v3 }
 0x273   :  { %v6238_v8 = vpop.f32.mrb[160].mxu0 }
 0x274   :  { %v6240_v30 = vpop.f32.mrb[161].mxu0  ;;  %v6262_v17 = vpop.permute.xlu0 %1710 }
 0x275   :  { %v6242_v19 = vpop.f32.mrb[162].mxu0  ;;  %6756 = vst [vmem:[#allocation40_spill] sm:$0xff] %v6262_v17 }
 0x276   :  { %v6249_v44 = vpop.f32.mrb[163].mxu0 }
 0x277   :  { %6751 = vst [vmem:[#allocation35_spill] sm:$0xff] %v6249_v44 }
 0x278   :  { %3024 = vmatmul.mubr.bf16.gmra.mrb[0].mxu1 %v4669_v35  ;;  %v4673_v35 = vld [vmem:[%s6667_s3 + $0x2ac] ss:$16 sps:$4 sm:$0xff]   ;;  %v6276_v46 = vpop.permute.xlu0 %1720 }
 0x279   :  { %3033 = vmatprep.mubr.bf16.mxu1 %v4670_v41  ;;  %v6274_v41 = vpop.permute.xlu1 %1725  ;;  %6760 = vst [vmem:[#allocation44_spill] sm:$0xff] %v6276_v46 }
 0x27a   :  { %6759 = vst [vmem:[#allocation43_spill] sm:$0xff] %v6274_v41 }
 0x27b   :  { %v6256_v16 = vpop.f32.mrb[164].mxu0 }
 0x27c   :  { %6753 = vst [vmem:[#allocation37_spill] sm:$0xff] %v6256_v16  ;;  %v6260_v25 = vpop.f32.mrb[165].mxu0 }
 0x27d   :  { %6755 = vst [vmem:[#allocation39_spill] sm:$0xff] %v6260_v25  ;;  %v6264_v15 = vpop.f32.mrb[166].mxu0  ;;  %v6292_v41 = vpop.permute.xlu1 %1735 }
 0x27e   :  { %6757 = vst [vmem:[#allocation41_spill] sm:$0xff] %v6264_v15  ;;  %v6269_v62 = vpop.f32.mrb[167].mxu0  ;;  %6765 = vst [vmem:[#allocation49_spill] sm:$0xff] %v6292_v41  ;;  %v4679_v41 = vld [vmem:[%s6667_s3 + $0x2ec] ss:$16 sps:$4 sm:$0xff]  }
 0x27f   :  { %6758 = vst [vmem:[#allocation42_spill] sm:$0xff] %v6269_v62 }
 0x280   :  { %3034 = vmatmul.mubr.bf16.gmra.mrb[4].mxu1 %v4672_v54  ;;  %v4676_v54 = vld [vmem:[%s6667_s3 + $0x2cc] ss:$16 sps:$4 sm:$0xff]  }
 0x281   :  { %3043 = vmatprep.mubr.bf16.mxu1 %v4673_v35  ;;  %v6294_v35 = vpop.permute.xlu0 %1730 }
 0x282   :  { %6766 = vst [vmem:[#allocation50_spill] sm:$0xff] %v6294_v35 }
 0x283   :  { %v6278_v3 = vpop.f32.mrb[168].mxu0 }
 0x284   :  { %6761 = vst [vmem:[#allocation45_spill] sm:$0xff] %v6278_v3  ;;  %v6280_v17 = vpop.f32.mrb[169].mxu0  ;;  %v6305_v3 = vpop.permute.xlu1 %1745 }
 0x285   :  { %6762 = vst [vmem:[#allocation46_spill] sm:$0xff] %v6280_v17  ;;  %v6282_v6 = vpop.f32.mrb[170].mxu0  ;;  %6770 = vst [vmem:[#allocation54_spill] sm:$0xff] %v6305_v3  ;;  %v4681_v3 = vld [vmem:[%s6667_s3 + $0x2e8] ss:$16 sps:$4 sm:$0xff]  }
 0x286   :  { %6763 = vst [vmem:[#allocation47_spill] sm:$0xff] %v6282_v6  ;;  %v6287_v62 = vpop.f32.mrb[171].mxu0 }
 0x287   :  { %6764 = vst [vmem:[#allocation48_spill] sm:$0xff] %v6287_v62  ;;  %v4678_v62 = vld [vmem:[%s6667_s3 + $0x2c8] ss:$16 sps:$4 sm:$0xff]  }
 0x288   :  { %3044 = vmatmul.mubr.bf16.gmra.mrb[8].mxu1 %v4675_v53  ;;  %v6312_v53 = vpop.permute.xlu0 %1740  ;;  %v6316_v35 = vpop.permute.xlu1 %1755 }
 0x289   :  { %3053 = vmatprep.mubr.bf16.mxu1 %v4676_v54  ;;  %6772 = vst [vmem:[#allocation56_spill] sm:$0xff] %v6312_v53  ;;  %6774 = vst [vmem:[#allocation58_spill] sm:$0xff] %v6316_v35 }
 0x28b   :  { %v6296_v46 = vpop.f32.mrb[172].mxu0 }
 0x28c   :  { %6767 = vst [vmem:[#allocation51_spill] sm:$0xff] %v6296_v46  ;;  %v6298_v17 = vpop.f32.mrb[173].mxu0 }
 0x28d   :  { %6768 = vst [vmem:[#allocation52_spill] sm:$0xff] %v6298_v17  ;;  %v6300_v6 = vpop.f32.mrb[174].mxu0  ;;  %v6320_v17 = vpop.permute.xlu0 %1750 }
 0x28e   :  { %6769 = vst [vmem:[#allocation53_spill] sm:$0xff] %v6300_v6  ;;  %v6307_v15 = vpop.f32.mrb[175].mxu0  ;;  %6776 = vst [vmem:[#allocation60_spill] sm:$0xff] %v6320_v17 }
 0x28f   :  { %6771 = vst [vmem:[#allocation55_spill] sm:$0xff] %v6307_v15 }
 0x290   :  { %3054 = vmatmul.mubr.bf16.gmra.mrb[12].mxu1 %v4678_v62  ;;  %v4682_v62 = vld [vmem:[%s6667_s3 + $0x30c] ss:$16 sps:$4 sm:$0xff]  }
 0x291   :  { %3063 = vmatprep.mubr.bf16.mxu1 %v4679_v41  ;;  %v6332_v41 = vpop.permute.xlu1 %1765  ;;  %v6334_v35 = vpop.permute.xlu0 %1760 }
 0x292   :  { %6779 = vst [vmem:[#allocation63_spill] sm:$0xff] %v6332_v41  ;;  %6780 = vst [vmem:[#allocation64_spill] sm:$0xff] %v6334_v35 }
 0x293   :  { %v6314_v54 = vpop.f32.mrb[176].mxu0 }
 0x294   :  { %6773 = vst [vmem:[#allocation57_spill] sm:$0xff] %v6314_v54  ;;  %v6318_v6 = vpop.f32.mrb[177].mxu0 }
 0x295   :  { %6775 = vst [vmem:[#allocation59_spill] sm:$0xff] %v6318_v6  ;;  %v6322_v46 = vpop.f32.mrb[178].mxu0  ;;  %v6350_v41 = vpop.permute.xlu1 %1775 }
 0x296   :  { %6777 = vst [vmem:[#allocation61_spill] sm:$0xff] %v6322_v46  ;;  %v6327_v15 = vpop.f32.mrb[179].mxu0  ;;  %6785 = vst [vmem:[#allocation69_spill] sm:$0xff] %v6350_v41  ;;  %v4688_v41 = vld [vmem:[%s6667_s3 + $0x34c] ss:$16 sps:$4 sm:$0xff]  }
 0x297   :  { %6778 = vst [vmem:[#allocation62_spill] sm:$0xff] %v6327_v15  ;;  %v4684_v15 = vld [vmem:[%s6667_s3 + $0x308] ss:$16 sps:$4 sm:$0xff]  }
 0x298   :  { %3064 = vmatmul.mubr.bf16.gmra.mrb[16].mxu1 %v4681_v3  ;;  %v4685_v3 = vld [vmem:[%s6667_s3 + $0x32c] ss:$16 sps:$4 sm:$0xff]  }
 0x299   :  { %3073 = vmatprep.mubr.bf16.mxu1 %v4682_v62  ;;  %v6352_v62 = vpop.permute.xlu0 %1770 }
 0x29a   :  { %6786 = vst [vmem:[#allocation70_spill] sm:$0xff] %v6352_v62 }
 0x29b   :  { %v6336_v53 = vpop.f32.mrb[180].mxu0 }
 0x29c   :  { %6781 = vst [vmem:[#allocation65_spill] sm:$0xff] %v6336_v53  ;;  %v6338_v17 = vpop.f32.mrb[181].mxu0  ;;  %v6363_v53 = vpop.permute.xlu1 %1785 }
 0x29d   :  { %6782 = vst [vmem:[#allocation66_spill] sm:$0xff] %v6338_v17  ;;  %v6340_v46 = vpop.f32.mrb[182].mxu0  ;;  %6790 = vst [vmem:[#allocation74_spill] sm:$0xff] %v6363_v53  ;;  %v4690_v53 = vld [vmem:[%s6667_s3 + $0x348] ss:$16 sps:$4 sm:$0xff]  }
 0x29e   :  { %6783 = vst [vmem:[#allocation67_spill] sm:$0xff] %v6340_v46  ;;  %v6345_v6 = vpop.f32.mrb[183].mxu0 }
 0x29f   :  { %6784 = vst [vmem:[#allocation68_spill] sm:$0xff] %v6345_v6  ;;  %v4687_v6 = vld [vmem:[%s6667_s3 + $0x328] ss:$16 sps:$4 sm:$0xff]  }
 0x2a0   :  { %3074 = vmatmul.mubr.bf16.gmra.mrb[20].mxu1 %v4684_v15  ;;  %v6370_v15 = vpop.permute.xlu0 %1780  ;;  %v6374_v62 = vpop.permute.xlu1 %1795 }
 0x2a1   :  { %3083 = vmatprep.mubr.bf16.mxu1 %v4685_v3  ;;  %6792 = vst [vmem:[#allocation76_spill] sm:$0xff] %v6370_v15  ;;  %6794 = vst [vmem:[#allocation78_spill] sm:$0xff] %v6374_v62 }
 0x2a3   :  { %v6354_v35 = vpop.f32.mrb[184].mxu0 }
 0x2a4   :  { %6787 = vst [vmem:[#allocation71_spill] sm:$0xff] %v6354_v35  ;;  %v6356_v17 = vpop.f32.mrb[185].mxu0 }
 0x2a5   :  { %6788 = vst [vmem:[#allocation72_spill] sm:$0xff] %v6356_v17  ;;  %v6358_v46 = vpop.f32.mrb[186].mxu0  ;;  %v6378_v17 = vpop.permute.xlu0 %1790 }
 0x2a6   :  { %6789 = vst [vmem:[#allocation73_spill] sm:$0xff] %v6358_v46  ;;  %v6365_v54 = vpop.f32.mrb[187].mxu0  ;;  %6796 = vst [vmem:[#allocation80_spill] sm:$0xff] %v6378_v17  ;;  %v2483_v17 = vadd.f32 %v6102_v52, %v5575_v59  ;;  %v2489_v52 = vadd.f32 %v6111_v18, %v5573_v47 }
 0x2a7   :  { %6791 = vst [vmem:[#allocation75_spill] sm:$0xff] %v6365_v54 }
 0x2a8   :  { %3084 = vmatmul.mubr.bf16.gmra.mrb[24].mxu1 %v4687_v6  ;;  %v4691_v6 = vld [vmem:[%s6667_s3 + $0x36c] ss:$16 sps:$4 sm:$0xff]  }
 0x2a9   :  { %3093 = vmatprep.mubr.bf16.mxu1 %v4688_v41  ;;  %v6390_v41 = vpop.permute.xlu1 %1805  ;;  %v6392_v62 = vpop.permute.xlu0 %1800 }
 0x2aa   :  { %6799 = vst [vmem:[#allocation83_spill] sm:$0xff] %v6390_v41  ;;  %6800 = vst [vmem:[#allocation84_spill] sm:$0xff] %v6392_v62 }
 0x2ab   :  { %v6372_v3 = vpop.f32.mrb[188].mxu0 }
 0x2ac   :  { %6793 = vst [vmem:[#allocation77_spill] sm:$0xff] %v6372_v3  ;;  %v6376_v46 = vpop.f32.mrb[189].mxu0  ;;  %v2487_v3 = vadd.f32 %v6106_v26, %v5573_v47  ;;  %v2493_v47 = vadd.f32 %v6116_v2, %v5595_v4  ;;  %v4696_v2 = vld [vmem:[%s6667_s3 + $0x388] ss:$16 sps:$4 sm:$0xff]  }
 0x2ad   :  { %6795 = vst [vmem:[#allocation79_spill] sm:$0xff] %v6376_v46  ;;  %v6380_v35 = vpop.f32.mrb[190].mxu0  ;;  %v3354_v16 = vpop.permute.xlu1 %3353 }
 0x2ae   :  { %6797 = vst [vmem:[#allocation81_spill] sm:$0xff] %v6380_v35  ;;  %v6385_v54 = vpop.f32.mrb[191].mxu0  ;;  %v2485_v35 = vadd.f32 %v6104_v7, %v5575_v59  ;;  %v4694_v7 = vld [vmem:[%s6667_s3 + $0x38c] ss:$16 sps:$4 sm:$0xff]   ;;  %v3349_v5 = vpop.permute.xlu0 %3348 }
 0x2af   :  { %6798 = vst [vmem:[#allocation82_spill] sm:$0xff] %v6385_v54 }
 0x2b0   :  { %3094 = vmatmul.mubr.bf16.gmra.mrb[28].mxu1 %v4690_v53 }
 0x2b1   :  { %3103 = vmatprep.mubr.bf16.mxu1 %v4691_v6  ;;  %v4693_v6 = vld [vmem:[%s6667_s3 + $0x368] ss:$16 sps:$4 sm:$0xff]  }
 0x2b3   :  { %v6396_v15 = vpop.f32.mrb[192].mxu0  ;;  %v2835_v46 = vpop.f32.mrb[52].mxu1 }
 0x2b4   :  { %6801 = vst [vmem:[#allocation85_spill] sm:$0xff] %v6396_v15  ;;  %v6400_v54 = vpop.f32.mrb[193].mxu0  ;;  %v2836_v53 = vadd.f32 %v2835_v46, %v2483_v17  ;;  %v2837_v21 = vpop.f32.mrb[53].mxu1 }
 0x2b5   :  { %6802 = vst [vmem:[#allocation86_spill] sm:$0xff] %v6400_v54  ;;  %v6404_v41 = vpop.f32.mrb[194].mxu0  ;;  %v2838_v62 = vadd.f32 %v2837_v21, %v2485_v35  ;;  %v2839_v15 = vpop.f32.mrb[54].mxu1 }
 0x2b6   :  { %6803 = vst [vmem:[#allocation87_spill] sm:$0xff] %v6404_v41  ;;  %v6411_v59 = vpop.f32.mrb[195].mxu0  ;;  %v3154_v26 = vmax.f32 %v2836_v53, 0.0  ;;  %v2840_v17 = vadd.f32 %v2839_v15, %v2487_v3  ;;  %v2841_v46 = vpop.f32.mrb[55].mxu1  ;;  %v2495_v53 = vadd.f32 %v6118_v23, %v5595_v4  ;;  %v2499_v4 = vadd.f32 %v6125_v37, %v5593_v60 }
 0x2b7   :  { %v3155_v54 = vmax.f32 %v2838_v62, 0.0  ;;  %v2842_v41 = vadd.f32 %v2841_v46, %v2489_v52 }
 0x2b8   :  { %v3156_v25 = vmax.f32 %v2840_v17, 0.0  ;;  %3104 = vmatmul.mubr.bf16.gmra.mrb[32].mxu1 %v4693_v6  ;;  %v3666_v21 = vmul.f32 %v3349_v5, %v3154_v26  ;;  %v2497_v6 = vadd.f32 %v6120_v34, %v5593_v60  ;;  %v4697_v34 = vld [vmem:[%s6667_s3 + $0x3ac] ss:$16 sps:$4 sm:$0xff]  }
 0x2b9   :  { %v3157_v44 = vmax.f32 %v2842_v41, 0.0  ;;  %3113 = vmatprep.mubr.bf16.mxu1 %v4694_v7  ;;  %v3667_v15 = vmul.f32 %v3349_v5, %v3155_v54 }
 0x2ba   :  { %v3668_v18 = vmul.f32 %v3354_v16, %v3156_v25 }
 0x2bb   :  { %v6418_v35 = vpop.f32.mrb[196].mxu0  ;;  %v3669_v3 = vmul.f32 %v3354_v16, %v3157_v44  ;;  %v2845_v62 = vpop.f32.mrb[56].mxu1 }
 0x2bc   :  { %v6422_v52 = vpop.f32.mrb[197].mxu0  ;;  %v3794_v41 = vadd.f32 %v3668_v18, %v3666_v21  ;;  %v2846_v7 = vadd.f32 %v2845_v62, %v2493_v47  ;;  %v2847_v17 = vpop.f32.mrb[57].mxu1 }
 0x2bd   :  { %6804 = vst [vmem:[#allocation88_spill] sm:$0xff] %v6422_v52  ;;  %v6426_v46 = vpop.f32.mrb[198].mxu0  ;;  %v3863_v5 = vadd.f32 %v3669_v3, %v3667_v15  ;;  %v2848_v23 = vadd.f32 %v2847_v17, %v2495_v53  ;;  %v2849_v44 = vpop.f32.mrb[58].mxu1  ;;  %v2503_v53 = vadd.f32 %v6130_v9, %v5609_v24  ;;  %v4699_v9 = vld [vmem:[%s6667_s3 + $0x3a8] ss:$16 sps:$4 sm:$0xff]  }
 0x2be   :  { %6805 = vst [vmem:[#allocation89_spill] sm:$0xff] %v6426_v46  ;;  %v6433_v25 = vpop.f32.mrb[199].mxu0  ;;  %v3158_v16 = vmax.f32 %v2846_v7, 0.0  ;;  %v2850_v54 = vadd.f32 %v2849_v44, %v2497_v6  ;;  %v2851_v26 = vpop.f32.mrb[59].mxu1  ;;  %v2505_v6 = vadd.f32 %v6132_v33, %v5609_v24  ;;  %v2509_v24 = vadd.f32 %v6139_v31, %v5606_v40 }
 0x2bf   :  { %v3359_v47 = vpop.permute.xlu0 %3358  ;;  %v3159_v21 = vmax.f32 %v2848_v23, 0.0  ;;  %v2852_v18 = vadd.f32 %v2851_v26, %v2499_v4  ;;  %v3364_v52 = vpop.permute.xlu1 %3363 }
 0x2c0   :  { %v3670_v62 = vmul.f32 %v3359_v47, %v3158_v16  ;;  %v3160_v46 = vmax.f32 %v2850_v54, 0.0  ;;  %3114 = vmatmul.mubr.bf16.gmra.mrb[36].mxu1 %v4696_v2  ;;  %v2507_v2 = vadd.f32 %v6134_v57, %v5606_v40  ;;  %v4700_v57 = vld [vmem:[%s6667_s3 + $0x3cc] ss:$16 sps:$4 sm:$0xff]  }
 0x2c1   :  { %v3671_v60 = vmul.f32 %v3359_v47, %v3159_v21  ;;  %v3161_v37 = vmax.f32 %v2852_v18, 0.0  ;;  %3123 = vmatprep.mubr.bf16.mxu1 %v4697_v34 }
 0x2c2   :  { %v3795_v15 = vadd.f32 %v3794_v41, %v3670_v62  ;;  %v3672_v3 = vmul.f32 %v3364_v52, %v3160_v46 }
 0x2c3   :  { %v6440_v17 = vpop.f32.mrb[200].mxu0  ;;  %v3864_v7 = vadd.f32 %v3863_v5, %v3671_v60  ;;  %v3673_v23 = vmul.f32 %v3364_v52, %v3161_v37  ;;  %v2855_v4 = vpop.f32.mrb[60].mxu1 }
 0x2c4   :  { %v6444_v44 = vpop.f32.mrb[201].mxu0  ;;  %v3796_v16 = vadd.f32 %v3795_v15, %v3672_v3  ;;  %v2856_v34 = vadd.f32 %v2855_v4, %v2503_v53  ;;  %v2857_v54 = vpop.f32.mrb[61].mxu1  ;;  %v2513_v3 = vadd.f32 %v6144_v63, %v5627_v36  ;;  %v2519_v63 = vadd.f32 %v6153_v49, %v5624_v27 }
 0x2c5   :  { %v6448_v26 = vpop.f32.mrb[202].mxu0  ;;  %v3865_v33 = vadd.f32 %v3864_v7, %v3673_v23  ;;  %v2858_v52 = vadd.f32 %v2857_v54, %v2505_v6  ;;  %v2859_v41 = vpop.f32.mrb[62].mxu1  ;;  %v2515_v23 = vadd.f32 %v6146_v38, %v5627_v36  ;;  %v2517_v54 = vadd.f32 %v6148_v29, %v5624_v27  ;;  %v4703_v36 = vld [vmem:[%s6667_s3 + $0x3ec] ss:$16 sps:$4 sm:$0xff]  }
 0x2c6   :  { %v6455_v46 = vpop.f32.mrb[203].mxu0  ;;  %v3162_v5 = vmax.f32 %v2856_v34, 0.0  ;;  %v2860_v47 = vadd.f32 %v2859_v41, %v2507_v2  ;;  %v2861_v21 = vpop.f32.mrb[63].mxu1  ;;  %v4702_v41 = vld [vmem:[%s6667_s3 + $0x3c8] ss:$16 sps:$4 sm:$0xff]   ;;  %v2523_v27 = vadd.f32 %v6162_v48, %v5639_v55  ;;  %v2529_v48 = vadd.f32 %v6171_v11, %v5637_v42 }
 0x2c7   :  { %v3369_v18 = vpop.permute.xlu0 %3368  ;;  %v3163_v62 = vmax.f32 %v2858_v52, 0.0  ;;  %v2862_v60 = vadd.f32 %v2861_v21, %v2509_v24  ;;  %v3374_v15 = vpop.permute.xlu1 %3373  ;;  %v2535_v11 = vadd.f32 %v6182_v20, %v5659_v50 }
 0x2c8   :  { %v3674_v37 = vmul.f32 %v3369_v18, %v3162_v5  ;;  %v3164_v53 = vmax.f32 %v2860_v47, 0.0  ;;  %3124 = vmatmul.mubr.bf16.gmra.mrb[40].mxu1 %v4699_v9 }
 0x2c9   :  { %v3675_v40 = vmul.f32 %v3369_v18, %v3163_v62  ;;  %v3165_v31 = vmax.f32 %v2862_v60, 0.0  ;;  %3133 = vmatprep.mubr.bf16.mxu1 %v4700_v57 }
 0x2ca   :  { %v3797_v6 = vadd.f32 %v3796_v16, %v3674_v37  ;;  %v3676_v7 = vmul.f32 %v3374_v15, %v3164_v53 }
 0x2cb   :  { %v3866_v4 = vadd.f32 %v3865_v33, %v3675_v40  ;;  %v3677_v2 = vmul.f32 %v3374_v15, %v3165_v31  ;;  %v2865_v34 = vpop.f32.mrb[64].mxu1  ;;  %v3379_v47 = vpop.permute.xlu0 %3378  ;;  %v2525_v31 = vadd.f32 %v6164_v12, %v5639_v55 }
 0x2cc   :  { %v3798_v24 = vadd.f32 %v3797_v6, %v3676_v7  ;;  %v2866_v9 = vadd.f32 %v2865_v34, %v2513_v3  ;;  %v2867_v52 = vpop.f32.mrb[65].mxu1  ;;  %v3384_v37 = vpop.permute.xlu1 %3383 }
 0x2cd   :  { %v3867_v16 = vadd.f32 %v3866_v4, %v3677_v2  ;;  %v2868_v57 = vadd.f32 %v2867_v52, %v2515_v23  ;;  %v2869_v5 = vpop.f32.mrb[66].mxu1  ;;  %v2527_v23 = vadd.f32 %v6166_v61, %v5637_v42 }
 0x2ce   :  { %v3166_v38 = vmax.f32 %v2866_v9, 0.0  ;;  %v2870_v33 = vadd.f32 %v2869_v5, %v2517_v54  ;;  %v2871_v29 = vpop.f32.mrb[67].mxu1  ;;  %v4705_v54 = vld [vmem:[%s6667_s3 + $0x3e8] ss:$16 sps:$4 sm:$0xff]  }
 0x2cf   :  { %v3167_v21 = vmax.f32 %v2868_v57, 0.0  ;;  %v2872_v18 = vadd.f32 %v2871_v29, %v2519_v63  ;;  %v3389_v63 = vpop.permute.xlu0 %3388  ;;  %v2533_v29 = vadd.f32 %v6180_v58, %v5659_v50 }
 0x2d0   :  { %v3678_v62 = vmul.f32 %v3379_v47, %v3166_v38  ;;  %v3168_v60 = vmax.f32 %v2870_v33, 0.0  ;;  %3134 = vmatmul.mubr.bf16.gmra.mrb[44].mxu1 %v4702_v41 }
 0x2d1   :  { %v3679_v53 = vmul.f32 %v3379_v47, %v3167_v21  ;;  %v3169_v15 = vmax.f32 %v2872_v18, 0.0  ;;  %3143 = vmatprep.mubr.bf16.mxu1 %v4703_v36  ;;  %v3394_v36 = vpop.permute.xlu1 %3393 }
 0x2d2   :  { %v3799_v49 = vadd.f32 %v3798_v24, %v3678_v62  ;;  %v3680_v40 = vmul.f32 %v3384_v37, %v3168_v60  ;;  %v2537_v60 = vadd.f32 %v6184_v28, %v5657_v0 }
 0x2d3   :  { %v3868_v3 = vadd.f32 %v3867_v16, %v3679_v53  ;;  %v3681_v6 = vmul.f32 %v3384_v37, %v3169_v15  ;;  %v2875_v7 = vpop.f32.mrb[68].mxu1 }
 0x2d4   :  { %v3800_v4 = vadd.f32 %v3799_v49, %v3680_v40  ;;  %v2876_v2 = vadd.f32 %v2875_v7, %v2523_v27  ;;  %v2877_v34 = vpop.f32.mrb[69].mxu1  ;;  %v2539_v27 = vadd.f32 %v6191_v43, %v5657_v0  ;;  %v3399_v7 = vpop.permute.xlu0 %3398  ;;  %v2545_v0 = vadd.f32 %v6202_v51, %v5673_v22 }
 0x2d5   :  { %v3869_v24 = vadd.f32 %v3868_v3, %v3681_v6  ;;  %v2878_v9 = vadd.f32 %v2877_v34, %v2525_v31  ;;  %v2879_v52 = vpop.f32.mrb[70].mxu1 }
 0x2d6   :  { %v3170_v55 = vmax.f32 %v2876_v2, 0.0  ;;  %v2880_v12 = vadd.f32 %v2879_v52, %v2527_v23  ;;  %v2881_v41 = vpop.f32.mrb[71].mxu1  ;;  %v3404_v2 = vpop.permute.xlu1 %3403 }
 0x2d7   :  { %v3171_v16 = vmax.f32 %v2878_v9, 0.0  ;;  %v2882_v57 = vadd.f32 %v2881_v41, %v2529_v48 }
 0x2d8   :  { %v3682_v61 = vmul.f32 %v3389_v63, %v3170_v55  ;;  %v3172_v5 = vmax.f32 %v2880_v12, 0.0  ;;  %3144 = vmatmul.mubr.bf16.gmra.mrb[48].mxu1 %v4705_v54  ;;  %v2543_v54 = vadd.f32 %v6198_v10, %v5673_v22  ;;  %v2547_v55 = vadd.f32 %v6206_v14, %v5670_v56 }
 0x2d9   :  { %v3683_v38 = vmul.f32 %v3389_v63, %v3171_v16  ;;  %v3173_v33 = vmax.f32 %v2882_v57, 0.0  ;;  %v2549_v16 = vadd.f32 %v6211_v1, %v5670_v56 }
 0x2da   :  { %v3801_v47 = vadd.f32 %v3800_v4, %v3682_v61  ;;  %v3684_v42 = vmul.f32 %v3394_v36, %v3172_v5 }
 0x2db   :  { %v3870_v21 = vadd.f32 %v3869_v24, %v3683_v38  ;;  %v3685_v18 = vmul.f32 %v3394_v36, %v3173_v33  ;;  %v2885_v62 = vpop.f32.mrb[72].mxu1  ;;  %v3409_v33 = vpop.permute.xlu0 %3408 }
 0x2dc   :  { %v3802_v37 = vadd.f32 %v3801_v47, %v3684_v42  ;;  %v2886_v53 = vadd.f32 %v2885_v62, %v2533_v29  ;;  %v2887_v15 = vpop.f32.mrb[73].mxu1  ;;  %v3414_v42 = vpop.permute.xlu1 %3413 }
 0x2dd   :  { %v3871_v49 = vadd.f32 %v3870_v21, %v3685_v18  ;;  %v2888_v40 = vadd.f32 %v2887_v15, %v2535_v11  ;;  %v2889_v58 = vpop.f32.mrb[74].mxu1  ;;  %v6806_v21 = vld [vmem:[#allocation7_spill] sm:$0xff]  ;;  %v6807_v15 = vld [vmem:[#allocation6_spill] sm:$0xff] }
 0x2de   :  { %v3174_v31 = vmax.f32 %v2886_v53, 0.0  ;;  %v2890_v3 = vadd.f32 %v2889_v58, %v2537_v60  ;;  %v2891_v6 = vpop.f32.mrb[75].mxu1  ;;  %v2553_v18 = vadd.f32 %v6220_v13, %v6806_v21  ;;  %v2555_v56 = vadd.f32 %v6222_v39, %v6806_v21  ;;  %v6811_v21 = vld [vmem:[#allocation11_spill] sm:$0xff] }
 0x2df   :  { %v3175_v50 = vmax.f32 %v2888_v40, 0.0  ;;  %v2892_v20 = vadd.f32 %v2891_v6, %v2539_v27  ;;  %v2557_v27 = vadd.f32 %v6224_v32, %v6807_v15 }
 0x2e0   :  { %v3686_v23 = vmul.f32 %v3399_v7, %v3174_v31  ;;  %v3176_v4 = vmax.f32 %v2890_v3, 0.0  ;;  %v2559_v31 = vadd.f32 %v6229_v45, %v6807_v15 }
 0x2e1   :  { %v3687_v34 = vmul.f32 %v3399_v7, %v3175_v50  ;;  %v3177_v28 = vmax.f32 %v2892_v20, 0.0 }
 0x2e2   :  { %v3803_v48 = vadd.f32 %v3802_v37, %v3686_v23  ;;  %v3688_v24 = vmul.f32 %v3404_v2, %v3176_v4  ;;  %v3419_v23 = vpop.permute.xlu0 %3418 }
 0x2e3   :  { %v3872_v43 = vadd.f32 %v3871_v49, %v3687_v34  ;;  %v3689_v9 = vmul.f32 %v3404_v2, %v3177_v28  ;;  %v2895_v52 = vpop.f32.mrb[76].mxu1  ;;  %v3424_v28 = vpop.permute.xlu1 %3423 }
 0x2e4   :  { %v3804_v12 = vadd.f32 %v3803_v48, %v3688_v24  ;;  %v2896_v41 = vadd.f32 %v2895_v52, %v2543_v54  ;;  %v2897_v63 = vpop.f32.mrb[77].mxu1  ;;  %v6808_v48 = vld [vmem:[#allocation9_spill] sm:$0xff] }
 0x2e5   :  { %v3873_v57 = vadd.f32 %v3872_v43, %v3689_v9  ;;  %v2898_v61 = vadd.f32 %v2897_v63, %v2545_v0  ;;  %v2899_v10 = vpop.f32.mrb[78].mxu1  ;;  %v2563_v24 = vadd.f32 %v6238_v8, %v6808_v48  ;;  %v2565_v45 = vadd.f32 %v6240_v30, %v6808_v48 }
 0x2e6   :  { %v3178_v5 = vmax.f32 %v2896_v41, 0.0  ;;  %v2900_v36 = vadd.f32 %v2899_v10, %v2547_v55  ;;  %v2901_v38 = vpop.f32.mrb[79].mxu1 }
 0x2e7   :  { %v3179_v22 = vmax.f32 %v2898_v61, 0.0  ;;  %v2902_v51 = vadd.f32 %v2901_v38, %v2549_v16  ;;  %v6810_v61 = vld [vmem:[#allocation35_spill] sm:$0xff] }
 0x2e8   :  { %v3690_v29 = vmul.f32 %v3409_v33, %v3178_v5  ;;  %v3180_v47 = vmax.f32 %v2900_v36, 0.0 }
 0x2e9   :  { %v3691_v11 = vmul.f32 %v3409_v33, %v3179_v22  ;;  %v3181_v14 = vmax.f32 %v2902_v51, 0.0  ;;  %v3429_v51 = vpop.permute.xlu0 %3428 }
 0x2ea   :  { %v3805_v62 = vadd.f32 %v3804_v12, %v3690_v29  ;;  %v3692_v60 = vmul.f32 %v3414_v42, %v3180_v47  ;;  %v6809_v12 = vld [vmem:[#allocation8_spill] sm:$0xff] }
 0x2eb   :  { %v3874_v1 = vadd.f32 %v3873_v57, %v3691_v11  ;;  %v3693_v37 = vmul.f32 %v3414_v42, %v3181_v14  ;;  %v2905_v53 = vpop.f32.mrb[80].mxu1  ;;  %v2567_v41 = vadd.f32 %v6242_v19, %v6809_v12  ;;  %v2569_v10 = vadd.f32 %v6810_v61, %v6809_v12  ;;  %v3434_v11 = vpop.permute.xlu1 %3433 }
 0x2ec   :  { %v3806_v49 = vadd.f32 %v3805_v62, %v3692_v60  ;;  %v2906_v40 = vadd.f32 %v2905_v53, %v2553_v18  ;;  %v2907_v58 = vpop.f32.mrb[81].mxu1  ;;  %v6812_v18 = vld [vmem:[#allocation37_spill] sm:$0xff] }
 0x2ed   :  { %v3875_v3 = vadd.f32 %v3874_v1, %v3693_v37  ;;  %v2908_v6 = vadd.f32 %v2907_v58, %v2555_v56  ;;  %v2909_v13 = vpop.f32.mrb[82].mxu1  ;;  %v2573_v62 = vadd.f32 %v6812_v18, %v6811_v21  ;;  %v6813_v1 = vld [vmem:[#allocation39_spill] sm:$0xff] }
 0x2ee   :  { %v3182_v7 = vmax.f32 %v2906_v40, 0.0  ;;  %v2910_v50 = vadd.f32 %v2909_v13, %v2557_v27  ;;  %v2911_v20 = vpop.f32.mrb[83].mxu1  ;;  %v2575_v37 = vadd.f32 %v6813_v1, %v6811_v21  ;;  %v6815_v40 = vld [vmem:[#allocation41_spill] sm:$0xff]  ;;  %v6816_v13 = vld [vmem:[#allocation42_spill] sm:$0xff] }
 0x2ef   :  { %v3183_v39 = vmax.f32 %v2908_v6, 0.0  ;;  %v2912_v4 = vadd.f32 %v2911_v20, %v2559_v31 }
 0x2f0   :  { %v3694_v2 = vmul.f32 %v3419_v23, %v3182_v7  ;;  %v3184_v34 = vmax.f32 %v2910_v50, 0.0 }
 0x2f1   :  { %v3695_v54 = vmul.f32 %v3419_v23, %v3183_v39  ;;  %v3185_v32 = vmax.f32 %v2912_v4, 0.0 }
 0x2f2   :  { %v3807_v0 = vadd.f32 %v3806_v49, %v3694_v2  ;;  %v3696_v43 = vmul.f32 %v3424_v28, %v3184_v34  ;;  %v6814_v49 = vld [vmem:[#allocation10_spill] sm:$0xff]  ;;  %v3439_v34 = vpop.permute.xlu0 %3438 }
 0x2f3   :  { %v3876_v9 = vadd.f32 %v3875_v3, %v3695_v54  ;;  %v3697_v52 = vmul.f32 %v3424_v28, %v3185_v32  ;;  %v2915_v55 = vpop.f32.mrb[84].mxu1  ;;  %v2577_v58 = vadd.f32 %v6815_v40, %v6814_v49  ;;  %v2579_v7 = vadd.f32 %v6816_v13, %v6814_v49 }
 0x2f4   :  { %v3808_v63 = vadd.f32 %v3807_v0, %v3696_v43  ;;  %v2916_v16 = vadd.f32 %v2915_v55, %v2563_v24  ;;  %v2917_v57 = vpop.f32.mrb[85].mxu1  ;;  %v3444_v24 = vpop.permute.xlu1 %3443 }
 0x2f5   :  { %v3877_v5 = vadd.f32 %v3876_v9, %v3697_v52  ;;  %v2918_v36 = vadd.f32 %v2917_v57, %v2565_v45  ;;  %v2919_v8 = vpop.f32.mrb[86].mxu1  ;;  %v6817_v45 = vld [vmem:[#allocation13_spill] sm:$0xff] }
 0x2f6   :  { %v3186_v38 = vmax.f32 %v2916_v16, 0.0  ;;  %v2920_v33 = vadd.f32 %v2919_v8, %v2567_v41  ;;  %v2921_v22 = vpop.f32.mrb[87].mxu1  ;;  %v6818_v9 = vld [vmem:[#allocation45_spill] sm:$0xff]  ;;  %v6819_v41 = vld [vmem:[#allocation46_spill] sm:$0xff] }
 0x2f7   :  { %v3187_v30 = vmax.f32 %v2918_v36, 0.0  ;;  %v2922_v29 = vadd.f32 %v2921_v22, %v2569_v10  ;;  %v2583_v52 = vadd.f32 %v6818_v9, %v6817_v45  ;;  %v6820_v10 = vld [vmem:[#allocation12_spill] sm:$0xff] }
 0x2f8   :  { %v3698_v47 = vmul.f32 %v3429_v51, %v3186_v38  ;;  %v3188_v42 = vmax.f32 %v2920_v33, 0.0  ;;  %v6822_v22 = vld [vmem:[#allocation48_spill] sm:$0xff] }
 0x2f9   :  { %v3699_v14 = vmul.f32 %v3429_v51, %v3187_v30  ;;  %v3189_v19 = vmax.f32 %v2922_v29, 0.0  ;;  %v2589_v51 = vadd.f32 %v6822_v22, %v6820_v10 }
 0x2fa   :  { %v3809_v60 = vadd.f32 %v3808_v63, %v3698_v47  ;;  %v3700_v56 = vmul.f32 %v3434_v11, %v3188_v42  ;;  %v2585_v63 = vadd.f32 %v6819_v41, %v6817_v45 }
 0x2fb   :  { %v3878_v53 = vadd.f32 %v3877_v5, %v3699_v14  ;;  %v3701_v15 = vmul.f32 %v3434_v11, %v3189_v19  ;;  %v2925_v27 = vpop.f32.mrb[88].mxu1  ;;  %v6821_v5 = vld [vmem:[#allocation47_spill] sm:$0xff]  ;;  %v3449_v19 = vpop.permute.xlu0 %3448 }
 0x2fc   :  { %v3810_v31 = vadd.f32 %v3809_v60, %v3700_v56  ;;  %v2926_v3 = vadd.f32 %v2925_v27, %v2573_v62  ;;  %v2927_v6 = vpop.f32.mrb[89].mxu1  ;;  %v2587_v36 = vadd.f32 %v6821_v5, %v6820_v10  ;;  %v3454_v56 = vpop.permute.xlu1 %3453 }
 0x2fd   :  { %v3879_v50 = vadd.f32 %v3878_v53, %v3701_v15  ;;  %v2928_v20 = vadd.f32 %v2927_v6, %v2575_v37  ;;  %v2929_v23 = vpop.f32.mrb[90].mxu1  ;;  %v6823_v53 = vld [vmem:[#allocation15_spill] sm:$0xff] }
 0x2fe   :  { %v3190_v39 = vmax.f32 %v2926_v3, 0.0  ;;  %v2930_v4 = vadd.f32 %v2929_v23, %v2577_v58  ;;  %v2931_v2 = vpop.f32.mrb[91].mxu1  ;;  %v6824_v15 = vld [vmem:[#allocation51_spill] sm:$0xff]  ;;  %v6825_v58 = vld [vmem:[#allocation52_spill] sm:$0xff] }
 0x2ff   :  { %v3191_v28 = vmax.f32 %v2928_v20, 0.0  ;;  %v2932_v54 = vadd.f32 %v2931_v2, %v2579_v7  ;;  %v2593_v27 = vadd.f32 %v6824_v15, %v6823_v53  ;;  %v6826_v7 = vld [vmem:[#allocation14_spill] sm:$0xff]  ;;  %v6828_v2 = vld [vmem:[#allocation55_spill] sm:$0xff] }
 0x300   :  { %v3702_v32 = vmul.f32 %v3439_v34, %v3190_v39  ;;  %v3192_v48 = vmax.f32 %v2930_v4, 0.0 }
 0x301   :  { %v3703_v0 = vmul.f32 %v3439_v34, %v3191_v28  ;;  %v3193_v43 = vmax.f32 %v2932_v54, 0.0  ;;  %v2599_v34 = vadd.f32 %v6828_v2, %v6826_v7 }
 0x302   :  { %v3811_v55 = vadd.f32 %v3810_v31, %v3702_v32  ;;  %v3704_v12 = vmul.f32 %v3444_v24, %v3192_v48  ;;  %v2595_v31 = vadd.f32 %v6825_v58, %v6823_v53 }
 0x303   :  { %v3880_v16 = vadd.f32 %v3879_v50, %v3703_v0  ;;  %v3705_v57 = vmul.f32 %v3444_v24, %v3193_v43  ;;  %v2935_v61 = vpop.f32.mrb[92].mxu1  ;;  %v6827_v50 = vld [vmem:[#allocation53_spill] sm:$0xff]  ;;  %v3459_v43 = vpop.permute.xlu0 %3458 }
 0x304   :  { %v3812_v8 = vadd.f32 %v3811_v55, %v3704_v12  ;;  %v2936_v38 = vadd.f32 %v2935_v61, %v2583_v52  ;;  %v2937_v33 = vpop.f32.mrb[93].mxu1  ;;  %v2597_v20 = vadd.f32 %v6827_v50, %v6826_v7  ;;  %v3464_v12 = vpop.permute.xlu1 %3463 }
 0x305   :  { %v3881_v30 = vadd.f32 %v3880_v16, %v3705_v57  ;;  %v2938_v29 = vadd.f32 %v2937_v33, %v2585_v63  ;;  %v2939_v47 = vpop.f32.mrb[94].mxu1  ;;  %v6829_v16 = vld [vmem:[#allocation17_spill] sm:$0xff] }
 0x306   :  { %v3194_v42 = vmax.f32 %v2936_v38, 0.0  ;;  %v2940_v11 = vadd.f32 %v2939_v47, %v2587_v36  ;;  %v2941_v14 = vpop.f32.mrb[95].mxu1  ;;  %v6830_v57 = vld [vmem:[#allocation57_spill] sm:$0xff]  ;;  %v6831_v36 = vld [vmem:[#allocation59_spill] sm:$0xff] }
 0x307   :  { %v3195_v21 = vmax.f32 %v2938_v29, 0.0  ;;  %v2942_v18 = vadd.f32 %v2941_v14, %v2589_v51  ;;  %v2603_v61 = vadd.f32 %v6830_v57, %v6829_v16  ;;  %v6832_v51 = vld [vmem:[#allocation16_spill] sm:$0xff]  ;;  %v6834_v14 = vld [vmem:[#allocation62_spill] sm:$0xff] }
 0x308   :  { %v3706_v62 = vmul.f32 %v3449_v19, %v3194_v42  ;;  %v3196_v60 = vmax.f32 %v2940_v11, 0.0 }
 0x309   :  { %v3707_v1 = vmul.f32 %v3449_v19, %v3195_v21  ;;  %v3197_v37 = vmax.f32 %v2942_v18, 0.0  ;;  %v2609_v19 = vadd.f32 %v6834_v14, %v6832_v51 }
 0x30a   :  { %v3813_v49 = vadd.f32 %v3812_v8, %v3706_v62  ;;  %v3708_v40 = vmul.f32 %v3454_v56, %v3196_v60  ;;  %v2605_v8 = vadd.f32 %v6831_v36, %v6829_v16 }
 0x30b   :  { %v3882_v3 = vadd.f32 %v3881_v30, %v3707_v1  ;;  %v3709_v6 = vmul.f32 %v3454_v56, %v3197_v37  ;;  %v2945_v13 = vpop.f32.mrb[96].mxu1  ;;  %v6833_v30 = vld [vmem:[#allocation61_spill] sm:$0xff]  ;;  %v3469_v37 = vpop.permute.xlu0 %3468 }
 0x30c   :  { %v3814_v23 = vadd.f32 %v3813_v49, %v3708_v40  ;;  %v2946_v39 = vadd.f32 %v2945_v13, %v2593_v27  ;;  %v2947_v4 = vpop.f32.mrb[97].mxu1  ;;  %v2607_v29 = vadd.f32 %v6833_v30, %v6832_v51  ;;  %v3474_v40 = vpop.permute.xlu1 %3473 }
 0x30d   :  { %v3883_v28 = vadd.f32 %v3882_v3, %v3709_v6  ;;  %v2948_v54 = vadd.f32 %v2947_v4, %v2595_v31  ;;  %v2949_v32 = vpop.f32.mrb[98].mxu1  ;;  %v6835_v3 = vld [vmem:[#allocation19_spill] sm:$0xff]  ;;  %v6836_v6 = vld [vmem:[#allocation65_spill] sm:$0xff] }
 0x30e   :  { %v3198_v48 = vmax.f32 %v2946_v39, 0.0  ;;  %v2950_v24 = vadd.f32 %v2949_v32, %v2597_v20  ;;  %v2951_v0 = vpop.f32.mrb[99].mxu1  ;;  %v2613_v13 = vadd.f32 %v6836_v6, %v6835_v3  ;;  %v6837_v20 = vld [vmem:[#allocation66_spill] sm:$0xff] }
 0x30f   :  { %v3199_v45 = vmax.f32 %v2948_v54, 0.0  ;;  %v2952_v9 = vadd.f32 %v2951_v0, %v2599_v34  ;;  %v6838_v34 = vld [vmem:[#allocation18_spill] sm:$0xff]  ;;  %v6840_v0 = vld [vmem:[#allocation68_spill] sm:$0xff] }
 0x310   :  { %v3710_v52 = vmul.f32 %v3459_v43, %v3198_v48  ;;  %v3200_v55 = vmax.f32 %v2950_v24, 0.0 }
 0x311   :  { %v3711_v41 = vmul.f32 %v3459_v43, %v3199_v45  ;;  %v3201_v63 = vmax.f32 %v2952_v9, 0.0  ;;  %v2619_v43 = vadd.f32 %v6840_v0, %v6838_v34 }
 0x312   :  { %v3815_v10 = vadd.f32 %v3814_v23, %v3710_v52  ;;  %v3712_v5 = vmul.f32 %v3464_v12, %v3200_v55  ;;  %v2615_v23 = vadd.f32 %v6837_v20, %v6835_v3 }
 0x313   :  { %v3884_v38 = vadd.f32 %v3883_v28, %v3711_v41  ;;  %v3713_v33 = vmul.f32 %v3464_v12, %v3201_v63  ;;  %v2955_v22 = vpop.f32.mrb[100].mxu1  ;;  %v6839_v28 = vld [vmem:[#allocation67_spill] sm:$0xff]  ;;  %v3479_v63 = vpop.permute.xlu0 %3478 }
 0x314   :  { %v3816_v47 = vadd.f32 %v3815_v10, %v3712_v5  ;;  %v2956_v42 = vadd.f32 %v2955_v22, %v2603_v61  ;;  %v2957_v11 = vpop.f32.mrb[101].mxu1  ;;  %v2617_v54 = vadd.f32 %v6839_v28, %v6838_v34  ;;  %v3484_v5 = vpop.permute.xlu1 %3483 }
 0x315   :  { %v3885_v21 = vadd.f32 %v3884_v38, %v3713_v33  ;;  %v2958_v18 = vadd.f32 %v2957_v11, %v2605_v8  ;;  %v2959_v62 = vpop.f32.mrb[102].mxu1  ;;  %v6841_v38 = vld [vmem:[#allocation21_spill] sm:$0xff]  ;;  %v6842_v33 = vld [vmem:[#allocation71_spill] sm:$0xff] }
 0x316   :  { %v3202_v60 = vmax.f32 %v2956_v42, 0.0  ;;  %v2960_v56 = vadd.f32 %v2959_v62, %v2607_v29  ;;  %v2961_v1 = vpop.f32.mrb[103].mxu1  ;;  %v2623_v22 = vadd.f32 %v6842_v33, %v6841_v38  ;;  %v6843_v29 = vld [vmem:[#allocation72_spill] sm:$0xff] }
 0x317   :  { %v3203_v53 = vmax.f32 %v2958_v18, 0.0  ;;  %v2962_v15 = vadd.f32 %v2961_v1, %v2609_v19  ;;  %v6844_v19 = vld [vmem:[#allocation20_spill] sm:$0xff]  ;;  %v6846_v1 = vld [vmem:[#allocation75_spill] sm:$0xff] }
 0x318   :  { %v3714_v27 = vmul.f32 %v3469_v37, %v3202_v60  ;;  %v3204_v49 = vmax.f32 %v2960_v56, 0.0 }
 0x319   :  { %v3715_v58 = vmul.f32 %v3469_v37, %v3203_v53  ;;  %v3205_v31 = vmax.f32 %v2962_v15, 0.0  ;;  %v2629_v37 = vadd.f32 %v6846_v1, %v6844_v19 }
 0x31a   :  { %v3817_v7 = vadd.f32 %v3816_v47, %v3714_v27  ;;  %v3716_v50 = vmul.f32 %v3474_v40, %v3204_v49  ;;  %v2625_v47 = vadd.f32 %v6843_v29, %v6841_v38 }
 0x31b   :  { %v3886_v39 = vadd.f32 %v3885_v21, %v3715_v58  ;;  %v3717_v4 = vmul.f32 %v3474_v40, %v3205_v31  ;;  %v2965_v2 = vpop.f32.mrb[104].mxu1  ;;  %v6845_v21 = vld [vmem:[#allocation73_spill] sm:$0xff]  ;;  %v3489_v31 = vpop.permute.xlu0 %3488 }
 0x31c   :  { %v3818_v32 = vadd.f32 %v3817_v7, %v3716_v50  ;;  %v2966_v48 = vadd.f32 %v2965_v2, %v2613_v13  ;;  %v2967_v24 = vpop.f32.mrb[105].mxu1  ;;  %v2627_v18 = vadd.f32 %v6845_v21, %v6844_v19  ;;  %v3494_v50 = vpop.permute.xlu1 %3493 }
 0x31d   :  { %v3887_v45 = vadd.f32 %v3886_v39, %v3717_v4  ;;  %v2968_v9 = vadd.f32 %v2967_v24, %v2615_v23  ;;  %v2969_v52 = vpop.f32.mrb[106].mxu1  ;;  %v6847_v39 = vld [vmem:[#allocation23_spill] sm:$0xff]  ;;  %v6848_v4 = vld [vmem:[#allocation77_spill] sm:$0xff] }
 0x31e   :  { %v3206_v55 = vmax.f32 %v2966_v48, 0.0  ;;  %v2970_v12 = vadd.f32 %v2969_v52, %v2617_v54  ;;  %v2971_v41 = vpop.f32.mrb[107].mxu1  ;;  %v2633_v2 = vadd.f32 %v6848_v4, %v6847_v39  ;;  %v6849_v54 = vld [vmem:[#allocation79_spill] sm:$0xff] }
 0x31f   :  { %v3207_v16 = vmax.f32 %v2968_v9, 0.0  ;;  %v2972_v57 = vadd.f32 %v2971_v41, %v2619_v43  ;;  %v6850_v43 = vld [vmem:[#allocation22_spill] sm:$0xff] }
 0x320   :  { %v3718_v61 = vmul.f32 %v3479_v63, %v3206_v55  ;;  %v3208_v10 = vmax.f32 %v2970_v12, 0.0  ;;  %v6852_v41 = vld [vmem:[#allocation82_spill] sm:$0xff] }
 0x321   :  { %v3719_v36 = vmul.f32 %v3479_v63, %v3207_v16  ;;  %v3209_v8 = vmax.f32 %v2972_v57, 0.0  ;;  %v2639_v63 = vadd.f32 %v6852_v41, %v6850_v43 }
 0x322   :  { %v3819_v51 = vadd.f32 %v3818_v32, %v3718_v61  ;;  %v3720_v30 = vmul.f32 %v3484_v5, %v3208_v10  ;;  %v2635_v32 = vadd.f32 %v6849_v54, %v6847_v39 }
 0x323   :  { %v3888_v42 = vadd.f32 %v3887_v45, %v3719_v36  ;;  %v3721_v11 = vmul.f32 %v3484_v5, %v3209_v8  ;;  %v2975_v14 = vpop.f32.mrb[108].mxu1  ;;  %v6851_v45 = vld [vmem:[#allocation81_spill] sm:$0xff]  ;;  %v3499_v8 = vpop.permute.xlu0 %3498 }
 0x324   :  { %v3820_v62 = vadd.f32 %v3819_v51, %v3720_v30  ;;  %v2976_v60 = vadd.f32 %v2975_v14, %v2623_v22  ;;  %v2977_v56 = vpop.f32.mrb[109].mxu1  ;;  %v2637_v9 = vadd.f32 %v6851_v45, %v6850_v43  ;;  %v3504_v30 = vpop.permute.xlu1 %3503 }
 0x325   :  { %v3889_v53 = vadd.f32 %v3888_v42, %v3721_v11  ;;  %v2978_v15 = vadd.f32 %v2977_v56, %v2625_v47  ;;  %v2979_v27 = vpop.f32.mrb[110].mxu1  ;;  %v6853_v42 = vld [vmem:[#allocation25_spill] sm:$0xff] }
 0x326   :  { %v3210_v49 = vmax.f32 %v2976_v60, 0.0  ;;  %v2980_v40 = vadd.f32 %v2979_v27, %v2627_v18  ;;  %v2981_v58 = vpop.f32.mrb[111].mxu1  ;;  %v6854_v11 = vld [vmem:[#allocation85_spill] sm:$0xff]  ;;  %v6855_v18 = vld [vmem:[#allocation86_spill] sm:$0xff] }
 0x327   :  { %v3211_v3 = vmax.f32 %v2978_v15, 0.0  ;;  %v2982_v6 = vadd.f32 %v2981_v58, %v2629_v37  ;;  %v2643_v14 = vadd.f32 %v6854_v11, %v6853_v42  ;;  %v6856_v37 = vld [vmem:[#allocation24_spill] sm:$0xff] }
 0x328   :  { %v3722_v13 = vmul.f32 %v3489_v31, %v3210_v49  ;;  %v3212_v7 = vmax.f32 %v2980_v40, 0.0  ;;  %v2649_v58 = vadd.f32 %v6411_v59, %v6856_v37  ;;  %v6859_v59 = vld [vmem:[#allocation88_spill] sm:$0xff] }
 0x329   :  { %v3723_v20 = vmul.f32 %v3489_v31, %v3211_v3  ;;  %v3213_v23 = vmax.f32 %v2982_v6, 0.0 }
 0x32a   :  { %v3821_v34 = vadd.f32 %v3820_v62, %v3722_v13  ;;  %v3724_v28 = vmul.f32 %v3494_v50, %v3212_v7  ;;  %v2645_v62 = vadd.f32 %v6855_v18, %v6853_v42 }
 0x32b   :  { %v3890_v48 = vadd.f32 %v3889_v53, %v3723_v20  ;;  %v3725_v24 = vmul.f32 %v3494_v50, %v3213_v23  ;;  %v2985_v0 = vpop.f32.mrb[112].mxu1  ;;  %v6857_v53 = vld [vmem:[#allocation87_spill] sm:$0xff]  ;;  %v3509_v20 = vpop.permute.xlu0 %3508 }
 0x32c   :  { %v3822_v52 = vadd.f32 %v3821_v34, %v3724_v28  ;;  %v2986_v55 = vadd.f32 %v2985_v0, %v2633_v2  ;;  %v2987_v12 = vpop.f32.mrb[113].mxu1  ;;  %v2647_v15 = vadd.f32 %v6857_v53, %v6856_v37  ;;  %v3514_v34 = vpop.permute.xlu1 %3513 }
 0x32d   :  { %v3891_v16 = vadd.f32 %v3890_v48, %v3725_v24  ;;  %v2988_v57 = vadd.f32 %v2987_v12, %v2635_v32  ;;  %v2989_v61 = vpop.f32.mrb[114].mxu1  ;;  %v6858_v32 = vld [vmem:[#allocation27_spill] sm:$0xff]  ;;  %v6861_v12 = vld [vmem:[#allocation89_spill] sm:$0xff] }
 0x32e   :  { %v3214_v10 = vmax.f32 %v2986_v55, 0.0  ;;  %v2990_v5 = vadd.f32 %v2989_v61, %v2637_v9  ;;  %v2991_v36 = vpop.f32.mrb[115].mxu1  ;;  %v2653_v48 = vadd.f32 %v6418_v35, %v6858_v32  ;;  %v2655_v43 = vadd.f32 %v6859_v59, %v6858_v32  ;;  %v6860_v55 = vld [vmem:[#allocation26_spill] sm:$0xff]  ;;  %v6864_v32 = vld [vmem:[#allocation31_spill] sm:$0xff] }
 0x32f   :  { %v3215_v38 = vmax.f32 %v2988_v57, 0.0  ;;  %v2992_v33 = vadd.f32 %v2991_v36, %v2639_v63  ;;  %v2657_v41 = vadd.f32 %v6861_v12, %v6860_v55  ;;  %v2659_v61 = vadd.f32 %v6433_v25, %v6860_v55 }
 0x330   :  { %v3726_v22 = vmul.f32 %v3499_v8, %v3214_v10  ;;  %v3216_v51 = vmax.f32 %v2990_v5, 0.0 }
 0x331   :  { %v3727_v29 = vmul.f32 %v3499_v8, %v3215_v38  ;;  %v3217_v47 = vmax.f32 %v2992_v33, 0.0  ;;  %v3519_v33 = vpop.permute.xlu0 %3518 }
 0x332   :  { %v3823_v19 = vadd.f32 %v3822_v52, %v3726_v22  ;;  %v3728_v21 = vmul.f32 %v3504_v30, %v3216_v51 }
 0x333   :  { %v3892_v60 = vadd.f32 %v3891_v16, %v3727_v29  ;;  %v3729_v56 = vmul.f32 %v3504_v30, %v3217_v47  ;;  %v2995_v1 = vpop.f32.mrb[116].mxu1  ;;  %v3524_v47 = vpop.permute.xlu1 %3523 }
 0x334   :  { %v3824_v27 = vadd.f32 %v3823_v19, %v3728_v21  ;;  %v2996_v49 = vadd.f32 %v2995_v1, %v2643_v14  ;;  %v2997_v40 = vpop.f32.mrb[117].mxu1  ;;  %v6862_v14 = vld [vmem:[#allocation29_spill] sm:$0xff]  ;;  %v6863_v1 = vld [vmem:[#allocation28_spill] sm:$0xff] }
 0x335   :  { %v3893_v31 = vadd.f32 %v3892_v60, %v3729_v56  ;;  %v2998_v3 = vadd.f32 %v2997_v40, %v2645_v62  ;;  %v2999_v6 = vpop.f32.mrb[118].mxu1  ;;  %v2663_v19 = vadd.f32 %v6440_v17, %v6862_v14  ;;  %v2665_v25 = vadd.f32 %v6444_v44, %v6862_v14 }
 0x336   :  { %v3218_v13 = vmax.f32 %v2996_v49, 0.0  ;;  %v3000_v7 = vadd.f32 %v2999_v6, %v2647_v15  ;;  %v3001_v50 = vpop.f32.mrb[119].mxu1  ;;  %v2667_v37 = vadd.f32 %v6448_v26, %v6863_v1  ;;  %v2669_v49 = vadd.f32 %v6455_v46, %v6863_v1 }
 0x337   :  { %v3219_v23 = vmax.f32 %v2998_v3, 0.0  ;;  %v3002_v39 = vadd.f32 %v3001_v50, %v2649_v58 }
 0x338   :  { %v3730_v4 = vmul.f32 %v3509_v20, %v3218_v13  ;;  %v3220_v2 = vmax.f32 %v3000_v7, 0.0  ;;  %v3529_v13 = vpop.permute.xlu0 %3528 }
 0x339   :  { %v3731_v28 = vmul.f32 %v3509_v20, %v3219_v23  ;;  %v3221_v54 = vmax.f32 %v3002_v39, 0.0  ;;  %v3534_v23 = vpop.permute.xlu1 %3533 }
 0x33a   :  { %v3825_v24 = vadd.f32 %v3824_v27, %v3730_v4  ;;  %v3732_v0 = vmul.f32 %v3514_v34, %v3220_v2 }
 0x33b   :  { %v3894_v45 = vadd.f32 %v3893_v31, %v3731_v28  ;;  %v3733_v9 = vmul.f32 %v3514_v34, %v3221_v54  ;;  %v3005_v52 = vpop.f32.mrb[120].mxu1 }
 0x33c   :  { %v3826_v63 = vadd.f32 %v3825_v24, %v3732_v0  ;;  %v3006_v16 = vadd.f32 %v3005_v52, %v2653_v48  ;;  %v3007_v57 = vpop.f32.mrb[121].mxu1  ;;  %v3539_v12 = vpop.permute.xlu0 %3538 }
 0x33d   :  { %v3895_v10 = vadd.f32 %v3894_v45, %v3733_v9  ;;  %v3008_v5 = vadd.f32 %v3007_v57, %v2655_v43  ;;  %v3009_v35 = vpop.f32.mrb[122].mxu1  ;;  %v6865_v9 = vld [vmem:[#allocation30_spill] sm:$0xff] }
 0x33e   :  { %v3222_v36 = vmax.f32 %v3006_v16, 0.0  ;;  %v3010_v8 = vadd.f32 %v3009_v35, %v2657_v41  ;;  %v3011_v38 = vpop.f32.mrb[123].mxu1 }
 0x33f   :  { %v3223_v22 = vmax.f32 %v3008_v5, 0.0  ;;  %v3012_v51 = vadd.f32 %v3011_v38, %v2659_v61  ;;  %v3544_v61 = vpop.permute.xlu1 %3543 }
 0x340   :  { %v3734_v30 = vmul.f32 %v3519_v33, %v3222_v36  ;;  %v3224_v29 = vmax.f32 %v3010_v8, 0.0 }
 0x341   :  { %v3735_v42 = vmul.f32 %v3519_v33, %v3223_v22  ;;  %v3225_v11 = vmax.f32 %v3012_v51, 0.0  ;;  %v6866_v51 = vld [vmem:[#allocation33_spill] sm:$0xff] }
 0x342   :  { %v3827_v21 = vadd.f32 %v3826_v63, %v3734_v30  ;;  %v3736_v18 = vmul.f32 %v3524_v47, %v3224_v29 }
 0x343   :  { %v3896_v62 = vadd.f32 %v3895_v10, %v3735_v42  ;;  %v3737_v60 = vmul.f32 %v3524_v47, %v3225_v11  ;;  %v3015_v56 = vpop.f32.mrb[124].mxu1 }
 0x344   :  { %v3828_v53 = vadd.f32 %v3827_v21, %v3736_v18  ;;  %v3016_v15 = vadd.f32 %v3015_v56, %v2663_v19  ;;  %v3017_v27 = vpop.f32.mrb[125].mxu1  ;;  %v6867_v19 = vld [vmem:[#allocation32_spill] sm:$0xff] }
 0x345   :  { %v3897_v40 = vadd.f32 %v3896_v62, %v3737_v60  ;;  %v3018_v58 = vadd.f32 %v3017_v27, %v2665_v25  ;;  %v3019_v17 = vpop.f32.mrb[126].mxu1  ;;  %v3549_v25 = vpop.permute.xlu0 %3548 }
 0x346   :  { %v3226_v31 = vmax.f32 %v3016_v15, 0.0  ;;  %v3020_v3 = vadd.f32 %v3019_v17, %v2667_v37  ;;  %v3021_v6 = vpop.f32.mrb[127].mxu1  ;;  %v3554_v37 = vpop.permute.xlu1 %3553 }
 0x347   :  { %v3227_v44 = vmax.f32 %v3018_v58, 0.0  ;;  %v3022_v7 = vadd.f32 %v3021_v6, %v2669_v49 }
 0x348   :  { %v3738_v50 = vmul.f32 %v3529_v13, %v3226_v31  ;;  %v3228_v20 = vmax.f32 %v3020_v3, 0.0  ;;  %v6868_v3 = vld [vmem:[#allocation36_spill] sm:$0xff] }
 0x349   :  { %v3739_v39 = vmul.f32 %v3529_v13, %v3227_v44  ;;  %v3229_v26 = vmax.f32 %v3022_v7, 0.0 }
 0x34a   :  { %v3829_v4 = vadd.f32 %v3828_v53, %v3738_v50  ;;  %v3740_v2 = vmul.f32 %v3534_v23, %v3228_v20 }
 0x34b   :  { %v3898_v34 = vadd.f32 %v3897_v40, %v3739_v39  ;;  %v3741_v28 = vmul.f32 %v3534_v23, %v3229_v26  ;;  %v3025_v54 = vpop.f32.mrb[0].mxu1  ;;  %v6869_v23 = vld [vmem:[#allocation34_spill] sm:$0xff] }
 0x34c   :  { %v3830_v46 = vadd.f32 %v3829_v4, %v3740_v2  ;;  %v4370_v48 = vadd.f32 %v3025_v54, %v6864_v32  ;;  %v3027_v24 = vpop.f32.mrb[1].mxu1  ;;  %v3559_v4 = vpop.permute.xlu0 %3558 }
 0x34d   :  { %v3899_v0 = vadd.f32 %v3898_v34, %v3741_v28  ;;  %v4371_v59 = vadd.f32 %v3027_v24, %v6864_v32  ;;  %v3029_v43 = vpop.f32.mrb[2].mxu1 }
 0x34e   :  { %v3230_v45 = vmax.f32 %v4370_v48, 0.0  ;;  %v4372_v52 = vadd.f32 %v3029_v43, %v6865_v9  ;;  %v3031_v55 = vpop.f32.mrb[3].mxu1 }
 0x34f   :  { %v3231_v41 = vmax.f32 %v4371_v59, 0.0  ;;  %v4373_v63 = vadd.f32 %v3031_v55, %v6865_v9 }
 0x350   :  { %v3742_v16 = vmul.f32 %v3539_v12, %v3230_v45  ;;  %v3232_v57 = vmax.f32 %v4372_v52, 0.0  ;;  %v6870_v52 = vld [vmem:[#allocation40_spill] sm:$0xff] }
 0x351   :  { %v3743_v10 = vmul.f32 %v3539_v12, %v3231_v41  ;;  %v3233_v5 = vmax.f32 %v4373_v63, 0.0 }
 0x352   :  { %v3831_v35 = vadd.f32 %v3830_v46, %v3742_v16  ;;  %v3744_v36 = vmul.f32 %v3544_v61, %v3232_v57  ;;  %v3564_v46 = vpop.permute.xlu1 %3563 }
 0x353   :  { %v3900_v8 = vadd.f32 %v3899_v0, %v3743_v10  ;;  %v3745_v38 = vmul.f32 %v3544_v61, %v3233_v5  ;;  %v3035_v33 = vpop.f32.mrb[4].mxu1  ;;  %v6871_v61 = vld [vmem:[#allocation38_spill] sm:$0xff] }
 0x354   :  { %v3832_v22 = vadd.f32 %v3831_v35, %v3744_v36  ;;  %v4374_v30 = vadd.f32 %v3035_v33, %v6866_v51  ;;  %v3037_v29 = vpop.f32.mrb[5].mxu1  ;;  %v3569_v35 = vpop.permute.xlu0 %3568 }
 0x355   :  { %v3901_v47 = vadd.f32 %v3900_v8, %v3745_v38  ;;  %v4375_v42 = vadd.f32 %v3037_v29, %v6866_v51  ;;  %v3039_v11 = vpop.f32.mrb[6].mxu1 }
 0x356   :  { %v3234_v14 = vmax.f32 %v4374_v30, 0.0  ;;  %v4376_v21 = vadd.f32 %v3039_v11, %v6867_v19  ;;  %v3041_v18 = vpop.f32.mrb[7].mxu1 }
 0x357   :  { %v3235_v62 = vmax.f32 %v4375_v42, 0.0  ;;  %v4377_v60 = vadd.f32 %v3041_v18, %v6867_v19 }
 0x358   :  { %v3746_v56 = vmul.f32 %v3549_v25, %v3234_v14  ;;  %v3236_v1 = vmax.f32 %v4376_v21, 0.0  ;;  %v6872_v21 = vld [vmem:[#allocation44_spill] sm:$0xff] }
 0x359   :  { %v3747_v53 = vmul.f32 %v3549_v25, %v3235_v62  ;;  %v3237_v15 = vmax.f32 %v4377_v60, 0.0 }
 0x35a   :  { %v3833_v27 = vadd.f32 %v3832_v22, %v3746_v56  ;;  %v3748_v49 = vmul.f32 %v3554_v37, %v3236_v1  ;;  %v3574_v22 = vpop.permute.xlu1 %3573 }
 0x35b   :  { %v3902_v40 = vadd.f32 %v3901_v47, %v3747_v53  ;;  %v3749_v58 = vmul.f32 %v3554_v37, %v3237_v15  ;;  %v3045_v17 = vpop.f32.mrb[8].mxu1  ;;  %v6873_v37 = vld [vmem:[#allocation43_spill] sm:$0xff] }
 0x35c   :  { %v3834_v31 = vadd.f32 %v3833_v27, %v3748_v49  ;;  %v4378_v6 = vadd.f32 %v3045_v17, %v6868_v3  ;;  %v3047_v13 = vpop.f32.mrb[9].mxu1  ;;  %v3579_v27 = vpop.permute.xlu0 %3578 }
 0x35d   :  { %v3903_v44 = vadd.f32 %v3902_v40, %v3749_v58  ;;  %v4379_v7 = vadd.f32 %v3047_v13, %v6868_v3  ;;  %v3049_v50 = vpop.f32.mrb[10].mxu1 }
 0x35e   :  { %v3238_v20 = vmax.f32 %v4378_v6, 0.0  ;;  %v4380_v39 = vadd.f32 %v3049_v50, %v6869_v23  ;;  %v3051_v26 = vpop.f32.mrb[11].mxu1 }
 0x35f   :  { %v3239_v2 = vmax.f32 %v4379_v7, 0.0  ;;  %v4381_v34 = vadd.f32 %v3051_v26, %v6869_v23 }
 0x360   :  { %v3750_v28 = vmul.f32 %v3559_v4, %v3238_v20  ;;  %v3240_v54 = vmax.f32 %v4380_v39, 0.0  ;;  %v6874_v39 = vld [vmem:[#allocation50_spill] sm:$0xff] }
 0x361   :  { %v3751_v32 = vmul.f32 %v3559_v4, %v3239_v2  ;;  %v3241_v48 = vmax.f32 %v4381_v34, 0.0 }
 0x362   :  { %v3835_v24 = vadd.f32 %v3834_v31, %v3750_v28  ;;  %v3752_v0 = vmul.f32 %v3564_v46, %v3240_v54  ;;  %v3584_v31 = vpop.permute.xlu1 %3583 }
 0x363   :  { %v3904_v59 = vadd.f32 %v3903_v44, %v3751_v32  ;;  %v3753_v43 = vmul.f32 %v3564_v46, %v3241_v48  ;;  %v3055_v45 = vpop.f32.mrb[12].mxu1  ;;  %v6875_v46 = vld [vmem:[#allocation49_spill] sm:$0xff] }
 0x364   :  { %v3836_v9 = vadd.f32 %v3835_v24, %v3752_v0  ;;  %v4382_v55 = vadd.f32 %v3055_v45, %v6870_v52  ;;  %v3057_v12 = vpop.f32.mrb[13].mxu1  ;;  %v3589_v24 = vpop.permute.xlu0 %3588 }
 0x365   :  { %v3905_v41 = vadd.f32 %v3904_v59, %v3753_v43  ;;  %v4383_v63 = vadd.f32 %v3057_v12, %v6870_v52  ;;  %v3059_v16 = vpop.f32.mrb[14].mxu1 }
 0x366   :  { %v3242_v57 = vmax.f32 %v4382_v55, 0.0  ;;  %v4384_v10 = vadd.f32 %v3059_v16, %v6871_v61  ;;  %v3061_v5 = vpop.f32.mrb[15].mxu1 }
 0x367   :  { %v3243_v36 = vmax.f32 %v4383_v63, 0.0  ;;  %v4385_v8 = vadd.f32 %v3061_v5, %v6871_v61 }
 0x368   :  { %v3754_v38 = vmul.f32 %v3569_v35, %v3242_v57  ;;  %v3244_v33 = vmax.f32 %v4384_v10, 0.0  ;;  %v6876_v10 = vld [vmem:[#allocation56_spill] sm:$0xff] }
 0x369   :  { %v3755_v51 = vmul.f32 %v3569_v35, %v3243_v36  ;;  %v3245_v30 = vmax.f32 %v4385_v8, 0.0 }
 0x36a   :  { %v3837_v29 = vadd.f32 %v3836_v9, %v3754_v38  ;;  %v3756_v47 = vmul.f32 %v3574_v22, %v3244_v33  ;;  %v3594_v9 = vpop.permute.xlu1 %3593 }
 0x36b   :  { %v3906_v42 = vadd.f32 %v3905_v41, %v3755_v51  ;;  %v3757_v11 = vmul.f32 %v3574_v22, %v3245_v30  ;;  %v3065_v14 = vpop.f32.mrb[16].mxu1  ;;  %v6877_v22 = vld [vmem:[#allocation54_spill] sm:$0xff] }
 0x36c   :  { %v3838_v19 = vadd.f32 %v3837_v29, %v3756_v47  ;;  %v4386_v18 = vadd.f32 %v3065_v14, %v6872_v21  ;;  %v3067_v25 = vpop.f32.mrb[17].mxu1  ;;  %v3599_v29 = vpop.permute.xlu0 %3598 }
 0x36d   :  { %v3907_v62 = vadd.f32 %v3906_v42, %v3757_v11  ;;  %v4387_v60 = vadd.f32 %v3067_v25, %v6872_v21  ;;  %v3069_v56 = vpop.f32.mrb[18].mxu1 }
 0x36e   :  { %v3246_v1 = vmax.f32 %v4386_v18, 0.0  ;;  %v4388_v53 = vadd.f32 %v3069_v56, %v6873_v37  ;;  %v3071_v15 = vpop.f32.mrb[19].mxu1 }
 0x36f   :  { %v3247_v49 = vmax.f32 %v4387_v60, 0.0  ;;  %v4389_v40 = vadd.f32 %v3071_v15, %v6873_v37 }
 0x370   :  { %v3758_v58 = vmul.f32 %v3579_v27, %v3246_v1  ;;  %v3248_v17 = vmax.f32 %v4388_v53, 0.0  ;;  %v6878_v53 = vld [vmem:[#allocation60_spill] sm:$0xff] }
 0x371   :  { %v3759_v3 = vmul.f32 %v3579_v27, %v3247_v49  ;;  %v3249_v6 = vmax.f32 %v4389_v40, 0.0 }
 0x372   :  { %v3839_v13 = vadd.f32 %v3838_v19, %v3758_v58  ;;  %v3760_v44 = vmul.f32 %v3584_v31, %v3248_v17  ;;  %v3604_v19 = vpop.permute.xlu1 %3603 }
 0x373   :  { %v3908_v7 = vadd.f32 %v3907_v62, %v3759_v3  ;;  %v3761_v50 = vmul.f32 %v3584_v31, %v3249_v6  ;;  %v3075_v20 = vpop.f32.mrb[20].mxu1  ;;  %v6879_v31 = vld [vmem:[#allocation58_spill] sm:$0xff] }
 0x374   :  { %v3840_v23 = vadd.f32 %v3839_v13, %v3760_v44  ;;  %v4390_v26 = vadd.f32 %v3075_v20, %v6874_v39  ;;  %v3077_v4 = vpop.f32.mrb[21].mxu1  ;;  %v3609_v13 = vpop.permute.xlu0 %3608 }
 0x375   :  { %v3909_v2 = vadd.f32 %v3908_v7, %v3761_v50  ;;  %v4391_v34 = vadd.f32 %v3077_v4, %v6874_v39  ;;  %v3079_v28 = vpop.f32.mrb[22].mxu1 }
 0x376   :  { %v3250_v54 = vmax.f32 %v4390_v26, 0.0  ;;  %v4392_v32 = vadd.f32 %v3079_v28, %v6875_v46  ;;  %v3081_v48 = vpop.f32.mrb[23].mxu1 }
 0x377   :  { %v3251_v0 = vmax.f32 %v4391_v34, 0.0  ;;  %v4393_v59 = vadd.f32 %v3081_v48, %v6875_v46 }
 0x378   :  { %v3762_v43 = vmul.f32 %v3589_v24, %v3250_v54  ;;  %v3252_v45 = vmax.f32 %v4392_v32, 0.0  ;;  %v6880_v32 = vld [vmem:[#allocation64_spill] sm:$0xff] }
 0x379   :  { %v3763_v52 = vmul.f32 %v3589_v24, %v3251_v0  ;;  %v3253_v55 = vmax.f32 %v4393_v59, 0.0 }
 0x37a   :  { %v3841_v12 = vadd.f32 %v3840_v23, %v3762_v43  ;;  %v3764_v41 = vmul.f32 %v3594_v9, %v3252_v45  ;;  %v3614_v23 = vpop.permute.xlu1 %3613 }
 0x37b   :  { %v3910_v63 = vadd.f32 %v3909_v2, %v3763_v52  ;;  %v3765_v16 = vmul.f32 %v3594_v9, %v3253_v55  ;;  %v3085_v57 = vpop.f32.mrb[24].mxu1  ;;  %v6881_v9 = vld [vmem:[#allocation63_spill] sm:$0xff] }
 0x37c   :  { %v3842_v61 = vadd.f32 %v3841_v12, %v3764_v41  ;;  %v4394_v5 = vadd.f32 %v3085_v57, %v6876_v10  ;;  %v3087_v35 = vpop.f32.mrb[25].mxu1  ;;  %v3619_v12 = vpop.permute.xlu0 %3618 }
 0x37d   :  { %v3911_v36 = vadd.f32 %v3910_v63, %v3765_v16  ;;  %v4395_v8 = vadd.f32 %v3087_v35, %v6876_v10  ;;  %v3089_v38 = vpop.f32.mrb[26].mxu1 }
 0x37e   :  { %v3254_v33 = vmax.f32 %v4394_v5, 0.0  ;;  %v4396_v51 = vadd.f32 %v3089_v38, %v6877_v22  ;;  %v3091_v30 = vpop.f32.mrb[27].mxu1 }
 0x37f   :  { %v3255_v47 = vmax.f32 %v4395_v8, 0.0  ;;  %v4397_v42 = vadd.f32 %v3091_v30, %v6877_v22 }
 0x380   :  { %v3766_v11 = vmul.f32 %v3599_v29, %v3254_v33  ;;  %v3256_v14 = vmax.f32 %v4396_v51, 0.0  ;;  %v6882_v51 = vld [vmem:[#allocation70_spill] sm:$0xff] }
 0x381   :  { %v3767_v21 = vmul.f32 %v3599_v29, %v3255_v47  ;;  %v3257_v18 = vmax.f32 %v4397_v42, 0.0 }
 0x382   :  { %v3843_v25 = vadd.f32 %v3842_v61, %v3766_v11  ;;  %v3768_v62 = vmul.f32 %v3604_v19, %v3256_v14  ;;  %v3624_v61 = vpop.permute.xlu1 %3623 }
 0x383   :  { %v3912_v60 = vadd.f32 %v3911_v36, %v3767_v21  ;;  %v3769_v56 = vmul.f32 %v3604_v19, %v3257_v18  ;;  %v3095_v1 = vpop.f32.mrb[28].mxu1  ;;  %v6883_v19 = vld [vmem:[#allocation69_spill] sm:$0xff] }
 0x384   :  { %v3844_v37 = vadd.f32 %v3843_v25, %v3768_v62  ;;  %v4398_v15 = vadd.f32 %v3095_v1, %v6878_v53  ;;  %v3097_v27 = vpop.f32.mrb[29].mxu1  ;;  %v3629_v25 = vpop.permute.xlu0 %3628 }
 0x385   :  { %v3913_v49 = vadd.f32 %v3912_v60, %v3769_v56  ;;  %v4399_v40 = vadd.f32 %v3097_v27, %v6878_v53  ;;  %v3099_v58 = vpop.f32.mrb[30].mxu1 }
 0x386   :  { %v3258_v17 = vmax.f32 %v4398_v15, 0.0  ;;  %v4400_v3 = vadd.f32 %v3099_v58, %v6879_v31  ;;  %v3101_v6 = vpop.f32.mrb[31].mxu1 }
 0x387   :  { %v3259_v44 = vmax.f32 %v4399_v40, 0.0  ;;  %v4401_v7 = vadd.f32 %v3101_v6, %v6879_v31 }
 0x388   :  { %v3770_v50 = vmul.f32 %v3609_v13, %v3258_v17  ;;  %v3260_v20 = vmax.f32 %v4400_v3, 0.0  ;;  %v6884_v3 = vld [vmem:[#allocation76_spill] sm:$0xff] }
 0x389   :  { %v3771_v39 = vmul.f32 %v3609_v13, %v3259_v44  ;;  %v3261_v26 = vmax.f32 %v4401_v7, 0.0 }
 0x38a   :  { %v3845_v4 = vadd.f32 %v3844_v37, %v3770_v50  ;;  %v3772_v2 = vmul.f32 %v3614_v23, %v3260_v20  ;;  %v3634_v37 = vpop.permute.xlu1 %3633 }
 0x38b   :  { %v3914_v34 = vadd.f32 %v3913_v49, %v3771_v39  ;;  %v3773_v28 = vmul.f32 %v3614_v23, %v3261_v26  ;;  %v3105_v54 = vpop.f32.mrb[32].mxu1  ;;  %v6885_v23 = vld [vmem:[#allocation74_spill] sm:$0xff] }
 0x38c   :  { %v3846_v46 = vadd.f32 %v3845_v4, %v3772_v2  ;;  %v4402_v48 = vadd.f32 %v3105_v54, %v6880_v32  ;;  %v3107_v24 = vpop.f32.mrb[33].mxu1  ;;  %v3639_v4 = vpop.permute.xlu0 %3638 }
 0x38d   :  { %v3915_v0 = vadd.f32 %v3914_v34, %v3773_v28  ;;  %v4403_v59 = vadd.f32 %v3107_v24, %v6880_v32  ;;  %v3109_v43 = vpop.f32.mrb[34].mxu1 }
 0x38e   :  { %v3262_v45 = vmax.f32 %v4402_v48, 0.0  ;;  %v4404_v52 = vadd.f32 %v3109_v43, %v6881_v9  ;;  %v3111_v55 = vpop.f32.mrb[35].mxu1 }
 0x38f   :  { %v3263_v41 = vmax.f32 %v4403_v59, 0.0  ;;  %v4405_v63 = vadd.f32 %v3111_v55, %v6881_v9 }
 0x390   :  { %v3774_v16 = vmul.f32 %v3619_v12, %v3262_v45  ;;  %v3264_v57 = vmax.f32 %v4404_v52, 0.0  ;;  %v6886_v52 = vld [vmem:[#allocation80_spill] sm:$0xff] }
 0x391   :  { %v3775_v10 = vmul.f32 %v3619_v12, %v3263_v41  ;;  %v3265_v5 = vmax.f32 %v4405_v63, 0.0 }
 0x392   :  { %v3847_v35 = vadd.f32 %v3846_v46, %v3774_v16  ;;  %v3776_v36 = vmul.f32 %v3624_v61, %v3264_v57  ;;  %v3644_v46 = vpop.permute.xlu1 %3643 }
 0x393   :  { %v3916_v8 = vadd.f32 %v3915_v0, %v3775_v10  ;;  %v3777_v38 = vmul.f32 %v3624_v61, %v3265_v5  ;;  %v3115_v33 = vpop.f32.mrb[36].mxu1  ;;  %v6887_v61 = vld [vmem:[#allocation78_spill] sm:$0xff] }
 0x394   :  { %v3848_v22 = vadd.f32 %v3847_v35, %v3776_v36  ;;  %v4406_v30 = vadd.f32 %v3115_v33, %v6882_v51  ;;  %v3117_v29 = vpop.f32.mrb[37].mxu1  ;;  %v3649_v35 = vpop.permute.xlu0 %3648 }
 0x395   :  { %v3917_v47 = vadd.f32 %v3916_v8, %v3777_v38  ;;  %v4407_v42 = vadd.f32 %v3117_v29, %v6882_v51  ;;  %v3119_v11 = vpop.f32.mrb[38].mxu1 }
 0x396   :  { %v3266_v14 = vmax.f32 %v4406_v30, 0.0  ;;  %v4408_v21 = vadd.f32 %v3119_v11, %v6883_v19  ;;  %v3121_v18 = vpop.f32.mrb[39].mxu1 }
 0x397   :  { %v3267_v62 = vmax.f32 %v4407_v42, 0.0  ;;  %v4409_v60 = vadd.f32 %v3121_v18, %v6883_v19 }
 0x398   :  { %v3778_v56 = vmul.f32 %v3629_v25, %v3266_v14  ;;  %v3268_v1 = vmax.f32 %v4408_v21, 0.0  ;;  %v6888_v21 = vld [vmem:[#allocation84_spill] sm:$0xff] }
 0x399   :  { %v3779_v53 = vmul.f32 %v3629_v25, %v3267_v62  ;;  %v3269_v15 = vmax.f32 %v4409_v60, 0.0 }
 0x39a   :  { %v3849_v27 = vadd.f32 %v3848_v22, %v3778_v56  ;;  %v3780_v49 = vmul.f32 %v3634_v37, %v3268_v1  ;;  %v3654_v22 = vpop.permute.xlu1 %3653 }
 0x39b   :  { %v3918_v40 = vadd.f32 %v3917_v47, %v3779_v53  ;;  %v3781_v58 = vmul.f32 %v3634_v37, %v3269_v15  ;;  %v3125_v17 = vpop.f32.mrb[40].mxu1  ;;  %v6889_v37 = vld [vmem:[#allocation83_spill] sm:$0xff] }
 0x39c   :  { %v3850_v31 = vadd.f32 %v3849_v27, %v3780_v49  ;;  %v4410_v6 = vadd.f32 %v3125_v17, %v6884_v3  ;;  %v3127_v13 = vpop.f32.mrb[41].mxu1  ;;  %v3659_v27 = vpop.permute.xlu0 %3658 }
 0x39d   :  { %v3919_v44 = vadd.f32 %v3918_v40, %v3781_v58  ;;  %v4411_v7 = vadd.f32 %v3127_v13, %v6884_v3  ;;  %v3129_v50 = vpop.f32.mrb[42].mxu1 }
 0x39e   :  { %v3270_v20 = vmax.f32 %v4410_v6, 0.0  ;;  %v4412_v39 = vadd.f32 %v3129_v50, %v6885_v23  ;;  %v3131_v26 = vpop.f32.mrb[43].mxu1 }
 0x39f   :  { %v3271_v2 = vmax.f32 %v4411_v7, 0.0  ;;  %v4413_v34 = vadd.f32 %v3131_v26, %v6885_v23 }
 0x3a0   :  { %v3782_v28 = vmul.f32 %v3639_v4, %v3270_v20  ;;  %v3272_v54 = vmax.f32 %v4412_v39, 0.0 }
 0x3a1   :  { %v3783_v32 = vmul.f32 %v3639_v4, %v3271_v2  ;;  %v3273_v48 = vmax.f32 %v4413_v34, 0.0 }
 0x3a2   :  { %v3851_v24 = vadd.f32 %v3850_v31, %v3782_v28  ;;  %v3784_v0 = vmul.f32 %v3644_v46, %v3272_v54  ;;  %v3664_v31 = vpop.permute.xlu1 %3663 }
 0x3a3   :  { %v3920_v59 = vadd.f32 %v3919_v44, %v3783_v32  ;;  %v3785_v43 = vmul.f32 %v3644_v46, %v3273_v48  ;;  %v3135_v45 = vpop.f32.mrb[44].mxu1 }
 0x3a4   :  { %v3852_v9 = vadd.f32 %v3851_v24, %v3784_v0  ;;  %v4414_v55 = vadd.f32 %v3135_v45, %v6886_v52  ;;  %v3137_v12 = vpop.f32.mrb[45].mxu1  ;;  %v3933_v24 = vstv %s6670_s6  ;;  %s4740_s6 = smov [#allocation3]  }
 0x3a5   :  { %v3921_v41 = vadd.f32 %v3920_v59, %v3785_v43  ;;  %v4415_v63 = vadd.f32 %v3137_v12, %v6886_v52  ;;  %v3139_v16 = vpop.f32.mrb[46].mxu1  ;;  %s3983_s28 = sshll.u32 %s4740_s6, 4  ;;  %s3984_s28 = int_to_ptr.vmem [resolvable:$true] %s3983_s28 }
 0x3a6   :  { %v3274_v57 = vmax.f32 %v4414_v55, 0.0  ;;  %v4416_v10 = vadd.f32 %v3139_v16, %v6887_v61  ;;  %v3141_v5 = vpop.f32.mrb[47].mxu1  ;;  %s4714_s29 = scalar_lea.vmem %s3984_s28, 32  ;;  %p4719_p1 = scmp.lt.s32.totalorder %s3984_s28, %s3984_s28 }
 0x3a7   :  { %v3275_v36 = vmax.f32 %v4415_v63, 0.0  ;;  %v4417_v8 = vadd.f32 %v3141_v5, %v6887_v61  ;;  %v4739_v5 = vmov 1966171168   ;;  %p4715_p0 = scmp.ne.s32.totalorder %s3984_s28, %s4714_s29  ;;  %p4720_p2 = scmp.lt.s32.totalorder %s4714_s29, %s4714_s29 }
 0x3a8   :  { %v3786_v38 = vmul.f32 %v3649_v35, %v3274_v57  ;;  %v3276_v33 = vmax.f32 %v4416_v10, 0.0 }
 0x3a9   :  { %v3787_v51 = vmul.f32 %v3649_v35, %v3275_v36  ;;  %v3277_v30 = vmax.f32 %v4417_v8, 0.0  ;;  %v3958_v35 = vunpack.c.l.s4 %v4739_v5  ;;  %v3960_v36 = vlaneseq  ;;  %p4721_p3 = por %p4720_p2, %p4719_p1 }
 0x3aa   :  { %v3853_v29 = vadd.f32 %v3852_v9, %v3786_v38  ;;  %v3788_v47 = vmul.f32 %v3654_v22, %v3276_v33 }
 0x3ab   :  { %v3922_v42 = vadd.f32 %v3921_v41, %v3787_v51  ;;  %v3789_v11 = vmul.f32 %v3654_v22, %v3277_v30  ;;  %v3145_v14 = vpop.f32.mrb[48].mxu1  ;;  %v3959_v8 = vunpack.c.0.s8 %v3958_v35  ;;  %v3961_v38 = vshrl.u32 %v3960_v36, 7  ;;  %p4722_p4 = pnand %p4721_p3, %p4715_p0 }
 0x3ac   :  { %v3854_v19 = vadd.f32 %v3853_v29, %v3788_v47  ;;  %v4418_v18 = vadd.f32 %v3145_v14, %v6888_v21  ;;  %v3147_v25 = vpop.f32.mrb[49].mxu1  ;;  %vm3974_vm4 = vcmp.lt.s32.totalorder %v3960_v36, 256 }
 0x3ad   :  { %v3923_v62 = vadd.f32 %v3922_v42, %v3789_v11  ;;  %v4419_v60 = vadd.f32 %v3147_v25, %v6888_v21  ;;  %v3149_v56 = vpop.f32.mrb[50].mxu1  ;;  %v3962_v47 = vsub.s32 %v3959_v8, %v3961_v38 }
 0x3ae   :  { %v3278_v1 = vmax.f32 %v4418_v18, 0.0  ;;  %v4420_v53 = vadd.f32 %v3149_v56, %v6889_v37  ;;  %v3151_v15 = vpop.f32.mrb[51].mxu1 }
 0x3af   :  { %v3279_v49 = vmax.f32 %v4419_v60, 0.0  ;;  %v4421_v40 = vadd.f32 %v3151_v15, %v6889_v37 }
 0x3b0   :  { %v3790_v58 = vmul.f32 %v3659_v27, %v3278_v1  ;;  %v3280_v17 = vmax.f32 %v4420_v53, 0.0 }
 0x3b1   :  { %v3791_v3 = vmul.f32 %v3659_v27, %v3279_v49  ;;  %v3281_v6 = vmax.f32 %v4421_v40, 0.0 }
 0x3b2   :  { %v3855_v13 = vadd.f32 %v3854_v19, %v3790_v58  ;;  %v3792_v44 = vmul.f32 %v3664_v31, %v3280_v17 }
 0x3b3   :  { %v3924_v7 = vadd.f32 %v3923_v62, %v3791_v3  ;;  %v3793_v50 = vmul.f32 %v3664_v31, %v3281_v6 }
 0x3b4   :  { %v3856_v20 = vadd.f32 %v3855_v13, %v3792_v44 }
 0x3b5   :  { %v3925_v23 = vadd.f32 %v3924_v7, %v3793_v50 }
 0x3b6   :  { %v3857_v39 = vrot.slane %v3856_v20, 4 }
 0x3b7   :  { %v3926_v26 = vrot.slane %v3925_v23, 4 }
 0x3b8   :  { %v3858_v4 = vadd.f32 %v3857_v39, %v3856_v20 }
 0x3b9   :  { %v3927_v2 = vadd.f32 %v3926_v26, %v3925_v23 }
 0x3ba   :  { %v3859_v34 = vrot.slane %v3858_v4, 2 }
 0x3bb   :  { %v3928_v28 = vrot.slane %v3927_v2, 2 }
 0x3bc   :  { %v3860_v54 = vadd.f32 %v3859_v34, %v3858_v4 }
 0x3bd   :  { %v3929_v46 = vadd.f32 %v3928_v28, %v3927_v2 }
 0x3be   :  { %v3861_v32 = vrot.slane %v3860_v54, 1 }
 0x3bf   :  { %v3930_v48 = vrot.slane %v3929_v46, 1 }
 0x3c0   :  { %v3862_v0 = vadd.f32 %v3861_v32, %v3860_v54 }
 0x3c1   :  { %v3931_v59 = vadd.f32 %v3930_v48, %v3929_v46 }
 0x3c2   :  { %v3934_v43 = vadd.f32 %v3933_v24, %v3862_v0 }
 0x3c3   :  { %v3935_v45 = vadd.f32 %v3933_v24, %v3931_v59 }
 0x3c4   :  { %v3936_v9 = vand.u32 2147483647, %v3934_v43  ;;  %vm3948_vm2 = vcmp.ge.f32.partialorder %v3934_v43, 0.0 }
 0x3c5   :  { %v3937_v52 = vand.u32 2147483647, %v3935_v45  ;;  %vm3949_vm3 = vcmp.ge.f32.partialorder %v3935_v45, 0.0 }
 0x3c6   :  { %v3938_v55 = vsub.f32 0.0, %v3936_v9 }
 0x3c7   :  { %v3939_v12 = vsub.f32 0.0, %v3937_v52 }
 0x3c8   :  { %v3940_v41 = vmul.f32 1.442695, %v3938_v55 }
 0x3c9   :  { %v3942_v63 = vmul.f32 1.442695, %v3939_v12 }
 0x3ca   :  { %4706 = vpow2.f32 %v3940_v41 }
 0x3cb   :  { %4708 = vpow2.f32 %v3942_v63 }
 0x3d4   :  { %v4707_v16 = vpop.eup %4706 }
 0x3d5   :  { %v4709_v57 = vpop.eup %4708  ;;  %v3944_v61 = vadd.f32 1.0, %v4707_v16 }
 0x3d6   :  { %v3945_v10 = vadd.f32 1.0, %v4709_v57 }
 0x3d7   :  { %4710 = vrcp.f32 %v3944_v61 }
 0x3d8   :  { %4712 = vrcp.f32 %v3945_v10 }
 0x3e1   :  { %v4711_v33 = vpop.eup %4710 }
 0x3e2   :  { %v4713_v22 = vpop.eup %4712  ;;  %v3950_v51 = vsub.f32 1.0, %v4711_v33 }
 0x3e3   :  { %v3951_v30 = vsub.f32 1.0, %v4713_v22 }
 0x3e4   :  { %v3952_v29 = vsel %vm3948_vm2, %v4711_v33, %v3950_v51 }
 0x3e5   :  { %v3953_v42 = vsel %vm3949_vm3, %v4713_v22, %v3951_v30 }
 0x3e6   :  { %v3956_v11 = vcombine.low %v3952_v29, %v3953_v42 }
 0x3e8   :  { %v3963_v14 = vrot.slane %v3956_v11, %v3962_v47 }
 0x3ea   :  { %v3970_v19 = vrot.slane %v3963_v14, %v3962_v47 }
 0x3ec   :  { %3976 = vst.msk [vmem:[#allocation3] sm:$0x3] %vm3974_vm4, %v3970_v19 }
 0x3ed   :  { %4725 = shalt.err (!%p4722_p4)
}
 0x3ee   :  { %s4726_s9 = scalar_lea.hbm %s6671_s7, 32 }
 0x3ef   :  { %p4727_p5 = scmp.ne.s32.totalorder %s6671_s7, %s4726_s9  ;;  %p4730_p6 = scmp.lt.u32.totalorder %s4726_s9, %s6671_s7 }
 0x3f1   :  { %p4732_p7 = pnand %p4730_p6, %p4727_p5 }
 0x3f3   :  { %4735 = shalt.err (!%p4732_p7)
}
 0x3f4   :  { %3986 = dma.vmem_to_hbm [thread:$0]  %s3984_s28, 32, %s6671_s7, [#allocation4]  }
 0x3f5   :  { %4736 = dma.done.wait [#allocation4], 32  }
 0x3f6   :  { %4737 = vsyncadd [#allocation4], 4294967264 }
 0x3f7   :  { %3990 = vsyncpa [#allocation4], 1 }

</bundles_post_ra>
